<compile_context>
chip_gen: v6e
topology: v6e:2x2x1
jax: 0.10.0
libtpu: 0.0.40
codegen_flags: <defaults>
</compile_context>

<pallas_src>
import functools
import numpy as np
import jax
import jax.numpy as jnp
from jax.experimental import pallas as pl
from jax.experimental.pallas import tpu as pltpu

PRIMITIVES = [
    "none",
    "max_pool_3x3",
    "avg_pool_3x3",
    "skip_connect",
    "sep_conv_3x3",
    "sep_conv_5x5",
    "dil_conv_3x3",
    "dil_conv_5x5",
]

_BN_EPS = 1e-5
_PADR = 8   # sublane-aligned gutter depth of the halo scratch (>= max vertical tap = 4)


# ------------------------------ fused kernel ------------------------------- #

def _mixed_op_kernel(w_ref, x_ref, vm_ref, hm_ref, ic_ref,
                     m_s3a, m_s3b, m_s5a, m_s5b, m_d3, m_d5,
                     o_ref, halo_ref, *, N, H, W, C, eps):
    R = N * H          # rows    (sublane axis): (n, h) flattened
    L = W * C          # columns (lane axis)   : (w, c) flattened
    f32 = jnp.float32

    x = x_ref[...]                               # (R, L) f32

    # Zero only the halo gutters (top/bottom _PADR rows).  Interior rows are always
    # overwritten by stage(); gutter reads are mask-multiplied, but stale VMEM could
    # hold NaN/Inf and 0 * NaN != 0, so the gutters must at least be finite.
    halo_ref[0:_PADR, :] = jnp.zeros((_PADR, L), f32)
    halo_ref[_PADR + R:2 * _PADR + R, :] = jnp.zeros((_PADR, L), f32)

    def stage(v):                                # park v in the halo scratch
        halo_ref[_PADR:_PADR + R, :] = v

    def row_load(d):                             # staged tile shifted by d image rows (unmasked)
        return halo_ref[_PADR + d:_PADR + d + R, :]

    def vmask(d):                                # (R,1) f32: 1.0 iff row (n,h) has 0 <= h+d < H
        j = d + _PADR
        return vm_ref[:, j:j + 1]

    def hmask(dj):                               # (1,L) f32: 1.0 iff lane (w,c) has 0 <= w+dj < W
        return hm_ref[0:1, :] if dj < 0 else hm_ref[1:2, :]

    def lane_shift(v, d):                        # out[r, l] = v[r, (l + d) mod L]
        if d % L == 0:
            return v
        return pltpu.roll(v, (-d) % L, axis=1)

    # Fused depthwise + pointwise conv: one (R,L)x(L,L) MXU matmul per vertical tap ki
    # against a banded block matrix carrying the horizontal taps, the horizontal zero
    # padding and the 1x1 channel mixing (built at trace time in the wrapper).
    def dwpw(v0, m_ref, K, dil, pad):
        acc = None
        for ki in range(K):
            d = ki * dil - pad
            src = v0 if d == 0 else row_load(d) * vmask(d)    # zero-filled vertical shift
            y = jnp.dot(src, m_ref[ki], preferred_element_type=f32)
            acc = y if acc is None else acc + y
        return acc

    # BatchNorm2d(affine=False), training mode: biased batch statistics per channel.
    def channel_total(s):                        # (1,L): sum over the W lane-groups of a channel
        t = s
        if W & (W - 1) == 0:                     # log2 rotate tree (W is a power of two)
            k = 1
            while k < W:
                t = t + pltpu.roll(t, k * C, axis=1)
                k *= 2
        else:                                    # fallback: serial rotate-sum
            for k in range(1, W):
                t = t + pltpu.roll(s, k * C, axis=1)
        return t

    def batchnorm(v, scale=None):
        inv_n = 1.0 / float(R * W)
        mean = channel_total(jnp.sum(v, axis=0, keepdims=True)) * inv_n
        d = v - mean
        var = channel_total(jnp.sum(d * d, axis=0, keepdims=True)) * inv_n
        inv_std = jax.lax.rsqrt(var + eps)
        if scale is not None:                    # fold the architecture weight into the BN scale
            inv_std = inv_std * scale
        return d * inv_std

    w_mp, w_ap, w_sk = w_ref[1], w_ref[2], w_ref[3]
    w_s3, w_s5, w_d3, w_d5 = w_ref[4], w_ref[5], w_ref[6], w_ref[7]
    # PRIMITIVES[0] == 'none' contributes w[0] * 0 and is dropped.

    # ---------------- pooling branches (separable 3x3) + skip_connect ---------------- #
    xm1 = lane_shift(x, -C)                      # value at w-1
    xp1 = lane_shift(x, C)                       # value at w+1
    hmax = jnp.maximum(
        jnp.maximum(jnp.where(hmask(-1) > 0, xm1, -jnp.inf), x),
        jnp.where(hmask(1) > 0, xp1, -jnp.inf))
    hsum = x + xm1 * hmask(-1) + xp1 * hmask(1)

    stage(hmax)                                  # vertical pass of max_pool_3x3 (pad = -inf)
    mp = jnp.maximum(
        jnp.maximum(jnp.where(vmask(-1) > 0, row_load(-1), -jnp.inf), hmax),
        jnp.where(vmask(1) > 0, row_load(1), -jnp.inf))

    stage(hsum)                                  # vertical pass of avg_pool_3x3
    ap = (hsum + row_load(-1) * vmask(-1) + row_load(1) * vmask(1)) * ic_ref[...]

    acc_a = w_mp * mp + w_sk * x                 # max_pool_3x3 + skip_connect (Identity)
    acc_b = w_ap * ap                            # avg_pool_3x3 (count_include_pad=False)

    # ---------------------- separable / dilated conv branches ----------------------- #
    x_relu = jnp.maximum(x, 0.0)                 # shared ReLU front of all conv primitives
    stage(x_relu)

    t_d3 = dwpw(x_relu, m_d3, 3, 2, 2)           # dil_conv_3x3: relu -> dw(3,dil2) -> pw -> BN
    acc_c = batchnorm(t_d3, w_d3)
    t_d5 = dwpw(x_relu, m_d5, 5, 2, 4)           # dil_conv_5x5
    acc_c = acc_c + batchnorm(t_d5, w_d5)

    t_s3 = dwpw(x_relu, m_s3a, 3, 1, 1)          # sep_conv stage 1: relu -> dw -> pw -> BN
    mid3 = jnp.maximum(batchnorm(t_s3), 0.0)
    t_s5 = dwpw(x_relu, m_s5a, 5, 1, 2)
    mid5 = jnp.maximum(batchnorm(t_s5), 0.0)

    stage(mid3)                                  # sep_conv_3x3 stage 2
    acc_d = batchnorm(dwpw(mid3, m_s3b, 3, 1, 1), w_s3)
    stage(mid5)                                  # sep_conv_5x5 stage 2
    acc_d = acc_d + batchnorm(dwpw(mid5, m_s5b, 5, 1, 2), w_s5)

    o_ref[...] = (acc_a + acc_b) + (acc_c + acc_d)


# ------------------ trace-time banded matrices for dw + pw ------------------ #

def _dwpw_mats(dwk, pw, dil, pad, W):
    """(K,K,C) depthwise + (Cin,Cout) pointwise weights -> (K, W*C, W*C) banded block
    matrices with M[ki, w_in*C+cin, w_out*C+cout] = dw[ki,kj,cin] * pw[cin,cout] for the
    unique kj with w_in == w_out + kj*dil - pad (horizontal zero padding folded in)."""
    K, _, C = dwk.shape
    wi = np.arange(W).reshape(1, W, 1)
    wo = np.arange(W).reshape(1, 1, W)
    kj = np.arange(K).reshape(K, 1, 1)
    sel = (wi == wo + kj * dil - pad).astype(np.float32)          # (K, W_in, W_out) const
    a = jnp.einsum('jab,ijc->iabc', jnp.asarray(sel), dwk)        # (K, W_in, W_out, C)
    m = jnp.einsum('iabc,cd->iacbd', a, pw)                       # (K, Win, Cin, Wout, Cout)
    return m.reshape(K, W * C, W * C)


# ------------------------------ forward wrapper ------------------------------ #

def _mixed_op_forward(params, x_nchw, weights):
    N, C, H, W = x_nchw.shape
    R, L = N * H, W * C
    assert R % 8 == 0 and L % 128 == 0, "need sublane/lane aligned (N*H, W*C) layout"

    # NCHW -> lane-dense (N*H, W*C) view (single transpose at the module boundary).
    x2d = jnp.transpose(x_nchw, (0, 2, 3, 1)).reshape(R, L).astype(jnp.float32)

    # Trace-time numpy constants (baked into the graph, no per-call XLA ops).
    h_pos = np.arange(R) % H
    w_pos = np.arange(L) // C
    vm = np.stack([((h_pos + d >= 0) & (h_pos + d < H)).astype(np.float32)
                   for d in range(-_PADR, _PADR + 1)], axis=1)            # (R, 2*_PADR+1)
    hm = np.stack([(w_pos - 1 >= 0).astype(np.float32),
                   (w_pos + 1 < W).astype(np.float32)], axis=0)           # (2, L)
    cnt = ((3.0 - (h_pos == 0) - (h_pos == H - 1))[:, None]
           * (3.0 - (w_pos == 0) - (w_pos == W - 1))[None, :])
    inv_cnt = (1.0 / cnt).astype(np.float32)                              # (R, L)

    p3, p5 = params["sep_conv_3x3"], params["sep_conv_5x5"]
    d3, d5 = params["dil_conv_3x3"], params["dil_conv_5x5"]
    mats = [
        _dwpw_mats(p3["dw1"], p3["pw1"], 1, 1, W),   # sep_conv_3x3 stage 1
        _dwpw_mats(p3["dw2"], p3["pw2"], 1, 1, W),   # sep_conv_3x3 stage 2
        _dwpw_mats(p5["dw1"], p5["pw1"], 1, 2, W),   # sep_conv_5x5 stage 1
        _dwpw_mats(p5["dw2"], p5["pw2"], 1, 2, W),   # sep_conv_5x5 stage 2
        _dwpw_mats(d3["dw"], d3["pw"], 2, 2, W),     # dil_conv_3x3
        _dwpw_mats(d5["dw"], d5["pw"], 2, 4, W),     # dil_conv_5x5
    ]

    vmem = pl.BlockSpec(memory_space=pltpu.MemorySpace.VMEM)
    smem = pl.BlockSpec(memory_space=pltpu.MemorySpace.SMEM)
    kern = functools.partial(_mixed_op_kernel, N=N, H=H, W=W, C=C, eps=_BN_EPS)

    y2d = pl.pallas_call(
        kern,
        out_shape=jax.ShapeDtypeStruct((R, L), jnp.float32),
        in_specs=[smem] + [vmem] * (4 + len(mats)),
        out_specs=vmem,
        scratch_shapes=[pltpu.VMEM((R + 2 * _PADR, L), jnp.float32)],
    )(weights.astype(jnp.float32), x2d, jnp.asarray(vm), jnp.asarray(hm),
      jnp.asarray(inv_cnt), *mats)

    return jnp.transpose(y2d.reshape(N, H, W, C), (0, 3, 1, 2))   # -> NCHW


_mixed_op_forward_jit = jax.jit(_mixed_op_forward)


# --------------------------------- MixedOp ---------------------------------- #

class MixedOp:
    """Pallas implementation of the DARTS MixedOp forward (stride=1)."""

    def __init__(self, C, stride, key):
        assert stride == 1, "only stride=1 implemented (skip_connect = Identity)"
        self.C = C
        keys = jax.random.split(key, 12)
        scale = 0.1

        def rnd(k, shape):
            return jax.random.normal(k, shape, jnp.float32) * scale

        # depthwise weights stored as (k, k, C); pointwise as (Cin, Cout)
        self.params = {
            "sep_conv_3x3": dict(dw1=rnd(keys[0], (3, 3, C)), pw1=rnd(keys[1], (C, C)),
                                 dw2=rnd(keys[2], (3, 3, C)), pw2=rnd(keys[3], (C, C))),
            "sep_conv_5x5": dict(dw1=rnd(keys[4], (5, 5, C)), pw1=rnd(keys[5], (C, C)),
                                 dw2=rnd(keys[6], (5, 5, C)), pw2=rnd(keys[7], (C, C))),
            "dil_conv_3x3": dict(dw=rnd(keys[8], (3, 3, C)), pw=rnd(keys[9], (C, C))),
            "dil_conv_5x5": dict(dw=rnd(keys[10], (5, 5, C)), pw=rnd(keys[11], (C, C))),
        }

    def __call__(self, x_nchw, weights):
        return _mixed_op_forward_jit(self.params, x_nchw, weights)


if __name__ == "__main__":
    key = jax.random.PRNGKey(0)
    kx, ka, kp = jax.random.split(key, 3)

    N, C, H, W = 2, 8, 16, 16                                    # W*C = 128 -> lane-dense
    x = jax.random.normal(kx, (N, C, H, W), jnp.float32)         # NCHW, like PyTorch
    alphas = jax.random.normal(ka, (len(PRIMITIVES),), jnp.float32)
    weights = jax.nn.softmax(alphas)                             # architecture weights

    mixed_op = MixedOp(C, stride=1, key=kp)
    out = jax.block_until_ready(mixed_op(x, weights))

    assert out.shape == (N, C, H, W)
    assert bool(jnp.all(jnp.isfinite(out)))
    print("KERNEL_OK")
</pallas_src>

<mosaic_0001>
module attributes {stable_mosaic.version = 11 : i64} {
  func.func @_mixed_op_kernel(%arg0: memref<8xf32, #tpu.memory_space<smem>>, %arg1: memref<32x128xf32, #tpu.memory_space<vmem>>, %arg2: memref<32x17xf32, #tpu.memory_space<vmem>>, %arg3: memref<2x128xf32, #tpu.memory_space<vmem>>, %arg4: memref<32x128xf32, #tpu.memory_space<vmem>>, %arg5: memref<3x128x128xf32, #tpu.memory_space<vmem>>, %arg6: memref<3x128x128xf32, #tpu.memory_space<vmem>>, %arg7: memref<5x128x128xf32, #tpu.memory_space<vmem>>, %arg8: memref<5x128x128xf32, #tpu.memory_space<vmem>>, %arg9: memref<3x128x128xf32, #tpu.memory_space<vmem>>, %arg10: memref<5x128x128xf32, #tpu.memory_space<vmem>>, %arg11: memref<32x128xf32, #tpu.memory_space<vmem>>, %arg12: memref<48x128xf32, #tpu.memory_space<vmem>>) attributes {dimension_semantics = [], scalar_prefetch = 0 : i64, scratch_operands = 1 : i64, tpu.core_type = #tpu.core_type<tc>} {
    %c0 = arith.constant 0 : index
    %c0_0 = arith.constant 0 : index
    %0 = vector.load %arg1[%c0, %c0_0] : memref<32x128xf32, #tpu.memory_space<vmem>>, vector<32x128xf32>
    %cst = arith.constant 0.000000e+00 : f32
    %1 = vector.broadcast %cst : f32 to vector<8x128xf32>
    %c0_1 = arith.constant 0 : index
    %c0_2 = arith.constant 0 : index
    %2 = vector.load %arg12[%c0_1, %c0_2] : memref<48x128xf32, #tpu.memory_space<vmem>>, vector<8x128xf32>
    tpu.vector_store %arg12[%c0_1, %c0_2], %1 {strides = array<i32>} : memref<48x128xf32, #tpu.memory_space<vmem>>, vector<8x128xf32>,
    %cst_3 = arith.constant 0.000000e+00 : f32
    %3 = vector.broadcast %cst_3 : f32 to vector<8x128xf32>
    %c40 = arith.constant 40 : index
    %c0_4 = arith.constant 0 : index
    %4 = vector.load %arg12[%c40, %c0_4] : memref<48x128xf32, #tpu.memory_space<vmem>>, vector<8x128xf32>
    tpu.vector_store %arg12[%c40, %c0_4], %3 {strides = array<i32>} : memref<48x128xf32, #tpu.memory_space<vmem>>, vector<8x128xf32>,
    %c1 = arith.constant 1 : index
    %5 = memref.load %arg0[%c1] : memref<8xf32, #tpu.memory_space<smem>>
    %c2 = arith.constant 2 : index
    %6 = memref.load %arg0[%c2] : memref<8xf32, #tpu.memory_space<smem>>
    %c3 = arith.constant 3 : index
    %7 = memref.load %arg0[%c3] : memref<8xf32, #tpu.memory_space<smem>>
    %c4 = arith.constant 4 : index
    %8 = memref.load %arg0[%c4] : memref<8xf32, #tpu.memory_space<smem>>
    %c5 = arith.constant 5 : index
    %9 = memref.load %arg0[%c5] : memref<8xf32, #tpu.memory_space<smem>>
    %c6 = arith.constant 6 : index
    %10 = memref.load %arg0[%c6] : memref<8xf32, #tpu.memory_space<smem>>
    %c7 = arith.constant 7 : index
    %11 = memref.load %arg0[%c7] : memref<8xf32, #tpu.memory_space<smem>>
    %c8_i32 = arith.constant 8 : i32
    %12 = tpu.dynamic_rotate %0 by %c8_i32 dim 1 : vector<32x128xf32>, i32 -> vector<32x128xf32>
    %c120_i32 = arith.constant 120 : i32
    %13 = tpu.dynamic_rotate %0 by %c120_i32 dim 1 : vector<32x128xf32>, i32 -> vector<32x128xf32>
    %c0_5 = arith.constant 0 : index
    %c0_6 = arith.constant 0 : index
    %14 = vector.load %arg3[%c0_5, %c0_6] : memref<2x128xf32, #tpu.memory_space<vmem>>, vector<1x128xf32>
    %cst_7 = arith.constant 0.000000e+00 : f32
    %15 = vector.broadcast %cst_7 : f32 to vector<1x128xf32>
    %16 = arith.cmpf ogt, %14, %15 : vector<1x128xf32>
    %cst_8 = arith.constant 0xFF800000 : f32
    %17 = vector.shape_cast %16 : vector<1x128xi1> to vector<1x128xi1>
    %18 = vector.broadcast %17 : vector<1x128xi1> to vector<32x128xi1>
    %19 = vector.broadcast %cst_8 : f32 to vector<32x128xf32>
    %20 = arith.select %18, %12, %19 : vector<32x128xi1>, vector<32x128xf32>
    %21 = arith.maximumf %20, %0 : vector<32x128xf32>
    %c1_9 = arith.constant 1 : index
    %c0_10 = arith.constant 0 : index
    %22 = vector.load %arg3[%c1_9, %c0_10] : memref<2x128xf32, #tpu.memory_space<vmem>>, vector<1x128xf32>
    %cst_11 = arith.constant 0.000000e+00 : f32
    %23 = vector.broadcast %cst_11 : f32 to vector<1x128xf32>
    %24 = arith.cmpf ogt, %22, %23 : vector<1x128xf32>
    %cst_12 = arith.constant 0xFF800000 : f32
    %25 = vector.shape_cast %24 : vector<1x128xi1> to vector<1x128xi1>
    %26 = vector.broadcast %25 : vector<1x128xi1> to vector<32x128xi1>
    %27 = vector.broadcast %cst_12 : f32 to vector<32x128xf32>
    %28 = arith.select %26, %13, %27 : vector<32x128xi1>, vector<32x128xf32>
    %29 = arith.maximumf %21, %28 : vector<32x128xf32>
    %c0_13 = arith.constant 0 : index
    %c0_14 = arith.constant 0 : index
    %30 = vector.load %arg3[%c0_13, %c0_14] : memref<2x128xf32, #tpu.memory_space<vmem>>, vector<1x128xf32>
    %31 = vector.broadcast %30 : vector<1x128xf32> to vector<32x128xf32>
    %32 = arith.mulf %12, %31 : vector<32x128xf32>
    %33 = arith.addf %0, %32 : vector<32x128xf32>
    %c1_15 = arith.constant 1 : index
    %c0_16 = arith.constant 0 : index
    %34 = vector.load %arg3[%c1_15, %c0_16] : memref<2x128xf32, #tpu.memory_space<vmem>>, vector<1x128xf32>
    %35 = vector.broadcast %34 : vector<1x128xf32> to vector<32x128xf32>
    %36 = arith.mulf %13, %35 : vector<32x128xf32>
    %37 = arith.addf %33, %36 : vector<32x128xf32>
    %c8 = arith.constant 8 : index
    %c0_17 = arith.constant 0 : index
    %38 = vector.load %arg12[%c8, %c0_17] : memref<48x128xf32, #tpu.memory_space<vmem>>, vector<32x128xf32>
    tpu.vector_store %arg12[%c8, %c0_17], %29 {strides = array<i32>} : memref<48x128xf32, #tpu.memory_space<vmem>>, vector<32x128xf32>,
    %c0_18 = arith.constant 0 : index
    %c7_19 = arith.constant 7 : index
    %39 = vector.load %arg2[%c0_18, %c7_19] : memref<32x17xf32, #tpu.memory_space<vmem>>, vector<32x1xf32>
    %cst_20 = arith.constant 0.000000e+00 : f32
    %40 = vector.broadcast %cst_20 : f32 to vector<32x1xf32>
    %41 = arith.cmpf ogt, %39, %40 : vector<32x1xf32>
    %c7_21 = arith.constant 7 : index
    %c0_22 = arith.constant 0 : index
    %42 = vector.load %arg12[%c7_21, %c0_22] : memref<48x128xf32, #tpu.memory_space<vmem>>, vector<32x128xf32>
    %cst_23 = arith.constant 0xFF800000 : f32
    %43 = vector.shape_cast %41 : vector<32x1xi1> to vector<32x1xi1>
    %44 = vector.broadcast %43 : vector<32x1xi1> to vector<32x128xi1>
    %45 = vector.broadcast %cst_23 : f32 to vector<32x128xf32>
    %46 = arith.select %44, %42, %45 : vector<32x128xi1>, vector<32x128xf32>
    %47 = arith.maximumf %46, %29 : vector<32x128xf32>
    %c0_24 = arith.constant 0 : index
    %c9 = arith.constant 9 : index
    %48 = vector.load %arg2[%c0_24, %c9] : memref<32x17xf32, #tpu.memory_space<vmem>>, vector<32x1xf32>
    %cst_25 = arith.constant 0.000000e+00 : f32
    %49 = vector.broadcast %cst_25 : f32 to vector<32x1xf32>
    %50 = arith.cmpf ogt, %48, %49 : vector<32x1xf32>
    %c9_26 = arith.constant 9 : index
    %c0_27 = arith.constant 0 : index
    %51 = vector.load %arg12[%c9_26, %c0_27] : memref<48x128xf32, #tpu.memory_space<vmem>>, vector<32x128xf32>
    %cst_28 = arith.constant 0xFF800000 : f32
    %52 = vector.shape_cast %50 : vector<32x1xi1> to vector<32x1xi1>
    %53 = vector.broadcast %52 : vector<32x1xi1> to vector<32x128xi1>
    %54 = vector.broadcast %cst_28 : f32 to vector<32x128xf32>
    %55 = arith.select %53, %51, %54 : vector<32x128xi1>, vector<32x128xf32>
    %56 = arith.maximumf %47, %55 : vector<32x128xf32>
    %c8_29 = arith.constant 8 : index
    %c0_30 = arith.constant 0 : index
    %57 = vector.load %arg12[%c8_29, %c0_30] : memref<48x128xf32, #tpu.memory_space<vmem>>, vector<32x128xf32>
    tpu.vector_store %arg12[%c8_29, %c0_30], %37 {strides = array<i32>} : memref<48x128xf32, #tpu.memory_space<vmem>>, vector<32x128xf32>,
    %c7_31 = arith.constant 7 : index
    %c0_32 = arith.constant 0 : index
    %58 = vector.load %arg12[%c7_31, %c0_32] : memref<48x128xf32, #tpu.memory_space<vmem>>, vector<32x128xf32>
    %c0_33 = arith.constant 0 : index
    %c7_34 = arith.constant 7 : index
    %59 = vector.load %arg2[%c0_33, %c7_34] : memref<32x17xf32, #tpu.memory_space<vmem>>, vector<32x1xf32>
    %60 = vector.broadcast %59 : vector<32x1xf32> to vector<32x128xf32>
    %61 = arith.mulf %58, %60 : vector<32x128xf32>
    %62 = arith.addf %37, %61 : vector<32x128xf32>
    %c9_35 = arith.constant 9 : index
    %c0_36 = arith.constant 0 : index
    %63 = vector.load %arg12[%c9_35, %c0_36] : memref<48x128xf32, #tpu.memory_space<vmem>>, vector<32x128xf32>
    %c0_37 = arith.constant 0 : index
    %c9_38 = arith.constant 9 : index
    %64 = vector.load %arg2[%c0_37, %c9_38] : memref<32x17xf32, #tpu.memory_space<vmem>>, vector<32x1xf32>
    %65 = vector.broadcast %64 : vector<32x1xf32> to vector<32x128xf32>
    %66 = arith.mulf %63, %65 : vector<32x128xf32>
    %67 = arith.addf %62, %66 : vector<32x128xf32>
    %c0_39 = arith.constant 0 : index
    %c0_40 = arith.constant 0 : index
    %68 = vector.load %arg4[%c0_39, %c0_40] : memref<32x128xf32, #tpu.memory_space<vmem>>, vector<32x128xf32>
    %69 = arith.mulf %67, %68 : vector<32x128xf32>
    %70 = vector.broadcast %5 : f32 to vector<32x128xf32>
    %71 = arith.mulf %70, %56 : vector<32x128xf32>
    %72 = vector.broadcast %7 : f32 to vector<32x128xf32>
    %73 = arith.mulf %72, %0 : vector<32x128xf32>
    %74 = arith.addf %71, %73 : vector<32x128xf32>
    %75 = vector.broadcast %6 : f32 to vector<32x128xf32>
    %76 = arith.mulf %75, %69 : vector<32x128xf32>
    %cst_41 = arith.constant 0.000000e+00 : f32
    %77 = vector.broadcast %cst_41 : f32 to vector<32x128xf32>
    %78 = arith.maximumf %0, %77 : vector<32x128xf32>
    %c8_42 = arith.constant 8 : index
    %c0_43 = arith.constant 0 : index
    %79 = vector.load %arg12[%c8_42, %c0_43] : memref<48x128xf32, #tpu.memory_space<vmem>>, vector<32x128xf32>
    tpu.vector_store %arg12[%c8_42, %c0_43], %78 {strides = array<i32>} : memref<48x128xf32, #tpu.memory_space<vmem>>, vector<32x128xf32>,
    %c6_44 = arith.constant 6 : index
    %c0_45 = arith.constant 0 : index
    %80 = vector.load %arg12[%c6_44, %c0_45] : memref<48x128xf32, #tpu.memory_space<vmem>>, vector<32x128xf32>
    %c0_46 = arith.constant 0 : index
    %c6_47 = arith.constant 6 : index
    %81 = vector.load %arg2[%c0_46, %c6_47] : memref<32x17xf32, #tpu.memory_space<vmem>>, vector<32x1xf32>
    %82 = vector.broadcast %81 : vector<32x1xf32> to vector<32x128xf32>
    %83 = arith.mulf %80, %82 : vector<32x128xf32>
    %c0_48 = arith.constant 0 : index
    %c0_49 = arith.constant 0 : index
    %c0_50 = arith.constant 0 : index
    %84 = vector.load %arg9[%c0_48, %c0_49, %c0_50] : memref<3x128x128xf32, #tpu.memory_space<vmem>>, vector<1x128x128xf32>
    %85 = vector.shape_cast %84 : vector<1x128x128xf32> to vector<128x128xf32>
    %cst_51 = arith.constant dense<0.000000e+00> : vector<32x128xf32>
    %86 = tpu.matmul %83, %85, %cst_51 {dimension_numbers = #tpu.dot_dimension_numbers<[1], [0], [0], [1], [0, 0, 1, 1], [], []>} : vector<32x128xf32>, vector<128x128xf32>, vector<32x128xf32> -> vector<32x128xf32>
    %c1_52 = arith.constant 1 : index
    %c0_53 = arith.constant 0 : index
    %c0_54 = arith.constant 0 : index
    %87 = vector.load %arg9[%c1_52, %c0_53, %c0_54] : memref<3x128x128xf32, #tpu.memory_space<vmem>>, vector<1x128x128xf32>
    %88 = vector.shape_cast %87 : vector<1x128x128xf32> to vector<128x128xf32>
    %cst_55 = arith.constant dense<0.000000e+00> : vector<32x128xf32>
    %89 = tpu.matmul %78, %88, %cst_55 {dimension_numbers = #tpu.dot_dimension_numbers<[1], [0], [0], [1], [0, 0, 1, 1], [], []>} : vector<32x128xf32>, vector<128x128xf32>, vector<32x128xf32> -> vector<32x128xf32>
    %90 = arith.addf %86, %89 : vector<32x128xf32>
    %c10 = arith.constant 10 : index
    %c0_56 = arith.constant 0 : index
    %91 = vector.load %arg12[%c10, %c0_56] : memref<48x128xf32, #tpu.memory_space<vmem>>, vector<32x128xf32>
    %c0_57 = arith.constant 0 : index
    %c10_58 = arith.constant 10 : index
    %92 = vector.load %arg2[%c0_57, %c10_58] : memref<32x17xf32, #tpu.memory_space<vmem>>, vector<32x1xf32>
    %93 = vector.broadcast %92 : vector<32x1xf32> to vector<32x128xf32>
    %94 = arith.mulf %91, %93 : vector<32x128xf32>
    %c2_59 = arith.constant 2 : index
    %c0_60 = arith.constant 0 : index
    %c0_61 = arith.constant 0 : index
    %95 = vector.load %arg9[%c2_59, %c0_60, %c0_61] : memref<3x128x128xf32, #tpu.memory_space<vmem>>, vector<1x128x128xf32>
    %96 = vector.shape_cast %95 : vector<1x128x128xf32> to vector<128x128xf32>
    %cst_62 = arith.constant dense<0.000000e+00> : vector<32x128xf32>
    %97 = tpu.matmul %94, %96, %cst_62 {dimension_numbers = #tpu.dot_dimension_numbers<[1], [0], [0], [1], [0, 0, 1, 1], [], []>} : vector<32x128xf32>, vector<128x128xf32>, vector<32x128xf32> -> vector<32x128xf32>
    %98 = arith.addf %90, %97 : vector<32x128xf32>
    %cst_63 = arith.constant dense<0.000000e+00> : vector<128xf32>
    %99 = vector.multi_reduction <add>, %98, %cst_63 [0] : vector<32x128xf32> to vector<128xf32>
    %100 = vector.shape_cast %99 : vector<128xf32> to vector<1x128xf32>
    %c8_i32_64 = arith.constant 8 : i32
    %101 = tpu.dynamic_rotate %100 by %c8_i32_64 dim 1 : vector<1x128xf32>, i32 -> vector<1x128xf32>
    %102 = arith.addf %100, %101 : vector<1x128xf32>
    %c16_i32 = arith.constant 16 : i32
    %103 = tpu.dynamic_rotate %102 by %c16_i32 dim 1 : vector<1x128xf32>, i32 -> vector<1x128xf32>
    %104 = arith.addf %102, %103 : vector<1x128xf32>
    %c32_i32 = arith.constant 32 : i32
    %105 = tpu.dynamic_rotate %104 by %c32_i32 dim 1 : vector<1x128xf32>, i32 -> vector<1x128xf32>
    %106 = arith.addf %104, %105 : vector<1x128xf32>
    %c64_i32 = arith.constant 64 : i32
    %107 = tpu.dynamic_rotate %106 by %c64_i32 dim 1 : vector<1x128xf32>, i32 -> vector<1x128xf32>
    %108 = arith.addf %106, %107 : vector<1x128xf32>
    %cst_65 = arith.constant 0.001953125 : f32
    %109 = vector.broadcast %cst_65 : f32 to vector<1x128xf32>
    %110 = arith.mulf %108, %109 : vector<1x128xf32>
    %111 = vector.broadcast %110 : vector<1x128xf32> to vector<32x128xf32>
    %112 = arith.subf %98, %111 : vector<32x128xf32>
    %113 = arith.mulf %112, %112 : vector<32x128xf32>
    %cst_66 = arith.constant dense<0.000000e+00> : vector<128xf32>
    %114 = vector.multi_reduction <add>, %113, %cst_66 [0] : vector<32x128xf32> to vector<128xf32>
    %115 = vector.shape_cast %114 : vector<128xf32> to vector<1x128xf32>
    %c8_i32_67 = arith.constant 8 : i32
    %116 = tpu.dynamic_rotate %115 by %c8_i32_67 dim 1 : vector<1x128xf32>, i32 -> vector<1x128xf32>
    %117 = arith.addf %115, %116 : vector<1x128xf32>
    %c16_i32_68 = arith.constant 16 : i32
    %118 = tpu.dynamic_rotate %117 by %c16_i32_68 dim 1 : vector<1x128xf32>, i32 -> vector<1x128xf32>
    %119 = arith.addf %117, %118 : vector<1x128xf32>
    %c32_i32_69 = arith.constant 32 : i32
    %120 = tpu.dynamic_rotate %119 by %c32_i32_69 dim 1 : vector<1x128xf32>, i32 -> vector<1x128xf32>
    %121 = arith.addf %119, %120 : vector<1x128xf32>
    %c64_i32_70 = arith.constant 64 : i32
    %122 = tpu.dynamic_rotate %121 by %c64_i32_70 dim 1 : vector<1x128xf32>, i32 -> vector<1x128xf32>
    %123 = arith.addf %121, %122 : vector<1x128xf32>
    %cst_71 = arith.constant 0.001953125 : f32
    %124 = vector.broadcast %cst_71 : f32 to vector<1x128xf32>
    %125 = arith.mulf %123, %124 : vector<1x128xf32>
    %cst_72 = arith.constant 9.99999974E-6 : f32
    %126 = vector.broadcast %cst_72 : f32 to vector<1x128xf32>
    %127 = arith.addf %125, %126 : vector<1x128xf32>
    %128 = math.rsqrt %127 : vector<1x128xf32>
    %129 = vector.broadcast %10 : f32 to vector<1x128xf32>
    %130 = arith.mulf %128, %129 : vector<1x128xf32>
    %131 = vector.broadcast %130 : vector<1x128xf32> to vector<32x128xf32>
    %132 = arith.mulf %112, %131 : vector<32x128xf32>
    %c4_73 = arith.constant 4 : index
    %c0_74 = arith.constant 0 : index
    %133 = vector.load %arg12[%c4_73, %c0_74] : memref<48x128xf32, #tpu.memory_space<vmem>>, vector<32x128xf32>
    %c0_75 = arith.constant 0 : index
    %c4_76 = arith.constant 4 : index
    %134 = vector.load %arg2[%c0_75, %c4_76] : memref<32x17xf32, #tpu.memory_space<vmem>>, vector<32x1xf32>
    %135 = vector.broadcast %134 : vector<32x1xf32> to vector<32x128xf32>
    %136 = arith.mulf %133, %135 : vector<32x128xf32>
    %c0_77 = arith.constant 0 : index
    %c0_78 = arith.constant 0 : index
    %c0_79 = arith.constant 0 : index
    %137 = vector.load %arg10[%c0_77, %c0_78, %c0_79] : memref<5x128x128xf32, #tpu.memory_space<vmem>>, vector<1x128x128xf32>
    %138 = vector.shape_cast %137 : vector<1x128x128xf32> to vector<128x128xf32>
    %cst_80 = arith.constant dense<0.000000e+00> : vector<32x128xf32>
    %139 = tpu.matmul %136, %138, %cst_80 {dimension_numbers = #tpu.dot_dimension_numbers<[1], [0], [0], [1], [0, 0, 1, 1], [], []>} : vector<32x128xf32>, vector<128x128xf32>, vector<32x128xf32> -> vector<32x128xf32>
    %c6_81 = arith.constant 6 : index
    %c0_82 = arith.constant 0 : index
    %140 = vector.load %arg12[%c6_81, %c0_82] : memref<48x128xf32, #tpu.memory_space<vmem>>, vector<32x128xf32>
    %c0_83 = arith.constant 0 : index
    %c6_84 = arith.constant 6 : index
    %141 = vector.load %arg2[%c0_83, %c6_84] : memref<32x17xf32, #tpu.memory_space<vmem>>, vector<32x1xf32>
    %142 = vector.broadcast %141 : vector<32x1xf32> to vector<32x128xf32>
    %143 = arith.mulf %140, %142 : vector<32x128xf32>
    %c1_85 = arith.constant 1 : index
    %c0_86 = arith.constant 0 : index
    %c0_87 = arith.constant 0 : index
    %144 = vector.load %arg10[%c1_85, %c0_86, %c0_87] : memref<5x128x128xf32, #tpu.memory_space<vmem>>, vector<1x128x128xf32>
    %145 = vector.shape_cast %144 : vector<1x128x128xf32> to vector<128x128xf32>
    %cst_88 = arith.constant dense<0.000000e+00> : vector<32x128xf32>
    %146 = tpu.matmul %143, %145, %cst_88 {dimension_numbers = #tpu.dot_dimension_numbers<[1], [0], [0], [1], [0, 0, 1, 1], [], []>} : vector<32x128xf32>, vector<128x128xf32>, vector<32x128xf32> -> vector<32x128xf32>
    %147 = arith.addf %139, %146 : vector<32x128xf32>
    %c2_89 = arith.constant 2 : index
    %c0_90 = arith.constant 0 : index
    %c0_91 = arith.constant 0 : index
    %148 = vector.load %arg10[%c2_89, %c0_90, %c0_91] : memref<5x128x128xf32, #tpu.memory_space<vmem>>, vector<1x128x128xf32>
    %149 = vector.shape_cast %148 : vector<1x128x128xf32> to vector<128x128xf32>
    %cst_92 = arith.constant dense<0.000000e+00> : vector<32x128xf32>
    %150 = tpu.matmul %78, %149, %cst_92 {dimension_numbers = #tpu.dot_dimension_numbers<[1], [0], [0], [1], [0, 0, 1, 1], [], []>} : vector<32x128xf32>, vector<128x128xf32>, vector<32x128xf32> -> vector<32x128xf32>
    %151 = arith.addf %147, %150 : vector<32x128xf32>
    %c10_93 = arith.constant 10 : index
    %c0_94 = arith.constant 0 : index
    %152 = vector.load %arg12[%c10_93, %c0_94] : memref<48x128xf32, #tpu.memory_space<vmem>>, vector<32x128xf32>
    %c0_95 = arith.constant 0 : index
    %c10_96 = arith.constant 10 : index
    %153 = vector.load %arg2[%c0_95, %c10_96] : memref<32x17xf32, #tpu.memory_space<vmem>>, vector<32x1xf32>
    %154 = vector.broadcast %153 : vector<32x1xf32> to vector<32x128xf32>
    %155 = arith.mulf %152, %154 : vector<32x128xf32>
    %c3_97 = arith.constant 3 : index
    %c0_98 = arith.constant 0 : index
    %c0_99 = arith.constant 0 : index
    %156 = vector.load %arg10[%c3_97, %c0_98, %c0_99] : memref<5x128x128xf32, #tpu.memory_space<vmem>>, vector<1x128x128xf32>
    %157 = vector.shape_cast %156 : vector<1x128x128xf32> to vector<128x128xf32>
    %cst_100 = arith.constant dense<0.000000e+00> : vector<32x128xf32>
    %158 = tpu.matmul %155, %157, %cst_100 {dimension_numbers = #tpu.dot_dimension_numbers<[1], [0], [0], [1], [0, 0, 1, 1], [], []>} : vector<32x128xf32>, vector<128x128xf32>, vector<32x128xf32> -> vector<32x128xf32>
    %159 = arith.addf %151, %158 : vector<32x128xf32>
    %c12 = arith.constant 12 : index
    %c0_101 = arith.constant 0 : index
    %160 = vector.load %arg12[%c12, %c0_101] : memref<48x128xf32, #tpu.memory_space<vmem>>, vector<32x128xf32>
    %c0_102 = arith.constant 0 : index
    %c12_103 = arith.constant 12 : index
    %161 = vector.load %arg2[%c0_102, %c12_103] : memref<32x17xf32, #tpu.memory_space<vmem>>, vector<32x1xf32>
    %162 = vector.broadcast %161 : vector<32x1xf32> to vector<32x128xf32>
    %163 = arith.mulf %160, %162 : vector<32x128xf32>
    %c4_104 = arith.constant 4 : index
    %c0_105 = arith.constant 0 : index
    %c0_106 = arith.constant 0 : index
    %164 = vector.load %arg10[%c4_104, %c0_105, %c0_106] : memref<5x128x128xf32, #tpu.memory_space<vmem>>, vector<1x128x128xf32>
    %165 = vector.shape_cast %164 : vector<1x128x128xf32> to vector<128x128xf32>
    %cst_107 = arith.constant dense<0.000000e+00> : vector<32x128xf32>
    %166 = tpu.matmul %163, %165, %cst_107 {dimension_numbers = #tpu.dot_dimension_numbers<[1], [0], [0], [1], [0, 0, 1, 1], [], []>} : vector<32x128xf32>, vector<128x128xf32>, vector<32x128xf32> -> vector<32x128xf32>
    %167 = arith.addf %159, %166 : vector<32x128xf32>
    %cst_108 = arith.constant dense<0.000000e+00> : vector<128xf32>
    %168 = vector.multi_reduction <add>, %167, %cst_108 [0] : vector<32x128xf32> to vector<128xf32>
    %169 = vector.shape_cast %168 : vector<128xf32> to vector<1x128xf32>
    %c8_i32_109 = arith.constant 8 : i32
    %170 = tpu.dynamic_rotate %169 by %c8_i32_109 dim 1 : vector<1x128xf32>, i32 -> vector<1x128xf32>
    %171 = arith.addf %169, %170 : vector<1x128xf32>
    %c16_i32_110 = arith.constant 16 : i32
    %172 = tpu.dynamic_rotate %171 by %c16_i32_110 dim 1 : vector<1x128xf32>, i32 -> vector<1x128xf32>
    %173 = arith.addf %171, %172 : vector<1x128xf32>
    %c32_i32_111 = arith.constant 32 : i32
    %174 = tpu.dynamic_rotate %173 by %c32_i32_111 dim 1 : vector<1x128xf32>, i32 -> vector<1x128xf32>
    %175 = arith.addf %173, %174 : vector<1x128xf32>
    %c64_i32_112 = arith.constant 64 : i32
    %176 = tpu.dynamic_rotate %175 by %c64_i32_112 dim 1 : vector<1x128xf32>, i32 -> vector<1x128xf32>
    %177 = arith.addf %175, %176 : vector<1x128xf32>
    %cst_113 = arith.constant 0.001953125 : f32
    %178 = vector.broadcast %cst_113 : f32 to vector<1x128xf32>
    %179 = arith.mulf %177, %178 : vector<1x128xf32>
    %180 = vector.broadcast %179 : vector<1x128xf32> to vector<32x128xf32>
    %181 = arith.subf %167, %180 : vector<32x128xf32>
    %182 = arith.mulf %181, %181 : vector<32x128xf32>
    %cst_114 = arith.constant dense<0.000000e+00> : vector<128xf32>
    %183 = vector.multi_reduction <add>, %182, %cst_114 [0] : vector<32x128xf32> to vector<128xf32>
    %184 = vector.shape_cast %183 : vector<128xf32> to vector<1x128xf32>
    %c8_i32_115 = arith.constant 8 : i32
    %185 = tpu.dynamic_rotate %184 by %c8_i32_115 dim 1 : vector<1x128xf32>, i32 -> vector<1x128xf32>
    %186 = arith.addf %184, %185 : vector<1x128xf32>
    %c16_i32_116 = arith.constant 16 : i32
    %187 = tpu.dynamic_rotate %186 by %c16_i32_116 dim 1 : vector<1x128xf32>, i32 -> vector<1x128xf32>
    %188 = arith.addf %186, %187 : vector<1x128xf32>
    %c32_i32_117 = arith.constant 32 : i32
    %189 = tpu.dynamic_rotate %188 by %c32_i32_117 dim 1 : vector<1x128xf32>, i32 -> vector<1x128xf32>
    %190 = arith.addf %188, %189 : vector<1x128xf32>
    %c64_i32_118 = arith.constant 64 : i32
    %191 = tpu.dynamic_rotate %190 by %c64_i32_118 dim 1 : vector<1x128xf32>, i32 -> vector<1x128xf32>
    %192 = arith.addf %190, %191 : vector<1x128xf32>
    %cst_119 = arith.constant 0.001953125 : f32
    %193 = vector.broadcast %cst_119 : f32 to vector<1x128xf32>
    %194 = arith.mulf %192, %193 : vector<1x128xf32>
    %cst_120 = arith.constant 9.99999974E-6 : f32
    %195 = vector.broadcast %cst_120 : f32 to vector<1x128xf32>
    %196 = arith.addf %194, %195 : vector<1x128xf32>
    %197 = math.rsqrt %196 : vector<1x128xf32>
    %198 = vector.broadcast %11 : f32 to vector<1x128xf32>
    %199 = arith.mulf %197, %198 : vector<1x128xf32>
    %200 = vector.broadcast %199 : vector<1x128xf32> to vector<32x128xf32>
    %201 = arith.mulf %181, %200 : vector<32x128xf32>
    %202 = arith.addf %132, %201 : vector<32x128xf32>
    %c7_121 = arith.constant 7 : index
    %c0_122 = arith.constant 0 : index
    %203 = vector.load %arg12[%c7_121, %c0_122] : memref<48x128xf32, #tpu.memory_space<vmem>>, vector<32x128xf32>
    %c0_123 = arith.constant 0 : index
    %c7_124 = arith.constant 7 : index
    %204 = vector.load %arg2[%c0_123, %c7_124] : memref<32x17xf32, #tpu.memory_space<vmem>>, vector<32x1xf32>
    %205 = vector.broadcast %204 : vector<32x1xf32> to vector<32x128xf32>
    %206 = arith.mulf %203, %205 : vector<32x128xf32>
    %c0_125 = arith.constant 0 : index
    %c0_126 = arith.constant 0 : index
    %c0_127 = arith.constant 0 : index
    %207 = vector.load %arg5[%c0_125, %c0_126, %c0_127] : memref<3x128x128xf32, #tpu.memory_space<vmem>>, vector<1x128x128xf32>
    %208 = vector.shape_cast %207 : vector<1x128x128xf32> to vector<128x128xf32>
    %cst_128 = arith.constant dense<0.000000e+00> : vector<32x128xf32>
    %209 = tpu.matmul %206, %208, %cst_128 {dimension_numbers = #tpu.dot_dimension_numbers<[1], [0], [0], [1], [0, 0, 1, 1], [], []>} : vector<32x128xf32>, vector<128x128xf32>, vector<32x128xf32> -> vector<32x128xf32>
    %c1_129 = arith.constant 1 : index
    %c0_130 = arith.constant 0 : index
    %c0_131 = arith.constant 0 : index
    %210 = vector.load %arg5[%c1_129, %c0_130, %c0_131] : memref<3x128x128xf32, #tpu.memory_space<vmem>>, vector<1x128x128xf32>
    %211 = vector.shape_cast %210 : vector<1x128x128xf32> to vector<128x128xf32>
    %cst_132 = arith.constant dense<0.000000e+00> : vector<32x128xf32>
    %212 = tpu.matmul %78, %211, %cst_132 {dimension_numbers = #tpu.dot_dimension_numbers<[1], [0], [0], [1], [0, 0, 1, 1], [], []>} : vector<32x128xf32>, vector<128x128xf32>, vector<32x128xf32> -> vector<32x128xf32>
    %213 = arith.addf %209, %212 : vector<32x128xf32>
    %c9_133 = arith.constant 9 : index
    %c0_134 = arith.constant 0 : index
    %214 = vector.load %arg12[%c9_133, %c0_134] : memref<48x128xf32, #tpu.memory_space<vmem>>, vector<32x128xf32>
    %c0_135 = arith.constant 0 : index
    %c9_136 = arith.constant 9 : index
    %215 = vector.load %arg2[%c0_135, %c9_136] : memref<32x17xf32, #tpu.memory_space<vmem>>, vector<32x1xf32>
    %216 = vector.broadcast %215 : vector<32x1xf32> to vector<32x128xf32>
    %217 = arith.mulf %214, %216 : vector<32x128xf32>
    %c2_137 = arith.constant 2 : index
    %c0_138 = arith.constant 0 : index
    %c0_139 = arith.constant 0 : index
    %218 = vector.load %arg5[%c2_137, %c0_138, %c0_139] : memref<3x128x128xf32, #tpu.memory_space<vmem>>, vector<1x128x128xf32>
    %219 = vector.shape_cast %218 : vector<1x128x128xf32> to vector<128x128xf32>
    %cst_140 = arith.constant dense<0.000000e+00> : vector<32x128xf32>
    %220 = tpu.matmul %217, %219, %cst_140 {dimension_numbers = #tpu.dot_dimension_numbers<[1], [0], [0], [1], [0, 0, 1, 1], [], []>} : vector<32x128xf32>, vector<128x128xf32>, vector<32x128xf32> -> vector<32x128xf32>
    %221 = arith.addf %213, %220 : vector<32x128xf32>
    %cst_141 = arith.constant dense<0.000000e+00> : vector<128xf32>
    %222 = vector.multi_reduction <add>, %221, %cst_141 [0] : vector<32x128xf32> to vector<128xf32>
    %223 = vector.shape_cast %222 : vector<128xf32> to vector<1x128xf32>
    %c8_i32_142 = arith.constant 8 : i32
    %224 = tpu.dynamic_rotate %223 by %c8_i32_142 dim 1 : vector<1x128xf32>, i32 -> vector<1x128xf32>
    %225 = arith.addf %223, %224 : vector<1x128xf32>
    %c16_i32_143 = arith.constant 16 : i32
    %226 = tpu.dynamic_rotate %225 by %c16_i32_143 dim 1 : vector<1x128xf32>, i32 -> vector<1x128xf32>
    %227 = arith.addf %225, %226 : vector<1x128xf32>
    %c32_i32_144 = arith.constant 32 : i32
    %228 = tpu.dynamic_rotate %227 by %c32_i32_144 dim 1 : vector<1x128xf32>, i32 -> vector<1x128xf32>
    %229 = arith.addf %227, %228 : vector<1x128xf32>
    %c64_i32_145 = arith.constant 64 : i32
    %230 = tpu.dynamic_rotate %229 by %c64_i32_145 dim 1 : vector<1x128xf32>, i32 -> vector<1x128xf32>
    %231 = arith.addf %229, %230 : vector<1x128xf32>
    %cst_146 = arith.constant 0.001953125 : f32
    %232 = vector.broadcast %cst_146 : f32 to vector<1x128xf32>
    %233 = arith.mulf %231, %232 : vector<1x128xf32>
    %234 = vector.broadcast %233 : vector<1x128xf32> to vector<32x128xf32>
    %235 = arith.subf %221, %234 : vector<32x128xf32>
    %236 = arith.mulf %235, %235 : vector<32x128xf32>
    %cst_147 = arith.constant dense<0.000000e+00> : vector<128xf32>
    %237 = vector.multi_reduction <add>, %236, %cst_147 [0] : vector<32x128xf32> to vector<128xf32>
    %238 = vector.shape_cast %237 : vector<128xf32> to vector<1x128xf32>
    %c8_i32_148 = arith.constant 8 : i32
    %239 = tpu.dynamic_rotate %238 by %c8_i32_148 dim 1 : vector<1x128xf32>, i32 -> vector<1x128xf32>
    %240 = arith.addf %238, %239 : vector<1x128xf32>
    %c16_i32_149 = arith.constant 16 : i32
    %241 = tpu.dynamic_rotate %240 by %c16_i32_149 dim 1 : vector<1x128xf32>, i32 -> vector<1x128xf32>
    %242 = arith.addf %240, %241 : vector<1x128xf32>
    %c32_i32_150 = arith.constant 32 : i32
    %243 = tpu.dynamic_rotate %242 by %c32_i32_150 dim 1 : vector<1x128xf32>, i32 -> vector<1x128xf32>
    %244 = arith.addf %242, %243 : vector<1x128xf32>
    %c64_i32_151 = arith.constant 64 : i32
    %245 = tpu.dynamic_rotate %244 by %c64_i32_151 dim 1 : vector<1x128xf32>, i32 -> vector<1x128xf32>
    %246 = arith.addf %244, %245 : vector<1x128xf32>
    %cst_152 = arith.constant 0.001953125 : f32
    %247 = vector.broadcast %cst_152 : f32 to vector<1x128xf32>
    %248 = arith.mulf %246, %247 : vector<1x128xf32>
    %cst_153 = arith.constant 9.99999974E-6 : f32
    %249 = vector.broadcast %cst_153 : f32 to vector<1x128xf32>
    %250 = arith.addf %248, %249 : vector<1x128xf32>
    %251 = math.rsqrt %250 : vector<1x128xf32>
    %252 = vector.broadcast %251 : vector<1x128xf32> to vector<32x128xf32>
    %253 = arith.mulf %235, %252 : vector<32x128xf32>
    %cst_154 = arith.constant 0.000000e+00 : f32
    %254 = vector.broadcast %cst_154 : f32 to vector<32x128xf32>
    %255 = arith.maximumf %253, %254 : vector<32x128xf32>
    %c6_155 = arith.constant 6 : index
    %c0_156 = arith.constant 0 : index
    %256 = vector.load %arg12[%c6_155, %c0_156] : memref<48x128xf32, #tpu.memory_space<vmem>>, vector<32x128xf32>
    %c0_157 = arith.constant 0 : index
    %c6_158 = arith.constant 6 : index
    %257 = vector.load %arg2[%c0_157, %c6_158] : memref<32x17xf32, #tpu.memory_space<vmem>>, vector<32x1xf32>
    %258 = vector.broadcast %257 : vector<32x1xf32> to vector<32x128xf32>
    %259 = arith.mulf %256, %258 : vector<32x128xf32>
    %c0_159 = arith.constant 0 : index
    %c0_160 = arith.constant 0 : index
    %c0_161 = arith.constant 0 : index
    %260 = vector.load %arg7[%c0_159, %c0_160, %c0_161] : memref<5x128x128xf32, #tpu.memory_space<vmem>>, vector<1x128x128xf32>
    %261 = vector.shape_cast %260 : vector<1x128x128xf32> to vector<128x128xf32>
    %cst_162 = arith.constant dense<0.000000e+00> : vector<32x128xf32>
    %262 = tpu.matmul %259, %261, %cst_162 {dimension_numbers = #tpu.dot_dimension_numbers<[1], [0], [0], [1], [0, 0, 1, 1], [], []>} : vector<32x128xf32>, vector<128x128xf32>, vector<32x128xf32> -> vector<32x128xf32>
    %c7_163 = arith.constant 7 : index
    %c0_164 = arith.constant 0 : index
    %263 = vector.load %arg12[%c7_163, %c0_164] : memref<48x128xf32, #tpu.memory_space<vmem>>, vector<32x128xf32>
    %c0_165 = arith.constant 0 : index
    %c7_166 = arith.constant 7 : index
    %264 = vector.load %arg2[%c0_165, %c7_166] : memref<32x17xf32, #tpu.memory_space<vmem>>, vector<32x1xf32>
    %265 = vector.broadcast %264 : vector<32x1xf32> to vector<32x128xf32>
    %266 = arith.mulf %263, %265 : vector<32x128xf32>
    %c1_167 = arith.constant 1 : index
    %c0_168 = arith.constant 0 : index
    %c0_169 = arith.constant 0 : index
    %267 = vector.load %arg7[%c1_167, %c0_168, %c0_169] : memref<5x128x128xf32, #tpu.memory_space<vmem>>, vector<1x128x128xf32>
    %268 = vector.shape_cast %267 : vector<1x128x128xf32> to vector<128x128xf32>
    %cst_170 = arith.constant dense<0.000000e+00> : vector<32x128xf32>
    %269 = tpu.matmul %266, %268, %cst_170 {dimension_numbers = #tpu.dot_dimension_numbers<[1], [0], [0], [1], [0, 0, 1, 1], [], []>} : vector<32x128xf32>, vector<128x128xf32>, vector<32x128xf32> -> vector<32x128xf32>
    %270 = arith.addf %262, %269 : vector<32x128xf32>
    %c2_171 = arith.constant 2 : index
    %c0_172 = arith.constant 0 : index
    %c0_173 = arith.constant 0 : index
    %271 = vector.load %arg7[%c2_171, %c0_172, %c0_173] : memref<5x128x128xf32, #tpu.memory_space<vmem>>, vector<1x128x128xf32>
    %272 = vector.shape_cast %271 : vector<1x128x128xf32> to vector<128x128xf32>
    %cst_174 = arith.constant dense<0.000000e+00> : vector<32x128xf32>
    %273 = tpu.matmul %78, %272, %cst_174 {dimension_numbers = #tpu.dot_dimension_numbers<[1], [0], [0], [1], [0, 0, 1, 1], [], []>} : vector<32x128xf32>, vector<128x128xf32>, vector<32x128xf32> -> vector<32x128xf32>
    %274 = arith.addf %270, %273 : vector<32x128xf32>
    %c9_175 = arith.constant 9 : index
    %c0_176 = arith.constant 0 : index
    %275 = vector.load %arg12[%c9_175, %c0_176] : memref<48x128xf32, #tpu.memory_space<vmem>>, vector<32x128xf32>
    %c0_177 = arith.constant 0 : index
    %c9_178 = arith.constant 9 : index
    %276 = vector.load %arg2[%c0_177, %c9_178] : memref<32x17xf32, #tpu.memory_space<vmem>>, vector<32x1xf32>
    %277 = vector.broadcast %276 : vector<32x1xf32> to vector<32x128xf32>
    %278 = arith.mulf %275, %277 : vector<32x128xf32>
    %c3_179 = arith.constant 3 : index
    %c0_180 = arith.constant 0 : index
    %c0_181 = arith.constant 0 : index
    %279 = vector.load %arg7[%c3_179, %c0_180, %c0_181] : memref<5x128x128xf32, #tpu.memory_space<vmem>>, vector<1x128x128xf32>
    %280 = vector.shape_cast %279 : vector<1x128x128xf32> to vector<128x128xf32>
    %cst_182 = arith.constant dense<0.000000e+00> : vector<32x128xf32>
    %281 = tpu.matmul %278, %280, %cst_182 {dimension_numbers = #tpu.dot_dimension_numbers<[1], [0], [0], [1], [0, 0, 1, 1], [], []>} : vector<32x128xf32>, vector<128x128xf32>, vector<32x128xf32> -> vector<32x128xf32>
    %282 = arith.addf %274, %281 : vector<32x128xf32>
    %c10_183 = arith.constant 10 : index
    %c0_184 = arith.constant 0 : index
    %283 = vector.load %arg12[%c10_183, %c0_184] : memref<48x128xf32, #tpu.memory_space<vmem>>, vector<32x128xf32>
    %c0_185 = arith.constant 0 : index
    %c10_186 = arith.constant 10 : index
    %284 = vector.load %arg2[%c0_185, %c10_186] : memref<32x17xf32, #tpu.memory_space<vmem>>, vector<32x1xf32>
    %285 = vector.broadcast %284 : vector<32x1xf32> to vector<32x128xf32>
    %286 = arith.mulf %283, %285 : vector<32x128xf32>
    %c4_187 = arith.constant 4 : index
    %c0_188 = arith.constant 0 : index
    %c0_189 = arith.constant 0 : index
    %287 = vector.load %arg7[%c4_187, %c0_188, %c0_189] : memref<5x128x128xf32, #tpu.memory_space<vmem>>, vector<1x128x128xf32>
    %288 = vector.shape_cast %287 : vector<1x128x128xf32> to vector<128x128xf32>
    %cst_190 = arith.constant dense<0.000000e+00> : vector<32x128xf32>
    %289 = tpu.matmul %286, %288, %cst_190 {dimension_numbers = #tpu.dot_dimension_numbers<[1], [0], [0], [1], [0, 0, 1, 1], [], []>} : vector<32x128xf32>, vector<128x128xf32>, vector<32x128xf32> -> vector<32x128xf32>
    %290 = arith.addf %282, %289 : vector<32x128xf32>
    %cst_191 = arith.constant dense<0.000000e+00> : vector<128xf32>
    %291 = vector.multi_reduction <add>, %290, %cst_191 [0] : vector<32x128xf32> to vector<128xf32>
    %292 = vector.shape_cast %291 : vector<128xf32> to vector<1x128xf32>
    %c8_i32_192 = arith.constant 8 : i32
    %293 = tpu.dynamic_rotate %292 by %c8_i32_192 dim 1 : vector<1x128xf32>, i32 -> vector<1x128xf32>
    %294 = arith.addf %292, %293 : vector<1x128xf32>
    %c16_i32_193 = arith.constant 16 : i32
    %295 = tpu.dynamic_rotate %294 by %c16_i32_193 dim 1 : vector<1x128xf32>, i32 -> vector<1x128xf32>
    %296 = arith.addf %294, %295 : vector<1x128xf32>
    %c32_i32_194 = arith.constant 32 : i32
    %297 = tpu.dynamic_rotate %296 by %c32_i32_194 dim 1 : vector<1x128xf32>, i32 -> vector<1x128xf32>
    %298 = arith.addf %296, %297 : vector<1x128xf32>
    %c64_i32_195 = arith.constant 64 : i32
    %299 = tpu.dynamic_rotate %298 by %c64_i32_195 dim 1 : vector<1x128xf32>, i32 -> vector<1x128xf32>
    %300 = arith.addf %298, %299 : vector<1x128xf32>
    %cst_196 = arith.constant 0.001953125 : f32
    %301 = vector.broadcast %cst_196 : f32 to vector<1x128xf32>
    %302 = arith.mulf %300, %301 : vector<1x128xf32>
    %303 = vector.broadcast %302 : vector<1x128xf32> to vector<32x128xf32>
    %304 = arith.subf %290, %303 : vector<32x128xf32>
    %305 = arith.mulf %304, %304 : vector<32x128xf32>
    %cst_197 = arith.constant dense<0.000000e+00> : vector<128xf32>
    %306 = vector.multi_reduction <add>, %305, %cst_197 [0] : vector<32x128xf32> to vector<128xf32>
    %307 = vector.shape_cast %306 : vector<128xf32> to vector<1x128xf32>
    %c8_i32_198 = arith.constant 8 : i32
    %308 = tpu.dynamic_rotate %307 by %c8_i32_198 dim 1 : vector<1x128xf32>, i32 -> vector<1x128xf32>
    %309 = arith.addf %307, %308 : vector<1x128xf32>
    %c16_i32_199 = arith.constant 16 : i32
    %310 = tpu.dynamic_rotate %309 by %c16_i32_199 dim 1 : vector<1x128xf32>, i32 -> vector<1x128xf32>
    %311 = arith.addf %309, %310 : vector<1x128xf32>
    %c32_i32_200 = arith.constant 32 : i32
    %312 = tpu.dynamic_rotate %311 by %c32_i32_200 dim 1 : vector<1x128xf32>, i32 -> vector<1x128xf32>
    %313 = arith.addf %311, %312 : vector<1x128xf32>
    %c64_i32_201 = arith.constant 64 : i32
    %314 = tpu.dynamic_rotate %313 by %c64_i32_201 dim 1 : vector<1x128xf32>, i32 -> vector<1x128xf32>
    %315 = arith.addf %313, %314 : vector<1x128xf32>
    %cst_202 = arith.constant 0.001953125 : f32
    %316 = vector.broadcast %cst_202 : f32 to vector<1x128xf32>
    %317 = arith.mulf %315, %316 : vector<1x128xf32>
    %cst_203 = arith.constant 9.99999974E-6 : f32
    %318 = vector.broadcast %cst_203 : f32 to vector<1x128xf32>
    %319 = arith.addf %317, %318 : vector<1x128xf32>
    %320 = math.rsqrt %319 : vector<1x128xf32>
    %321 = vector.broadcast %320 : vector<1x128xf32> to vector<32x128xf32>
    %322 = arith.mulf %304, %321 : vector<32x128xf32>
    %cst_204 = arith.constant 0.000000e+00 : f32
    %323 = vector.broadcast %cst_204 : f32 to vector<32x128xf32>
    %324 = arith.maximumf %322, %323 : vector<32x128xf32>
    %c8_205 = arith.constant 8 : index
    %c0_206 = arith.constant 0 : index
    %325 = vector.load %arg12[%c8_205, %c0_206] : memref<48x128xf32, #tpu.memory_space<vmem>>, vector<32x128xf32>
    tpu.vector_store %arg12[%c8_205, %c0_206], %255 {strides = array<i32>} : memref<48x128xf32, #tpu.memory_space<vmem>>, vector<32x128xf32>,
    %c7_207 = arith.constant 7 : index
    %c0_208 = arith.constant 0 : index
    %326 = vector.load %arg12[%c7_207, %c0_208] : memref<48x128xf32, #tpu.memory_space<vmem>>, vector<32x128xf32>
    %c0_209 = arith.constant 0 : index
    %c7_210 = arith.constant 7 : index
    %327 = vector.load %arg2[%c0_209, %c7_210] : memref<32x17xf32, #tpu.memory_space<vmem>>, vector<32x1xf32>
    %328 = vector.broadcast %327 : vector<32x1xf32> to vector<32x128xf32>
    %329 = arith.mulf %326, %328 : vector<32x128xf32>
    %c0_211 = arith.constant 0 : index
    %c0_212 = arith.constant 0 : index
    %c0_213 = arith.constant 0 : index
    %330 = vector.load %arg6[%c0_211, %c0_212, %c0_213] : memref<3x128x128xf32, #tpu.memory_space<vmem>>, vector<1x128x128xf32>
    %331 = vector.shape_cast %330 : vector<1x128x128xf32> to vector<128x128xf32>
    %cst_214 = arith.constant dense<0.000000e+00> : vector<32x128xf32>
    %332 = tpu.matmul %329, %331, %cst_214 {dimension_numbers = #tpu.dot_dimension_numbers<[1], [0], [0], [1], [0, 0, 1, 1], [], []>} : vector<32x128xf32>, vector<128x128xf32>, vector<32x128xf32> -> vector<32x128xf32>
    %c1_215 = arith.constant 1 : index
    %c0_216 = arith.constant 0 : index
    %c0_217 = arith.constant 0 : index
    %333 = vector.load %arg6[%c1_215, %c0_216, %c0_217] : memref<3x128x128xf32, #tpu.memory_space<vmem>>, vector<1x128x128xf32>
    %334 = vector.shape_cast %333 : vector<1x128x128xf32> to vector<128x128xf32>
    %cst_218 = arith.constant dense<0.000000e+00> : vector<32x128xf32>
    %335 = tpu.matmul %255, %334, %cst_218 {dimension_numbers = #tpu.dot_dimension_numbers<[1], [0], [0], [1], [0, 0, 1, 1], [], []>} : vector<32x128xf32>, vector<128x128xf32>, vector<32x128xf32> -> vector<32x128xf32>
    %336 = arith.addf %332, %335 : vector<32x128xf32>
    %c9_219 = arith.constant 9 : index
    %c0_220 = arith.constant 0 : index
    %337 = vector.load %arg12[%c9_219, %c0_220] : memref<48x128xf32, #tpu.memory_space<vmem>>, vector<32x128xf32>
    %c0_221 = arith.constant 0 : index
    %c9_222 = arith.constant 9 : index
    %338 = vector.load %arg2[%c0_221, %c9_222] : memref<32x17xf32, #tpu.memory_space<vmem>>, vector<32x1xf32>
    %339 = vector.broadcast %338 : vector<32x1xf32> to vector<32x128xf32>
    %340 = arith.mulf %337, %339 : vector<32x128xf32>
    %c2_223 = arith.constant 2 : index
    %c0_224 = arith.constant 0 : index
    %c0_225 = arith.constant 0 : index
    %341 = vector.load %arg6[%c2_223, %c0_224, %c0_225] : memref<3x128x128xf32, #tpu.memory_space<vmem>>, vector<1x128x128xf32>
    %342 = vector.shape_cast %341 : vector<1x128x128xf32> to vector<128x128xf32>
    %cst_226 = arith.constant dense<0.000000e+00> : vector<32x128xf32>
    %343 = tpu.matmul %340, %342, %cst_226 {dimension_numbers = #tpu.dot_dimension_numbers<[1], [0], [0], [1], [0, 0, 1, 1], [], []>} : vector<32x128xf32>, vector<128x128xf32>, vector<32x128xf32> -> vector<32x128xf32>
    %344 = arith.addf %336, %343 : vector<32x128xf32>
    %cst_227 = arith.constant dense<0.000000e+00> : vector<128xf32>
    %345 = vector.multi_reduction <add>, %344, %cst_227 [0] : vector<32x128xf32> to vector<128xf32>
    %346 = vector.shape_cast %345 : vector<128xf32> to vector<1x128xf32>
    %c8_i32_228 = arith.constant 8 : i32
    %347 = tpu.dynamic_rotate %346 by %c8_i32_228 dim 1 : vector<1x128xf32>, i32 -> vector<1x128xf32>
    %348 = arith.addf %346, %347 : vector<1x128xf32>
    %c16_i32_229 = arith.constant 16 : i32
    %349 = tpu.dynamic_rotate %348 by %c16_i32_229 dim 1 : vector<1x128xf32>, i32 -> vector<1x128xf32>
    %350 = arith.addf %348, %349 : vector<1x128xf32>
    %c32_i32_230 = arith.constant 32 : i32
    %351 = tpu.dynamic_rotate %350 by %c32_i32_230 dim 1 : vector<1x128xf32>, i32 -> vector<1x128xf32>
    %352 = arith.addf %350, %351 : vector<1x128xf32>
    %c64_i32_231 = arith.constant 64 : i32
    %353 = tpu.dynamic_rotate %352 by %c64_i32_231 dim 1 : vector<1x128xf32>, i32 -> vector<1x128xf32>
    %354 = arith.addf %352, %353 : vector<1x128xf32>
    %cst_232 = arith.constant 0.001953125 : f32
    %355 = vector.broadcast %cst_232 : f32 to vector<1x128xf32>
    %356 = arith.mulf %354, %355 : vector<1x128xf32>
    %357 = vector.broadcast %356 : vector<1x128xf32> to vector<32x128xf32>
    %358 = arith.subf %344, %357 : vector<32x128xf32>
    %359 = arith.mulf %358, %358 : vector<32x128xf32>
    %cst_233 = arith.constant dense<0.000000e+00> : vector<128xf32>
    %360 = vector.multi_reduction <add>, %359, %cst_233 [0] : vector<32x128xf32> to vector<128xf32>
    %361 = vector.shape_cast %360 : vector<128xf32> to vector<1x128xf32>
    %c8_i32_234 = arith.constant 8 : i32
    %362 = tpu.dynamic_rotate %361 by %c8_i32_234 dim 1 : vector<1x128xf32>, i32 -> vector<1x128xf32>
    %363 = arith.addf %361, %362 : vector<1x128xf32>
    %c16_i32_235 = arith.constant 16 : i32
    %364 = tpu.dynamic_rotate %363 by %c16_i32_235 dim 1 : vector<1x128xf32>, i32 -> vector<1x128xf32>
    %365 = arith.addf %363, %364 : vector<1x128xf32>
    %c32_i32_236 = arith.constant 32 : i32
    %366 = tpu.dynamic_rotate %365 by %c32_i32_236 dim 1 : vector<1x128xf32>, i32 -> vector<1x128xf32>
    %367 = arith.addf %365, %366 : vector<1x128xf32>
    %c64_i32_237 = arith.constant 64 : i32
    %368 = tpu.dynamic_rotate %367 by %c64_i32_237 dim 1 : vector<1x128xf32>, i32 -> vector<1x128xf32>
    %369 = arith.addf %367, %368 : vector<1x128xf32>
    %cst_238 = arith.constant 0.001953125 : f32
    %370 = vector.broadcast %cst_238 : f32 to vector<1x128xf32>
    %371 = arith.mulf %369, %370 : vector<1x128xf32>
    %cst_239 = arith.constant 9.99999974E-6 : f32
    %372 = vector.broadcast %cst_239 : f32 to vector<1x128xf32>
    %373 = arith.addf %371, %372 : vector<1x128xf32>
    %374 = math.rsqrt %373 : vector<1x128xf32>
    %375 = vector.broadcast %8 : f32 to vector<1x128xf32>
    %376 = arith.mulf %374, %375 : vector<1x128xf32>
    %377 = vector.broadcast %376 : vector<1x128xf32> to vector<32x128xf32>
    %378 = arith.mulf %358, %377 : vector<32x128xf32>
    %c8_240 = arith.constant 8 : index
    %c0_241 = arith.constant 0 : index
    %379 = vector.load %arg12[%c8_240, %c0_241] : memref<48x128xf32, #tpu.memory_space<vmem>>, vector<32x128xf32>
    tpu.vector_store %arg12[%c8_240, %c0_241], %324 {strides = array<i32>} : memref<48x128xf32, #tpu.memory_space<vmem>>, vector<32x128xf32>,
    %c6_242 = arith.constant 6 : index
    %c0_243 = arith.constant 0 : index
    %380 = vector.load %arg12[%c6_242, %c0_243] : memref<48x128xf32, #tpu.memory_space<vmem>>, vector<32x128xf32>
    %c0_244 = arith.constant 0 : index
    %c6_245 = arith.constant 6 : index
    %381 = vector.load %arg2[%c0_244, %c6_245] : memref<32x17xf32, #tpu.memory_space<vmem>>, vector<32x1xf32>
    %382 = vector.broadcast %381 : vector<32x1xf32> to vector<32x128xf32>
    %383 = arith.mulf %380, %382 : vector<32x128xf32>
    %c0_246 = arith.constant 0 : index
    %c0_247 = arith.constant 0 : index
    %c0_248 = arith.constant 0 : index
    %384 = vector.load %arg8[%c0_246, %c0_247, %c0_248] : memref<5x128x128xf32, #tpu.memory_space<vmem>>, vector<1x128x128xf32>
    %385 = vector.shape_cast %384 : vector<1x128x128xf32> to vector<128x128xf32>
    %cst_249 = arith.constant dense<0.000000e+00> : vector<32x128xf32>
    %386 = tpu.matmul %383, %385, %cst_249 {dimension_numbers = #tpu.dot_dimension_numbers<[1], [0], [0], [1], [0, 0, 1, 1], [], []>} : vector<32x128xf32>, vector<128x128xf32>, vector<32x128xf32> -> vector<32x128xf32>
    %c7_250 = arith.constant 7 : index
    %c0_251 = arith.constant 0 : index
    %387 = vector.load %arg12[%c7_250, %c0_251] : memref<48x128xf32, #tpu.memory_space<vmem>>, vector<32x128xf32>
    %c0_252 = arith.constant 0 : index
    %c7_253 = arith.constant 7 : index
    %388 = vector.load %arg2[%c0_252, %c7_253] : memref<32x17xf32, #tpu.memory_space<vmem>>, vector<32x1xf32>
    %389 = vector.broadcast %388 : vector<32x1xf32> to vector<32x128xf32>
    %390 = arith.mulf %387, %389 : vector<32x128xf32>
    %c1_254 = arith.constant 1 : index
    %c0_255 = arith.constant 0 : index
    %c0_256 = arith.constant 0 : index
    %391 = vector.load %arg8[%c1_254, %c0_255, %c0_256] : memref<5x128x128xf32, #tpu.memory_space<vmem>>, vector<1x128x128xf32>
    %392 = vector.shape_cast %391 : vector<1x128x128xf32> to vector<128x128xf32>
    %cst_257 = arith.constant dense<0.000000e+00> : vector<32x128xf32>
    %393 = tpu.matmul %390, %392, %cst_257 {dimension_numbers = #tpu.dot_dimension_numbers<[1], [0], [0], [1], [0, 0, 1, 1], [], []>} : vector<32x128xf32>, vector<128x128xf32>, vector<32x128xf32> -> vector<32x128xf32>
    %394 = arith.addf %386, %393 : vector<32x128xf32>
    %c2_258 = arith.constant 2 : index
    %c0_259 = arith.constant 0 : index
    %c0_260 = arith.constant 0 : index
    %395 = vector.load %arg8[%c2_258, %c0_259, %c0_260] : memref<5x128x128xf32, #tpu.memory_space<vmem>>, vector<1x128x128xf32>
    %396 = vector.shape_cast %395 : vector<1x128x128xf32> to vector<128x128xf32>
    %cst_261 = arith.constant dense<0.000000e+00> : vector<32x128xf32>
    %397 = tpu.matmul %324, %396, %cst_261 {dimension_numbers = #tpu.dot_dimension_numbers<[1], [0], [0], [1], [0, 0, 1, 1], [], []>} : vector<32x128xf32>, vector<128x128xf32>, vector<32x128xf32> -> vector<32x128xf32>
    %398 = arith.addf %394, %397 : vector<32x128xf32>
    %c9_262 = arith.constant 9 : index
    %c0_263 = arith.constant 0 : index
    %399 = vector.load %arg12[%c9_262, %c0_263] : memref<48x128xf32, #tpu.memory_space<vmem>>, vector<32x128xf32>
    %c0_264 = arith.constant 0 : index
    %c9_265 = arith.constant 9 : index
    %400 = vector.load %arg2[%c0_264, %c9_265] : memref<32x17xf32, #tpu.memory_space<vmem>>, vector<32x1xf32>
    %401 = vector.broadcast %400 : vector<32x1xf32> to vector<32x128xf32>
    %402 = arith.mulf %399, %401 : vector<32x128xf32>
    %c3_266 = arith.constant 3 : index
    %c0_267 = arith.constant 0 : index
    %c0_268 = arith.constant 0 : index
    %403 = vector.load %arg8[%c3_266, %c0_267, %c0_268] : memref<5x128x128xf32, #tpu.memory_space<vmem>>, vector<1x128x128xf32>
    %404 = vector.shape_cast %403 : vector<1x128x128xf32> to vector<128x128xf32>
    %cst_269 = arith.constant dense<0.000000e+00> : vector<32x128xf32>
    %405 = tpu.matmul %402, %404, %cst_269 {dimension_numbers = #tpu.dot_dimension_numbers<[1], [0], [0], [1], [0, 0, 1, 1], [], []>} : vector<32x128xf32>, vector<128x128xf32>, vector<32x128xf32> -> vector<32x128xf32>
    %406 = arith.addf %398, %405 : vector<32x128xf32>
    %c10_270 = arith.constant 10 : index
    %c0_271 = arith.constant 0 : index
    %407 = vector.load %arg12[%c10_270, %c0_271] : memref<48x128xf32, #tpu.memory_space<vmem>>, vector<32x128xf32>
    %c0_272 = arith.constant 0 : index
    %c10_273 = arith.constant 10 : index
    %408 = vector.load %arg2[%c0_272, %c10_273] : memref<32x17xf32, #tpu.memory_space<vmem>>, vector<32x1xf32>
    %409 = vector.broadcast %408 : vector<32x1xf32> to vector<32x128xf32>
    %410 = arith.mulf %407, %409 : vector<32x128xf32>
    %c4_274 = arith.constant 4 : index
    %c0_275 = arith.constant 0 : index
    %c0_276 = arith.constant 0 : index
    %411 = vector.load %arg8[%c4_274, %c0_275, %c0_276] : memref<5x128x128xf32, #tpu.memory_space<vmem>>, vector<1x128x128xf32>
    %412 = vector.shape_cast %411 : vector<1x128x128xf32> to vector<128x128xf32>
    %cst_277 = arith.constant dense<0.000000e+00> : vector<32x128xf32>
    %413 = tpu.matmul %410, %412, %cst_277 {dimension_numbers = #tpu.dot_dimension_numbers<[1], [0], [0], [1], [0, 0, 1, 1], [], []>} : vector<32x128xf32>, vector<128x128xf32>, vector<32x128xf32> -> vector<32x128xf32>
    %414 = arith.addf %406, %413 : vector<32x128xf32>
    %cst_278 = arith.constant dense<0.000000e+00> : vector<128xf32>
    %415 = vector.multi_reduction <add>, %414, %cst_278 [0] : vector<32x128xf32> to vector<128xf32>
    %416 = vector.shape_cast %415 : vector<128xf32> to vector<1x128xf32>
    %c8_i32_279 = arith.constant 8 : i32
    %417 = tpu.dynamic_rotate %416 by %c8_i32_279 dim 1 : vector<1x128xf32>, i32 -> vector<1x128xf32>
    %418 = arith.addf %416, %417 : vector<1x128xf32>
    %c16_i32_280 = arith.constant 16 : i32
    %419 = tpu.dynamic_rotate %418 by %c16_i32_280 dim 1 : vector<1x128xf32>, i32 -> vector<1x128xf32>
    %420 = arith.addf %418, %419 : vector<1x128xf32>
    %c32_i32_281 = arith.constant 32 : i32
    %421 = tpu.dynamic_rotate %420 by %c32_i32_281 dim 1 : vector<1x128xf32>, i32 -> vector<1x128xf32>
    %422 = arith.addf %420, %421 : vector<1x128xf32>
    %c64_i32_282 = arith.constant 64 : i32
    %423 = tpu.dynamic_rotate %422 by %c64_i32_282 dim 1 : vector<1x128xf32>, i32 -> vector<1x128xf32>
    %424 = arith.addf %422, %423 : vector<1x128xf32>
    %cst_283 = arith.constant 0.001953125 : f32
    %425 = vector.broadcast %cst_283 : f32 to vector<1x128xf32>
    %426 = arith.mulf %424, %425 : vector<1x128xf32>
    %427 = vector.broadcast %426 : vector<1x128xf32> to vector<32x128xf32>
    %428 = arith.subf %414, %427 : vector<32x128xf32>
    %429 = arith.mulf %428, %428 : vector<32x128xf32>
    %cst_284 = arith.constant dense<0.000000e+00> : vector<128xf32>
    %430 = vector.multi_reduction <add>, %429, %cst_284 [0] : vector<32x128xf32> to vector<128xf32>
    %431 = vector.shape_cast %430 : vector<128xf32> to vector<1x128xf32>
    %c8_i32_285 = arith.constant 8 : i32
    %432 = tpu.dynamic_rotate %431 by %c8_i32_285 dim 1 : vector<1x128xf32>, i32 -> vector<1x128xf32>
    %433 = arith.addf %431, %432 : vector<1x128xf32>
    %c16_i32_286 = arith.constant 16 : i32
    %434 = tpu.dynamic_rotate %433 by %c16_i32_286 dim 1 : vector<1x128xf32>, i32 -> vector<1x128xf32>
    %435 = arith.addf %433, %434 : vector<1x128xf32>
    %c32_i32_287 = arith.constant 32 : i32
    %436 = tpu.dynamic_rotate %435 by %c32_i32_287 dim 1 : vector<1x128xf32>, i32 -> vector<1x128xf32>
    %437 = arith.addf %435, %436 : vector<1x128xf32>
    %c64_i32_288 = arith.constant 64 : i32
    %438 = tpu.dynamic_rotate %437 by %c64_i32_288 dim 1 : vector<1x128xf32>, i32 -> vector<1x128xf32>
    %439 = arith.addf %437, %438 : vector<1x128xf32>
    %cst_289 = arith.constant 0.001953125 : f32
    %440 = vector.broadcast %cst_289 : f32 to vector<1x128xf32>
    %441 = arith.mulf %439, %440 : vector<1x128xf32>
    %cst_290 = arith.constant 9.99999974E-6 : f32
    %442 = vector.broadcast %cst_290 : f32 to vector<1x128xf32>
    %443 = arith.addf %441, %442 : vector<1x128xf32>
    %444 = math.rsqrt %443 : vector<1x128xf32>
    %445 = vector.broadcast %9 : f32 to vector<1x128xf32>
    %446 = arith.mulf %444, %445 : vector<1x128xf32>
    %447 = vector.broadcast %446 : vector<1x128xf32> to vector<32x128xf32>
    %448 = arith.mulf %428, %447 : vector<32x128xf32>
    %449 = arith.addf %378, %448 : vector<32x128xf32>
    %450 = arith.addf %74, %76 : vector<32x128xf32>
    %451 = arith.addf %202, %449 : vector<32x128xf32>
    %452 = arith.addf %450, %451 : vector<32x128xf32>
    %c0_291 = arith.constant 0 : index
    %c0_292 = arith.constant 0 : index
    %453 = vector.load %arg11[%c0_291, %c0_292] : memref<32x128xf32, #tpu.memory_space<vmem>>, vector<32x128xf32>
    tpu.vector_store %arg11[%c0_291, %c0_292], %452 {strides = array<i32>} : memref<32x128xf32, #tpu.memory_space<vmem>>, vector<32x128xf32>,
    return
  }
}

</mosaic_0001>

<bundles_post_ra>
// kernel: _mixed_op_forward.1
= control target key start
LH: loop header
LB: loop body
LE: loop exit
PB: predicated region body
PF: predicated region fallthrough
CT: control target
= control target key end

     0   :  { %16 = vsyncpa [#allocation4], 0  ;;  %s7377_s0 = inlined_call_operand.vmem [shape: f32[8], index: 0, kind: input, shape index: {}]   ;;  %s7378_s1 = inlined_call_operand.vmem [shape: f32[32,128], index: 1, kind: input, shape index: {}]   ;;  %s7379_s2 = inlined_call_operand.vmem [shape: f32[32,17], index: 2, kind: input, shape index: {}]   ;;  %s7380_s3 = inlined_call_operand.vmem [shape: f32[2,128], index: 3, kind: input, shape index: {}]   ;;  %s7381_s4 = inlined_call_operand.vmem [shape: f32[32,128], index: 4, kind: input, shape index: {}]   ;;  %s7382_s5 = inlined_call_operand.vmem [shape: f32[3,128,128], index: 5, kind: input, shape index: {}]   ;;  %s7383_s6 = inlined_call_operand.vmem [shape: f32[3,128,128], index: 6, kind: input, shape index: {}]   ;;  %s7384_s7 = inlined_call_operand.vmem [shape: f32[5,128,128], index: 7, kind: input, shape index: {}]   ;;  %s7385_s8 = inlined_call_operand.vmem [shape: f32[5,128,128], index: 8, kind: input, shape index: {}]   ;;  %s7386_s9 = inlined_call_operand.vmem [shape: f32[3,128,128], index: 9, kind: input, shape index: {}]   ;;  %s7387_s10 = inlined_call_operand.vmem [shape: f32[5,128,128], index: 10, kind: input, shape index: {}]   ;;  %s7388_s11 = inlined_call_operand.vmem [shape: f32[32,128], index: 11, kind: output, shape index: {}]  }
   0x1   :  { %s23_s19 = sshll.u32 %s7377_s0, 4  ;;  %s24_s19 = int_to_ptr.vmem [resolvable:$true] %s23_s19 }
   0x2   :  { %s5316_s20 = scalar_lea.vmem %s24_s19, 16  ;;  %p5321_p1 = scmp.lt.s32.totalorder %s24_s19, %s24_s19 }
   0x3   :  { %p5317_p0 = scmp.ne.s32.totalorder %s24_s19, %s5316_s20  ;;  %p5322_p2 = scmp.lt.s32.totalorder %s5316_s20, %s5316_s20 }
   0x5   :  { %p5323_p3 = por %p5322_p2, %p5321_p1 }
   0x7   :  { %p5324_p4 = pnand %p5323_p3, %p5317_p0 }
   0x9   :  { %5327 = shalt.err (!%p5324_p4)
}
   0xa   :  { %s5330_s21 = smov [#allocation3]  }
   0xb   :  { %26 = dma.vmem_to_smem %s24_s19, 16, %s5330_s21, [#allocation4]  }
   0xc   :  { %5328 = dma.done.wait [#allocation4], 16  }
   0xd   :  { %5329 = vsyncadd [#allocation4], 4294967280 }
   0xe   :  { %50 = sfence }
   0xf   :  { %v5410_v0 = vld [vmem:[%s7378_s1 + $0x10] sm:$0xff]  ;;  %v5415_v1 = vld [vmem:[%s7378_s1] sm:$0xff]  ;;  %s5331_s25 = smov 8   ;;  %v5424_v2 = vld [vmem:[%s7378_s1 + $0x18] sm:$0xff]  ;;  %v7393_v4 = vmov 6   ;;  %v5333_v8 = vmov 0.0  }
  0x10   :  { %68 = vrot.lane.b32.xlu1 %v5410_v0, %s5331_s25  ;;  %64 = vrot.lane.b32.xlu0 %v5415_v1, %s5331_s25  ;;  %v5429_v3 = vld [vmem:[%s7378_s1 + $0x8] sm:$0xff]  ;;  %v3584_v5 = vld [vmem:[%s7386_s9 + $0xf8] sm:$0xff]  ;;  %v5437_v6 = vmax.f32 %v5415_v1, 0.0  ;;  %55 = vst [vmem:[#allocation2] sm:$0xff] %v5333_v8  ;;  %56 = vst [vmem:[#allocation2 + $0x28] sm:$0xff] %v5333_v8  ;;  %s5334_s17 = smov 120  }
  0x11   :  { %5264 = vset.pattern.permute.xlu1 %v7393_v4  ;;  %5263 = vset.pattern.permute.xlu0 %v7393_v4  ;;  %v3583_v7 = vld [vmem:[%s7386_s9 + $0xf0] sm:$0xff]  ;;  %v3582_v9 = vld [vmem:[%s7386_s9 + $0xe8] sm:$0xff]  ;;  %v3581_v10 = vld [vmem:[%s7386_s9 + $0xe0] sm:$0xff]  ;;  %v7391_v27 = vmov 10   ;;  %v5336_v31 = vmov 4   ;;  %v5337_v39 = vmov 12  }
  0x12   :  { %4337 = vmatprep.subr.mxu0 %v3584_v5  ;;  %4369 = vmatprep.mubr.f32.mxu0 %v5437_v6  ;;  %v358_v11 = vld [vmem:[%s7386_s9 + $0x78] sm:$0xff]  ;;  %v357_v12 = vld [vmem:[%s7386_s9 + $0x70] sm:$0xff]  ;;  %v356_v14 = vld [vmem:[%s7386_s9 + $0x68] sm:$0xff]  ;;  %v5557_v40 = vmax.f32 %v5429_v3, 0.0  ;;  %v7395_v51 = vmov 7   ;;  %v5613_v57 = vmax.f32 %v5410_v0, 0.0 }
  0x13   :  { %4338 = vmatpush3.msra.mxu0 %v3584_v5  ;;  %4375 = vmatprep.subr.mxu1 %v358_v11  ;;  %v3580_v13 = vld [vmem:[%s7386_s9 + $0xd8] sm:$0xff]  ;;  %v5472_v15 = vld [vmem:[%s7379_s2 + $0x8] sm:$0xff]  ;;  %v5477_v16 = vld [vmem:[%s7379_s2] sm:$0xff]  ;;  %v5625_v60 = vmax.f32 %v5424_v2, 0.0  ;;  %v7397_v8 = vmov 9   ;;  %s5343_s0 = smov 64  }
  0x14   :  { %70 = vrot.lane.b32.xlu1 %v5424_v2, %s5331_s25  ;;  %66 = vrot.lane.b32.xlu0 %v5429_v3, %s5331_s25  ;;  %v3579_v17 = vld [vmem:[%s7386_s9 + $0xd0] sm:$0xff]  ;;  %v355_v18 = vld [vmem:[%s7386_s9 + $0x60] sm:$0xff]  ;;  %s3564_s13 = sld [smem:[#allocation3 + $0x3]] }
  0x15   :  { %4339 = vmatprep.subr.mxu0 %v3583_v7  ;;  %4376 = vmatpush3.msra.mxu1 %v358_v11  ;;  %v3578_v19 = vld [vmem:[%s7386_s9 + $0xc8] sm:$0xff]  ;;  %v354_v20 = vld [vmem:[%s7386_s9 + $0x58] sm:$0xff]  ;;  %v5496_v21 = vld [vmem:[%s7379_s2 + $0x10] sm:$0xff]  ;;  %v83_v11 = vlaneseq  ;;  %s7260_s14 = sld [smem:[#allocation3 + $0x4]] }
  0x16   :  { %4340 = vmatpush3.msra.mxu0 %v3583_v7  ;;  %4377 = vmatprep.subr.mxu1 %v357_v12  ;;  %v5501_v22 = vld [vmem:[%s7379_s2 + $0x18] sm:$0xff]  ;;  %v3577_v23 = vld [vmem:[%s7386_s9 + $0xc0] sm:$0xff]  ;;  %v353_v24 = vld [vmem:[%s7386_s9 + $0x50] sm:$0xff]  ;;  %s3562_s15 = sld [smem:[#allocation3 + $0x1]] }
  0x17   :  { %4341 = vmatprep.subr.mxu0 %v3582_v9  ;;  %4378 = vmatpush3.msra.mxu1 %v357_v12  ;;  %v3576_v25 = vld [vmem:[%s7386_s9 + $0xb8] sm:$0xff]  ;;  %v352_v26 = vld [vmem:[%s7386_s9 + $0x48] sm:$0xff]  ;;  %v3575_v28 = vld [vmem:[%s7386_s9 + $0xb0] sm:$0xff]  ;;  %s3563_s16 = sld [smem:[#allocation3 + $0x2]] }
  0x18   :  { %74 = vrot.lane.b32.xlu1 %v5429_v3, %s5334_s17  ;;  %72 = vrot.lane.b32.xlu0 %v5415_v1, %s5334_s17  ;;  %v351_v29 = vld [vmem:[%s7386_s9 + $0x40] sm:$0xff]  ;;  %v3574_v30 = vld [vmem:[%s7386_s9 + $0xa8] sm:$0xff] }
  0x19   :  { %4342 = vmatpush3.msra.mxu0 %v3582_v9  ;;  %4379 = vmatprep.subr.mxu1 %v356_v14  ;;  %v350_v32 = vld [vmem:[%s7386_s9 + $0x38] sm:$0xff]  ;;  %v3573_v33 = vld [vmem:[%s7386_s9 + $0xa0] sm:$0xff]  ;;  %v349_v35 = vld [vmem:[%s7386_s9 + $0x30] sm:$0xff] }
  0x1a   :  { %4343 = vmatprep.subr.mxu0 %v3581_v10  ;;  %4380 = vmatpush3.msra.mxu1 %v356_v14  ;;  %v3572_v34 = vld [vmem:[%s7386_s9 + $0x98] sm:$0xff]  ;;  %v3571_v36 = vld [vmem:[%s7386_s9 + $0x90] sm:$0xff]  ;;  %v3570_v37 = vld [vmem:[%s7386_s9 + $0x88] sm:$0xff] }
  0x1b   :  { %4344 = vmatpush3.msra.mxu0 %v3581_v10  ;;  %4381 = vmatprep.subr.mxu1 %v355_v18  ;;  %v3569_v38 = vld [vmem:[%s7386_s9 + $0x80] sm:$0xff]  ;;  %v3600_v41 = vld [vmem:[%s7386_s9 + $0x178] sm:$0xff]  ;;  %v348_v42 = vld [vmem:[%s7386_s9 + $0x28] sm:$0xff] }
  0x1c   :  { %78 = vrot.lane.b32.xlu1 %v5424_v2, %s5334_s17  ;;  %76 = vrot.lane.b32.xlu0 %v5410_v0, %s5334_s17  ;;  %v3599_v43 = vld [vmem:[%s7386_s9 + $0x170] sm:$0xff]  ;;  %v3598_v44 = vld [vmem:[%s7386_s9 + $0x168] sm:$0xff]  ;;  %s7262_s17 = sld [smem:[#allocation3 + $0x5]] }
  0x1d   :  { %4345 = vmatprep.subr.mxu0 %v3580_v13  ;;  %4382 = vmatpush3.msra.mxu1 %v355_v18  ;;  %v347_v45 = vld [vmem:[%s7386_s9 + $0x20] sm:$0xff]  ;;  %v346_v47 = vld [vmem:[%s7386_s9 + $0x18] sm:$0xff]  ;;  %v3595_v49 = vld [vmem:[%s7386_s9 + $0x150] sm:$0xff] }
  0x1e   :  { %4346 = vmatpush3.msra.mxu0 %v3580_v13  ;;  %4383 = vmatprep.subr.mxu1 %v354_v20  ;;  %v3597_v46 = vld [vmem:[%s7386_s9 + $0x160] sm:$0xff]  ;;  %v3596_v48 = vld [vmem:[%s7386_s9 + $0x158] sm:$0xff]  ;;  %v3594_v50 = vld [vmem:[%s7386_s9 + $0x148] sm:$0xff]  ;;  %v84_v13 = vshrl.u32 %v83_v11, 7 }
  0x1f   :  { %4347 = vmatprep.subr.mxu0 %v3579_v17  ;;  %4384 = vmatpush3.msra.mxu1 %v354_v20  ;;  %v345_v52 = vld [vmem:[%s7386_s9 + $0x10] sm:$0xff]  ;;  %v3593_v53 = vld [vmem:[%s7386_s9 + $0x140] sm:$0xff]  ;;  %v344_v54 = vld [vmem:[%s7386_s9 + $0x8] sm:$0xff] }
  0x20   :  { %326 = vperm.xlu1 %5264, %v5472_v15   ;;  %321 = vperm.xlu0 %5263, %v5477_v16   ;;  %v3592_v55 = vld [vmem:[%s7386_s9 + $0x138] sm:$0xff]  ;;  %v3591_v56 = vld [vmem:[%s7386_s9 + $0x130] sm:$0xff]  ;;  %v3590_v58 = vld [vmem:[%s7386_s9 + $0x128] sm:$0xff] }
  0x21   :  { %4348 = vmatpush3.msra.mxu0 %v3579_v17  ;;  %4385 = vmatprep.subr.mxu1 %v353_v24  ;;  %v3589_v59 = vld [vmem:[%s7386_s9 + $0x120] sm:$0xff]  ;;  %v3588_v62 = vld [vmem:[%s7386_s9 + $0x118] sm:$0xff]  ;;  %v3587_v63 = vld [vmem:[%s7386_s9 + $0x110] sm:$0xff] }
  0x22   :  { %4349 = vmatprep.subr.mxu0 %v3578_v19  ;;  %4386 = vmatpush3.msra.mxu1 %v353_v24  ;;  %v343_v61 = vld [vmem:[%s7386_s9] sm:$0xff]  ;;  %v5642_v5 = vld [vmem:[%s7387_s10 + $0xf8] sm:$0xff]  ;;  %v3586_v7 = vld [vmem:[%s7386_s9 + $0x108] sm:$0xff] }
  0x23   :  { %4350 = vmatpush3.msra.mxu0 %v3578_v19  ;;  %4387 = vmatprep.subr.mxu1 %v352_v26  ;;  %v3585_v9 = vld [vmem:[%s7386_s9 + $0x100] sm:$0xff]  ;;  %v5657_v10 = vld [vmem:[%s7387_s10 + $0x78] sm:$0xff]  ;;  %s5342_s9 = smov 32  }
  0x24   :  { %331 = vperm.xlu1 %5264, %v5496_v21   ;;  %336 = vperm.xlu0 %5263, %v5501_v22   ;;  %v80_v12 = vld [vmem:[%s7380_s3] sm:$0x1]  ;;  %v96_v14 = vld [vmem:[%s7380_s3 + $0x1] sm:$0x1] }
  0x25   :  { %4351 = vmatprep.subr.mxu0 %v3577_v23  ;;  %4388 = vmatpush3.msra.mxu1 %v352_v26  ;;  %vm81_vm0 = vcmp.gt.f32.partialorder %v80_v12, 0.0  ;;  %vm97_vm1 = vcmp.gt.f32.partialorder %v96_v14, 0.0 }
  0x26   :  { %4352 = vmatpush3.msra.mxu0 %v3577_v23  ;;  %4389 = vmatprep.subr.mxu1 %v351_v29 }
  0x27   :  { %4353 = vmatprep.subr.mxu0 %v3576_v25  ;;  %4390 = vmatpush3.msra.mxu1 %v351_v29 }
  0x28   :  { %5265 = vset.pattern.permute.xlu1 %v7391_v27  ;;  %5266 = vset.pattern.permute.xlu0 %v7391_v27 }
  0x29   :  { %551 = vperm.xlu1 %5265, %v5477_v16   ;;  %555 = vperm.xlu0 %5266, %v5472_v15  }
  0x2a   :  { %4354 = vmatpush3.msra.mxu0 %v3576_v25  ;;  %4391 = vmatprep.subr.mxu1 %v350_v32 }
  0x2b   :  { %4355 = vmatprep.subr.mxu0 %v3575_v28  ;;  %4392 = vmatpush3.msra.mxu1 %v350_v32 }
  0x2c   :  { %4356 = vmatpush3.msra.mxu0 %v3575_v28  ;;  %4393 = vmatprep.subr.mxu1 %v349_v35 }
  0x2d   :  { %559 = vperm.xlu1 %5265, %v5496_v21   ;;  %5267 = vset.pattern.permute.xlu0 %v5336_v31 }
  0x2e   :  { %749 = vperm.xlu0 %5267, %v5477_v16   ;;  %4357 = vmatprep.subr.mxu0 %v3574_v30 }
  0x2f   :  { %4358 = vmatpush3.msra.mxu0 %v3574_v30  ;;  %4394 = vmatpush3.msra.mxu1 %v349_v35 }
  0x30   :  { %4359 = vmatprep.subr.mxu0 %v3573_v33  ;;  %4395 = vmatprep.subr.mxu1 %v348_v42 }
  0x31   :  { %563 = vperm.xlu1 %5265, %v5501_v22   ;;  %4360 = vmatpush3.msra.mxu0 %v3573_v33 }
  0x32   :  { %761 = vperm.xlu0 %5267, %v5501_v22   ;;  %4361 = vmatprep.subr.mxu0 %v3572_v34 }
  0x33   :  { %4362 = vmatpush3.msra.mxu0 %v3572_v34  ;;  %4396 = vmatpush3.msra.mxu1 %v348_v42 }
  0x34   :  { %4363 = vmatprep.subr.mxu0 %v3571_v36  ;;  %4397 = vmatprep.subr.mxu1 %v347_v45 }
  0x35   :  { %5268 = vset.pattern.permute.xlu1 %v5336_v31  ;;  %4364 = vmatpush3.msra.mxu0 %v3571_v36 }
  0x36   :  { %753 = vperm.xlu1 %5268, %v5472_v15   ;;  %4365 = vmatprep.subr.mxu0 %v3570_v37 }
  0x37   :  { %5270 = vset.pattern.permute.xlu0 %v5337_v39  ;;  %4366 = vmatpush3.msra.mxu0 %v3570_v37 }
  0x38   :  { %1192 = vperm.xlu0 %5270, %v5472_v15   ;;  %4367 = vmatprep.subr.mxu0 %v3569_v38 }
  0x39   :  { %4368 = vmatpush3.msra.mxu0 %v3569_v38  ;;  %4398 = vmatpush3.msra.mxu1 %v347_v45 }
  0x3a   :  { %757 = vperm.xlu1 %5268, %v5496_v21   ;;  %4413 = vmatprep.subr.mxu0 %v3600_v41 }
  0x3b   :  { %4370 = vmatmul.mubr.f32.vlgmr.msra.gmra.mxu0 %v5557_v40  ;;  %4399 = vmatprep.subr.mxu1 %v346_v47 }
  0x3c   :  { %4414 = vmatpush3.msra.mxu0 %v3600_v41  ;;  %5271 = vset.pattern.permute.xlu0 %v7395_v51 }
  0x3d   :  { %4415 = vmatprep.subr.mxu0 %v3599_v43  ;;  %4400 = vmatpush3.msra.mxu1 %v346_v47 }
  0x3e   :  { %5269 = vset.pattern.permute.xlu1 %v5337_v39  ;;  %4416 = vmatpush3.msra.mxu0 %v3599_v43 }
  0x3f   :  { %1188 = vperm.xlu1 %5269, %v5477_v16   ;;  %4417 = vmatprep.subr.mxu0 %v3598_v44 }
  0x40   :  { %4418 = vmatpush3.msra.mxu0 %v3598_v44  ;;  %1390 = vperm.xlu0 %5271, %v5477_v16  }
  0x41   :  { %4419 = vmatprep.subr.mxu0 %v3597_v46  ;;  %4401 = vmatprep.subr.mxu1 %v345_v52 }
  0x42   :  { %4420 = vmatpush3.msra.mxu0 %v3597_v46  ;;  %4402 = vmatpush3.msra.mxu1 %v345_v52 }
  0x43   :  { %1196 = vperm.xlu1 %5269, %v5496_v21   ;;  %4421 = vmatprep.subr.mxu0 %v3596_v48 }
  0x44   :  { %4422 = vmatpush3.msra.mxu0 %v3596_v48  ;;  %4403 = vmatprep.subr.mxu1 %v344_v54 }
  0x45   :  { %4423 = vmatprep.subr.mxu0 %v3595_v49  ;;  %4372 = vmatprep.mubr.f32.mxu0 %v5613_v57 }
  0x46   :  { %4424 = vmatpush3.msra.mxu0 %v3595_v49  ;;  %4404 = vmatpush3.msra.mxu1 %v344_v54 }
  0x47   :  { %1200 = vperm.xlu1 %5269, %v5501_v22   ;;  %4425 = vmatprep.subr.mxu0 %v3594_v50 }
  0x48   :  { %4426 = vmatpush3.msra.mxu0 %v3594_v50  ;;  %1402 = vperm.xlu0 %5271, %v5501_v22  }
  0x49   :  { %4427 = vmatprep.subr.mxu0 %v3593_v53  ;;  %4373 = vmatmul.mubr.f32.gmra.mxu0 %v5625_v60 }
  0x4a   :  { %4428 = vmatpush3.msra.mxu0 %v3593_v53  ;;  %4405 = vmatprep.subr.mxu1 %v343_v61 }
  0x4b   :  { %4429 = vmatprep.subr.mxu0 %v3592_v55  ;;  %5272 = vset.pattern.permute.xlu1 %v7395_v51 }
  0x4c   :  { %4430 = vmatpush3.msra.mxu0 %v3592_v55  ;;  %1394 = vperm.xlu1 %5272, %v5472_v15  }
  0x4d   :  { %4431 = vmatprep.subr.mxu0 %v3591_v56  ;;  %4406 = vmatpush3.msra.mxu1 %v343_v61 }
  0x4e   :  { %4432 = vmatpush3.msra.mxu0 %v3591_v56  ;;  %4451 = vmatprep.subr.mxu1 %v5642_v5 }
  0x4f   :  { %4433 = vmatprep.subr.mxu0 %v3590_v58  ;;  %5274 = vset.pattern.permute.xlu0 %v7397_v8 }
  0x50   :  { %4434 = vmatpush3.msra.mxu0 %v3590_v58  ;;  %1398 = vperm.xlu1 %5272, %v5496_v21  }
  0x51   :  { %4435 = vmatprep.subr.mxu0 %v3589_v59  ;;  %1621 = vperm.xlu0 %5274, %v5472_v15   ;;  %v5671_v15 = vsub.s32 0, %v84_v13 }
  0x52   :  { %4436 = vmatpush3.msra.mxu0 %v3589_v59 }
  0x53   :  { %4437 = vmatprep.subr.mxu0 %v3588_v62  ;;  %v115_v30 = vrot.slane %v80_v12, %v5671_v15  ;;  %v127_v39 = vrot.slane %v96_v14, %v5671_v15 }
  0x54   :  { %4438 = vmatpush3.msra.mxu0 %v3588_v62  ;;  %5273 = vset.pattern.permute.xlu1 %v7397_v8 }
  0x55   :  { %4439 = vmatprep.subr.mxu0 %v3587_v63  ;;  %1617 = vperm.xlu1 %5273, %v5477_v16   ;;  %v7389_v16 = vmov 0  }
  0x56   :  { %4440 = vmatpush3.msra.mxu0 %v3587_v63  ;;  %5276 = vset.pattern.permute.xlu0 %v7395_v51  ;;  %v82_v17 = vsel %vm81_vm0, 1, %v7389_v16  ;;  %v98_v19 = vsel %vm97_vm1, 1, %v7389_v16 }
  0x57   :  { %4441 = vmatprep.subr.mxu0 %v3586_v7  ;;  %v86_v18 = vrot.slane %v82_v17, %v5671_v15  ;;  %v102_v23 = vrot.slane %v98_v19, %v5671_v15 }
  0x58   :  { %4442 = vmatpush3.msra.mxu0 %v3586_v7 }
  0x59   :  { %4443 = vmatprep.subr.mxu0 %v3585_v9  ;;  %1625 = vperm.xlu1 %5273, %v5496_v21   ;;  %vm5676_vm2 = vcmp.eq.s32.totalorder %v86_v18, 1  ;;  %vm5685_vm3 = vcmp.eq.s32.totalorder %v102_v23, 1 }
  0x5a   :  { %4444 = vmatpush3.msra.mxu0 %v3585_v9 }
  0x5b   :  { %4489 = vmatprep.subr.mxu0 %v5657_v10 }
  0x5d   :  { %1629 = vperm.xlu1 %5273, %v5501_v22  }
  0x61   :  { %5275 = vset.pattern.permute.xlu1 %v7395_v51 }
  0x82   :  { %v69_v20 = vpop.permute.xlu1 %68  ;;  %v65_v21 = vpop.permute.xlu0 %64 }
  0x83   :  { %v88_v26 = vsel %vm5676_vm2, %v65_v21, -inf  ;;  %v90_v35 = vsel %vm5676_vm2, %v69_v20, -inf  ;;  %v116_v44 = vmul.f32 %v115_v30, %v65_v21  ;;  %v118_v55 = vmul.f32 %v115_v30, %v69_v20 }
  0x84   :  { %v92_v31 = vmax.f32 %v88_v26, %v5415_v1  ;;  %v94_v43 = vmax.f32 %v90_v35, %v5410_v0 }
  0x85   :  { %v120_v54 = vadd.f32 %v116_v44, %v5415_v1  ;;  %v122_v1 = vadd.f32 %v118_v55, %v5410_v0  ;;  %v782_v55 = vld [vmem:[%s7387_s10 + $0x70] sm:$0xff] }
  0x86   :  { %v71_v24 = vpop.permute.xlu1 %70  ;;  %v67_v25 = vpop.permute.xlu0 %66 }
  0x87   :  { %v89_v28 = vsel %vm5676_vm2, %v67_v25, -inf  ;;  %v91_v36 = vsel %vm5676_vm2, %v71_v24, -inf  ;;  %v119_v56 = vmul.f32 %v115_v30, %v71_v24  ;;  %v117_v58 = vmul.f32 %v115_v30, %v67_v25 }
  0x88   :  { %v93_v32 = vmax.f32 %v89_v28, %v5429_v3  ;;  %v95_v45 = vmax.f32 %v91_v36, %v5424_v2 }
  0x89   :  { %v123_v12 = vadd.f32 %v119_v56, %v5424_v2  ;;  %v121_v13 = vadd.f32 %v117_v58, %v5429_v3 }
  0x8a   :  { %v75_v33 = vpop.permute.xlu1 %74  ;;  %v73_v34 = vpop.permute.xlu0 %72 }
  0x8b   :  { %v105_v37 = vsel %vm5685_vm3, %v75_v33, -inf  ;;  %v104_v38 = vsel %vm5685_vm3, %v73_v34, -inf  ;;  %v128_v50 = vmul.f32 %v127_v39, %v73_v34  ;;  %v129_v61 = vmul.f32 %v127_v39, %v75_v33 }
  0x8c   :  { %v5701_v41 = vmax.f32 %v93_v32, %v105_v37  ;;  %v5703_v42 = vmax.f32 %v92_v31, %v104_v38 }
  0x8d   :  { %v5720_v59 = vadd.f32 %v128_v50, %v120_v54  ;;  %v5732_v14 = vadd.f32 %v129_v61, %v121_v13  ;;  %v3615_v54 = vld [vmem:[%s7387_s10 + $0xf0] sm:$0xff]  ;;  %v780_v13 = vld [vmem:[%s7387_s10 + $0x60] sm:$0xff] }
  0x8e   :  { %137 = vst [vmem:[#allocation2 + $0x10] sm:$0xff] %v5701_v41  ;;  %136 = vst [vmem:[#allocation2 + $0x8] sm:$0xff] %v5703_v42  ;;  %v79_v46 = vpop.permute.xlu1 %78  ;;  %v77_v47 = vpop.permute.xlu0 %76 }
  0x8f   :  { %v107_v48 = vsel %vm5685_vm3, %v79_v46, -inf  ;;  %v106_v49 = vsel %vm5685_vm3, %v77_v47, -inf  ;;  %v131_v9 = vmul.f32 %v127_v39, %v79_v46  ;;  %v130_v11 = vmul.f32 %v127_v39, %v77_v47  ;;  %7408 = vst [vmem:[#allocation7_spill] sm:$0xff] %v5732_v14 }
  0x90   :  { %v5713_v52 = vmax.f32 %v95_v45, %v107_v48  ;;  %v5715_v53 = vmax.f32 %v94_v43, %v106_v49 }
  0x91   :  { %v5734_v17 = vadd.f32 %v131_v9, %v123_v12  ;;  %v5738_v19 = vadd.f32 %v130_v11, %v122_v1  ;;  %v3614_v9 = vld [vmem:[%s7387_s10 + $0xe8] sm:$0xff] }
  0x92   :  { %7407 = vst [vmem:[#allocation6_spill] sm:$0xff] %v5713_v52  ;;  %139 = vst [vmem:[#allocation2 + $0x20] sm:$0xff] %v5713_v52  ;;  %v781_v11 = vld [vmem:[%s7387_s10 + $0x68] sm:$0xff] }
  0x93   :  { %138 = vst [vmem:[#allocation2 + $0x18] sm:$0xff] %v5715_v53  ;;  %7409 = vst [vmem:[#allocation8_spill] sm:$0xff] %v5734_v17 }
  0x94   :  { %7411 = vst [vmem:[#allocation10_spill] sm:$0xff] %v5738_v19 }
  0x95   :  { %v5722_v62 = vld [vmem:[#allocation2 + $0x7] sm:$0xff]  ;;  %v5724_v63 = vld [vmem:[#allocation2 + $0xf] sm:$0xff] }
  0x96   :  { %v5726_v7 = vld [vmem:[#allocation2 + $0x9] sm:$0xff] }
  0x97   :  { %208 = vst [vmem:[#allocation2 + $0x8] sm:$0xff] %v5720_v59 }
  0x99   :  { %v5736_v18 = vld [vmem:[#allocation2 + $0x21] sm:$0xff] }
  0x9a   :  { %7410 = vst [vmem:[#allocation9_spill] sm:$0xff] %v5736_v18  ;;  %v5740_v20 = vld [vmem:[#allocation2 + $0x17] sm:$0xff]  ;;  %v5742_v21 = vld [vmem:[#allocation2 + $0x1f] sm:$0xff] }
  0x9b   :  { %7412 = vst [vmem:[#allocation11_spill] sm:$0xff] %v5742_v21  ;;  %v5744_v22 = vld [vmem:[#allocation2 + $0x11] sm:$0xff]  ;;  %v5746_v23 = vld [vmem:[#allocation2 + $0x19] sm:$0xff]  ;;  %v327_v0 = vpop.permute.xlu1 %326  ;;  %v322_v2 = vpop.permute.xlu0 %321 }
  0x9c   :  { %209 = vst [vmem:[#allocation2 + $0x10] sm:$0xff] %v5732_v14  ;;  %210 = vst [vmem:[#allocation2 + $0x18] sm:$0xff] %v5738_v19 }
  0x9d   :  { %211 = vst [vmem:[#allocation2 + $0x20] sm:$0xff] %v5734_v17 }
  0x9e   :  { %v5751_v24 = vld [vmem:[#allocation2 + $0x7] sm:$0xff] }
  0x9f   :  { %v332_v3 = vpop.permute.xlu1 %331  ;;  %v337_v33 = vpop.permute.xlu0 %336 }
  0xa3   :  { %v5753_v25 = vld [vmem:[#allocation2 + $0x17] sm:$0xff]  ;;  %v5761_v30 = vld [vmem:[#allocation2 + $0xf] sm:$0xff] }
  0xa4   :  { %v5755_v26 = vld [vmem:[#allocation2 + $0x1f] sm:$0xff]  ;;  %v5757_v28 = vld [vmem:[#allocation2 + $0x11] sm:$0xff]  ;;  %7415 = vst [vmem:[#allocation14_spill] sm:$0xff] %v5761_v30  ;;  %v5763_v31 = vld [vmem:[#allocation2 + $0x9] sm:$0xff]  ;;  %v552_v34 = vpop.permute.xlu1 %551  ;;  %v556_v35 = vpop.permute.xlu0 %555 }
  0xa5   :  { %7413 = vst [vmem:[#allocation12_spill] sm:$0xff] %v5755_v26  ;;  %7414 = vst [vmem:[#allocation13_spill] sm:$0xff] %v5757_v28  ;;  %v5759_v29 = vld [vmem:[#allocation2 + $0x19] sm:$0xff]  ;;  %v5768_v32 = vld [vmem:[#allocation2 + $0x21] sm:$0xff] }
  0xa6   :  { %309 = vst [vmem:[#allocation2 + $0x18] sm:$0xff] %v5613_v57  ;;  %307 = vst [vmem:[#allocation2 + $0x8] sm:$0xff] %v5437_v6 }
  0xa7   :  { %308 = vst [vmem:[#allocation2 + $0x10] sm:$0xff] %v5557_v40  ;;  %7416 = vst [vmem:[#allocation15_spill] sm:$0xff] %v5768_v32 }
  0xa8   :  { %310 = vst [vmem:[#allocation2 + $0x20] sm:$0xff] %v5625_v60  ;;  %v560_v39 = vpop.permute.xlu1 %559 }
  0xac   :  { %v564_v58 = vpop.permute.xlu1 %563 }
  0xad   :  { %v311_v37 = vld [vmem:[#allocation2 + $0x6] sm:$0xff] }
  0xae   :  { %v312_v36 = vld [vmem:[#allocation2 + $0xe] sm:$0xff]  ;;  %v313_v38 = vld [vmem:[#allocation2 + $0x16] sm:$0xff]  ;;  %v5773_v44 = vmul.f32 %v322_v2, %v311_v37  ;;  %v776_v37 = vld [vmem:[%s7387_s10 + $0x40] sm:$0xff] }
  0xaf   :  { %v5771_v43 = vmul.f32 %v327_v0, %v312_v36  ;;  %v546_v45 = vld [vmem:[#allocation2 + $0xa] sm:$0xff]  ;;  %v547_v46 = vld [vmem:[#allocation2 + $0x12] sm:$0xff]  ;;  %v5775_v47 = vmul.f32 %v332_v3, %v313_v38  ;;  %v548_v50 = vld [vmem:[#allocation2 + $0x1a] sm:$0xff] }
  0xb0   :  { %v5777_v48 = vmul.f32 %v552_v34, %v546_v45  ;;  %v5779_v49 = vmul.f32 %v556_v35, %v547_v46  ;;  %4407 = vmatprep.mubr.f32.mxu1 %v5773_v44  ;;  %v314_v56 = vld [vmem:[#allocation2 + $0x1e] sm:$0xff]  ;;  %v5800_v1 = vmul.f32 %v560_v39, %v548_v50  ;;  %v3611_v3 = vld [vmem:[%s7387_s10 + $0xd0] sm:$0xff]  ;;  %v3610_v34 = vld [vmem:[%s7387_s10 + $0xc8] sm:$0xff] }
  0xb1   :  { %4408 = vmatmul.mubr.f32.vlgmr.msra.gmra.mxu1 %v5771_v43  ;;  %v549_v61 = vld [vmem:[#allocation2 + $0x22] sm:$0xff]  ;;  %v5802_v12 = vmul.f32 %v337_v33, %v314_v56  ;;  %v3612_v0 = vld [vmem:[%s7387_s10 + $0xd8] sm:$0xff]  ;;  %v778_v33 = vld [vmem:[%s7387_s10 + $0x50] sm:$0xff] }
  0xb2   :  { %4445 = vmatprep.mubr.f32.mxu0 %v5777_v48  ;;  %4452 = vmatpush3.msra.mxu1 %v5642_v5  ;;  %v5804_v5 = vmul.f32 %v564_v58, %v549_v61  ;;  %v779_v2 = vld [vmem:[%s7387_s10 + $0x58] sm:$0xff]  ;;  %v777_v35 = vld [vmem:[%s7387_s10 + $0x48] sm:$0xff]  ;;  %v3609_v36 = vld [vmem:[%s7387_s10 + $0xc0] sm:$0xff] }
  0xb3   :  { %4446 = vmatmul.mubr.f32.vlgmr.msra.gmra.mxu0 %v5779_v49  ;;  %4410 = vmatprep.mubr.f32.mxu1 %v5775_v47  ;;  %v3608_v38 = vld [vmem:[%s7387_s10 + $0xb8] sm:$0xff]  ;;  %v3607_v45 = vld [vmem:[%s7387_s10 + $0xb0] sm:$0xff]  ;;  %v3606_v50 = vld [vmem:[%s7387_s10 + $0xa8] sm:$0xff] }
  0xb4   :  { %4490 = vmatpush3.msra.mxu0 %v5657_v10  ;;  %4453 = vmatprep.subr.mxu1 %v3615_v54  ;;  %v3613_v10 = vld [vmem:[%s7387_s10 + $0xe0] sm:$0xff]  ;;  %v775_v39 = vld [vmem:[%s7387_s10 + $0x38] sm:$0xff]  ;;  %v774_v46 = vld [vmem:[%s7387_s10 + $0x30] sm:$0xff] }
  0xb5   :  { %4491 = vmatprep.subr.mxu0 %v782_v55  ;;  %4454 = vmatpush3.msra.mxu1 %v3615_v54  ;;  %v773_v54 = vld [vmem:[%s7387_s10 + $0x28] sm:$0xff]  ;;  %v772_v56 = vld [vmem:[%s7387_s10 + $0x20] sm:$0xff]  ;;  %v3604_v58 = vld [vmem:[%s7387_s10 + $0x98] sm:$0xff] }
  0xb6   :  { %4492 = vmatpush3.msra.mxu0 %v782_v55  ;;  %4455 = vmatprep.subr.mxu1 %v3614_v9  ;;  %v3605_v55 = vld [vmem:[%s7387_s10 + $0xa0] sm:$0xff]  ;;  %v771_v61 = vld [vmem:[%s7387_s10 + $0x18] sm:$0xff] }
  0xb7   :  { %4493 = vmatprep.subr.mxu0 %v781_v11  ;;  %4411 = vmatmul.mubr.f32.gmra.mxu1 %v5802_v12 }
  0xb8   :  { %4494 = vmatpush3.msra.mxu0 %v781_v11  ;;  %4456 = vmatpush3.msra.mxu1 %v3614_v9  ;;  %v3603_v9 = vld [vmem:[%s7387_s10 + $0x90] sm:$0xff] }
  0xb9   :  { %4448 = vmatprep.mubr.f32.mxu0 %v5800_v1  ;;  %4457 = vmatprep.subr.mxu1 %v3613_v10  ;;  %v770_v11 = vld [vmem:[%s7387_s10 + $0x10] sm:$0xff] }
  0xba   :  { %4483 = vmatprep.mubr.f32.mxu1 %v5773_v44  ;;  %4495 = vmatprep.subr.mxu0 %v780_v13 }
  0xbb   :  { %4449 = vmatmul.mubr.f32.gmra.mxu0 %v5804_v5  ;;  %4458 = vmatpush3.msra.mxu1 %v3613_v10  ;;  %v754_v10 = vpop.permute.xlu1 %753 }
  0xbc   :  { %4496 = vmatpush3.msra.mxu0 %v780_v13  ;;  %4459 = vmatprep.subr.mxu1 %v3612_v0  ;;  %v750_v13 = vpop.permute.xlu0 %749 }
  0xbd   :  { %4497 = vmatprep.subr.mxu0 %v779_v2  ;;  %4460 = vmatpush3.msra.mxu1 %v3612_v0  ;;  %v744_v0 = vld [vmem:[#allocation2 + $0x4] sm:$0xff] }
  0xbe   :  { %4498 = vmatpush3.msra.mxu0 %v779_v2  ;;  %4461 = vmatprep.subr.mxu1 %v3611_v3  ;;  %v3602_v2 = vld [vmem:[%s7387_s10 + $0x88] sm:$0xff] }
  0xbf   :  { %4499 = vmatprep.subr.mxu0 %v778_v33  ;;  %4462 = vmatpush3.msra.mxu1 %v3611_v3  ;;  %v769_v3 = vld [vmem:[%s7387_s10 + $0x8] sm:$0xff] }
  0xc0   :  { %4500 = vmatpush3.msra.mxu0 %v778_v33  ;;  %4463 = vmatprep.subr.mxu1 %v3610_v34  ;;  %v5882_v33 = vld [vmem:[#allocation2 + $0xc] sm:$0xff] }
  0xc1   :  { %4501 = vmatprep.subr.mxu0 %v777_v35  ;;  %4464 = vmatpush3.msra.mxu1 %v3610_v34  ;;  %v3601_v34 = vld [vmem:[%s7387_s10 + $0x80] sm:$0xff] }
  0xc2   :  { %4502 = vmatpush3.msra.mxu0 %v777_v35  ;;  %4465 = vmatprep.subr.mxu1 %v3609_v36  ;;  %v768_v35 = vld [vmem:[%s7387_s10] sm:$0xff] }
  0xc3   :  { %4503 = vmatprep.subr.mxu0 %v776_v37  ;;  %4466 = vmatpush3.msra.mxu1 %v3609_v36  ;;  %v764_v36 = vmul.f32 %v750_v13, %v744_v0  ;;  %v3645_v13 = vld [vmem:[%s7387_s10 + $0x1e0] sm:$0xff]  ;;  %v3628_v0 = vld [vmem:[%s7387_s10 + $0x158] sm:$0xff] }
  0xc4   :  { %4504 = vmatpush3.msra.mxu0 %v776_v37  ;;  %4467 = vmatprep.subr.mxu1 %v3608_v38  ;;  %v765_v37 = vmul.f32 %v754_v10, %v5882_v33  ;;  %v3629_v10 = vld [vmem:[%s7387_s10 + $0x160] sm:$0xff] }
  0xc5   :  { %4505 = vmatprep.subr.mxu0 %v775_v39  ;;  %4468 = vmatpush3.msra.mxu1 %v3608_v38  ;;  %v758_v38 = vpop.permute.xlu1 %757 }
  0xc6   :  { %4506 = vmatpush3.msra.mxu0 %v775_v39  ;;  %4469 = vmatprep.subr.mxu1 %v3607_v45  ;;  %v5891_v39 = vld [vmem:[#allocation2 + $0x14] sm:$0xff] }
  0xc7   :  { %4507 = vmatprep.subr.mxu0 %v774_v46  ;;  %4470 = vmatpush3.msra.mxu1 %v3607_v45  ;;  %v3632_v45 = vld [vmem:[%s7387_s10 + $0x178] sm:$0xff] }
  0xc8   :  { %4508 = vmatpush3.msra.mxu0 %v774_v46  ;;  %4471 = vmatprep.subr.mxu1 %v3606_v50  ;;  %v3648_v46 = vld [vmem:[%s7387_s10 + $0x1f8] sm:$0xff] }
  0xc9   :  { %4509 = vmatprep.subr.mxu0 %v773_v54  ;;  %4472 = vmatpush3.msra.mxu1 %v3606_v50  ;;  %v5900_v50 = vld [vmem:[#allocation2 + $0x1c] sm:$0xff] }
  0xca   :  { %4510 = vmatpush3.msra.mxu0 %v773_v54  ;;  %4473 = vmatprep.subr.mxu1 %v3605_v55  ;;  %v762_v54 = vpop.permute.xlu0 %761 }
  0xcb   :  { %4511 = vmatprep.subr.mxu0 %v772_v56  ;;  %4474 = vmatpush3.msra.mxu1 %v3605_v55  ;;  %v766_v55 = vmul.f32 %v758_v38, %v5891_v39  ;;  %v3641_v38 = vld [vmem:[%s7387_s10 + $0x1c0] sm:$0xff] }
  0xcc   :  { %4512 = vmatpush3.msra.mxu0 %v772_v56  ;;  %4475 = vmatprep.subr.mxu1 %v3604_v58  ;;  %v3631_v56 = vld [vmem:[%s7387_s10 + $0x170] sm:$0xff] }
  0xcd   :  { %4513 = vmatprep.subr.mxu0 %v771_v61  ;;  %4476 = vmatpush3.msra.mxu1 %v3604_v58  ;;  %v3647_v58 = vld [vmem:[%s7387_s10 + $0x1f0] sm:$0xff] }
  0xce   :  { %4514 = vmatpush3.msra.mxu0 %v771_v61  ;;  %4477 = vmatprep.subr.mxu1 %v3603_v9  ;;  %v767_v61 = vmul.f32 %v762_v54, %v5900_v50  ;;  %v3623_v54 = vld [vmem:[%s7387_s10 + $0x130] sm:$0xff] }
  0xcf   :  { %4515 = vmatprep.subr.mxu0 %v770_v11  ;;  %4478 = vmatpush3.msra.mxu1 %v3603_v9  ;;  %v3630_v9 = vld [vmem:[%s7387_s10 + $0x168] sm:$0xff] }
  0xd0   :  { %4516 = vmatpush3.msra.mxu0 %v770_v11  ;;  %4479 = vmatprep.subr.mxu1 %v3602_v2  ;;  %v3646_v11 = vld [vmem:[%s7387_s10 + $0x1e8] sm:$0xff] }
  0xd1   :  { %4517 = vmatprep.subr.mxu0 %v769_v3  ;;  %4480 = vmatpush3.msra.mxu1 %v3602_v2  ;;  %v3644_v2 = vld [vmem:[%s7387_s10 + $0x1d8] sm:$0xff] }
  0xd2   :  { %4518 = vmatpush3.msra.mxu0 %v769_v3  ;;  %4481 = vmatprep.subr.mxu1 %v3601_v34  ;;  %v3627_v3 = vld [vmem:[%s7387_s10 + $0x150] sm:$0xff] }
  0xd3   :  { %4519 = vmatprep.subr.mxu0 %v768_v35  ;;  %4482 = vmatpush3.msra.mxu1 %v3601_v34  ;;  %v3643_v34 = vld [vmem:[%s7387_s10 + $0x1d0] sm:$0xff] }
  0xd4   :  { %4520 = vmatpush3.msra.mxu0 %v768_v35  ;;  %4521 = vmatprep.mubr.f32.mxu0 %v764_v36  ;;  %v3626_v35 = vld [vmem:[%s7387_s10 + $0x148] sm:$0xff] }
  0xd5   :  { %4484 = vmatmul.mubr.f32.vlgmr.msra.gmra.mxu1 %v5771_v43  ;;  %4522 = vmatmul.mubr.f32.vlgmr.msra.gmra.mxu0 %v765_v37  ;;  %v3642_v36 = vld [vmem:[%s7387_s10 + $0x1c8] sm:$0xff]  ;;  %v3625_v37 = vld [vmem:[%s7387_s10 + $0x140] sm:$0xff] }
  0xd6   :  { %4527 = vmatprep.subr.mxu1 %v3632_v45  ;;  %4565 = vmatprep.subr.mxu0 %v3648_v46 }
  0xd7   :  { %4486 = vmatprep.mubr.f32.mxu1 %v5775_v47  ;;  %4528 = vmatpush3.msra.mxu1 %v3632_v45  ;;  %v3624_v45 = vld [vmem:[%s7387_s10 + $0x138] sm:$0xff] }
  0xd8   :  { %4566 = vmatpush3.msra.mxu0 %v3648_v46  ;;  %4529 = vmatprep.subr.mxu1 %v3631_v56  ;;  %v3640_v46 = vld [vmem:[%s7387_s10 + $0x1b8] sm:$0xff] }
  0xd9   :  { %4567 = vmatprep.subr.mxu0 %v3647_v58  ;;  %4524 = vmatprep.mubr.f32.mxu0 %v766_v55  ;;  %v3639_v55 = vld [vmem:[%s7387_s10 + $0x1b0] sm:$0xff] }
  0xda   :  { %4530 = vmatpush3.msra.mxu1 %v3631_v56  ;;  %4568 = vmatpush3.msra.mxu0 %v3647_v58  ;;  %v3622_v56 = vld [vmem:[%s7387_s10 + $0x128] sm:$0xff] }
  0xdb   :  { %4487 = vmatmul.mubr.f32.gmra.mxu1 %v5802_v12  ;;  %4525 = vmatmul.mubr.f32.gmra.mxu0 %v767_v61  ;;  %v3638_v58 = vld [vmem:[%s7387_s10 + $0x1a8] sm:$0xff]  ;;  %v3621_v61 = vld [vmem:[%s7387_s10 + $0x120] sm:$0xff] }
  0xdc   :  { %4531 = vmatprep.subr.mxu1 %v3630_v9  ;;  %4569 = vmatprep.subr.mxu0 %v3646_v11 }
  0xdd   :  { %4532 = vmatpush3.msra.mxu1 %v3630_v9  ;;  %4570 = vmatpush3.msra.mxu0 %v3646_v11  ;;  %v3637_v9 = vld [vmem:[%s7387_s10 + $0x1a0] sm:$0xff]  ;;  %v3620_v11 = vld [vmem:[%s7387_s10 + $0x118] sm:$0xff] }
  0xde   :  { %4597 = vmatprep.mubr.f32.mxu0 %v5777_v48  ;;  %4533 = vmatprep.subr.mxu1 %v3629_v10 }
  0xdf   :  { %4571 = vmatprep.subr.mxu0 %v3645_v13  ;;  %4534 = vmatpush3.msra.mxu1 %v3629_v10  ;;  %v3636_v10 = vld [vmem:[%s7387_s10 + $0x198] sm:$0xff] }
  0xe0   :  { %4572 = vmatpush3.msra.mxu0 %v3645_v13  ;;  %4535 = vmatprep.subr.mxu1 %v3628_v0  ;;  %v3619_v13 = vld [vmem:[%s7387_s10 + $0x110] sm:$0xff] }
  0xe1   :  { %4573 = vmatprep.subr.mxu0 %v3644_v2  ;;  %4536 = vmatpush3.msra.mxu1 %v3628_v0  ;;  %v3635_v0 = vld [vmem:[%s7387_s10 + $0x190] sm:$0xff] }
  0xe2   :  { %4574 = vmatpush3.msra.mxu0 %v3644_v2  ;;  %4537 = vmatprep.subr.mxu1 %v3627_v3  ;;  %v3618_v2 = vld [vmem:[%s7387_s10 + $0x108] sm:$0xff] }
  0xe3   :  { %4575 = vmatprep.subr.mxu0 %v3643_v34  ;;  %4538 = vmatpush3.msra.mxu1 %v3627_v3  ;;  %v3634_v3 = vld [vmem:[%s7387_s10 + $0x188] sm:$0xff] }
  0xe4   :  { %4576 = vmatpush3.msra.mxu0 %v3643_v34  ;;  %4539 = vmatprep.subr.mxu1 %v3626_v35  ;;  %v3617_v34 = vld [vmem:[%s7387_s10 + $0x100] sm:$0xff] }
  0xe5   :  { %4577 = vmatprep.subr.mxu0 %v3642_v36  ;;  %4540 = vmatpush3.msra.mxu1 %v3626_v35  ;;  %v3633_v35 = vld [vmem:[%s7387_s10 + $0x180] sm:$0xff] }
  0xe6   :  { %4578 = vmatpush3.msra.mxu0 %v3642_v36  ;;  %4541 = vmatprep.subr.mxu1 %v3625_v37  ;;  %v3664_v36 = vld [vmem:[%s7387_s10 + $0x278] sm:$0xff] }
  0xe7   :  { %4579 = vmatprep.subr.mxu0 %v3641_v38  ;;  %4542 = vmatpush3.msra.mxu1 %v3625_v37  ;;  %v3680_v37 = vld [vmem:[%s7382_s5 + $0xf8] sm:$0xff] }
  0xe8   :  { %4580 = vmatpush3.msra.mxu0 %v3641_v38  ;;  %4543 = vmatprep.subr.mxu1 %v3624_v45  ;;  %v3663_v38 = vld [vmem:[%s7387_s10 + $0x270] sm:$0xff] }
  0xe9   :  { %4581 = vmatprep.subr.mxu0 %v3640_v46  ;;  %4544 = vmatpush3.msra.mxu1 %v3624_v45  ;;  %v3679_v45 = vld [vmem:[%s7382_s5 + $0xf0] sm:$0xff] }
  0xea   :  { %4582 = vmatpush3.msra.mxu0 %v3640_v46  ;;  %4545 = vmatprep.subr.mxu1 %v3623_v54  ;;  %v3662_v46 = vld [vmem:[%s7387_s10 + $0x268] sm:$0xff] }
  0xeb   :  { %4583 = vmatprep.subr.mxu0 %v3639_v55  ;;  %4546 = vmatpush3.msra.mxu1 %v3623_v54  ;;  %v3678_v54 = vld [vmem:[%s7382_s5 + $0xe8] sm:$0xff] }
  0xec   :  { %4584 = vmatpush3.msra.mxu0 %v3639_v55  ;;  %4547 = vmatprep.subr.mxu1 %v3622_v56  ;;  %v3661_v55 = vld [vmem:[%s7387_s10 + $0x260] sm:$0xff] }
  0xed   :  { %4585 = vmatprep.subr.mxu0 %v3638_v58  ;;  %4548 = vmatpush3.msra.mxu1 %v3622_v56  ;;  %v3677_v56 = vld [vmem:[%s7382_s5 + $0xe0] sm:$0xff] }
  0xee   :  { %4586 = vmatpush3.msra.mxu0 %v3638_v58  ;;  %4549 = vmatprep.subr.mxu1 %v3621_v61  ;;  %v3660_v58 = vld [vmem:[%s7387_s10 + $0x258] sm:$0xff] }
  0xef   :  { %4587 = vmatprep.subr.mxu0 %v3637_v9  ;;  %4550 = vmatpush3.msra.mxu1 %v3621_v61  ;;  %v3676_v61 = vld [vmem:[%s7382_s5 + $0xd8] sm:$0xff] }
  0xf0   :  { %4588 = vmatpush3.msra.mxu0 %v3637_v9  ;;  %4551 = vmatprep.subr.mxu1 %v3620_v11  ;;  %v3659_v9 = vld [vmem:[%s7387_s10 + $0x250] sm:$0xff] }
  0xf1   :  { %4589 = vmatprep.subr.mxu0 %v3636_v10  ;;  %4552 = vmatpush3.msra.mxu1 %v3620_v11  ;;  %v3675_v11 = vld [vmem:[%s7382_s5 + $0xd0] sm:$0xff] }
  0xf2   :  { %4590 = vmatpush3.msra.mxu0 %v3636_v10  ;;  %4553 = vmatprep.subr.mxu1 %v3619_v13  ;;  %v3658_v10 = vld [vmem:[%s7387_s10 + $0x248] sm:$0xff] }
  0xf3   :  { %4591 = vmatprep.subr.mxu0 %v3635_v0  ;;  %4554 = vmatpush3.msra.mxu1 %v3619_v13  ;;  %v3674_v13 = vld [vmem:[%s7382_s5 + $0xc8] sm:$0xff] }
  0xf4   :  { %4592 = vmatpush3.msra.mxu0 %v3635_v0  ;;  %4555 = vmatprep.subr.mxu1 %v3618_v2  ;;  %v3657_v0 = vld [vmem:[%s7387_s10 + $0x240] sm:$0xff] }
  0xf5   :  { %4593 = vmatprep.subr.mxu0 %v3634_v3  ;;  %4556 = vmatpush3.msra.mxu1 %v3618_v2  ;;  %v3673_v2 = vld [vmem:[%s7382_s5 + $0xc0] sm:$0xff] }
  0xf6   :  { %4594 = vmatpush3.msra.mxu0 %v3634_v3  ;;  %4557 = vmatprep.subr.mxu1 %v3617_v34  ;;  %v3656_v3 = vld [vmem:[%s7387_s10 + $0x238] sm:$0xff] }
  0xf7   :  { %4595 = vmatprep.subr.mxu0 %v3633_v35  ;;  %4558 = vmatpush3.msra.mxu1 %v3617_v34  ;;  %v3672_v34 = vld [vmem:[%s7382_s5 + $0xb8] sm:$0xff] }
  0xf8   :  { %4559 = vmatprep.mubr.f32.mxu1 %v5437_v6  ;;  %4596 = vmatpush3.msra.mxu0 %v3633_v35  ;;  %v3655_v35 = vld [vmem:[%s7387_s10 + $0x230] sm:$0xff] }
  0xf9   :  { %4560 = vmatmul.mubr.f32.vlgmr.msra.gmra.mxu1 %v5557_v40  ;;  %4598 = vmatmul.mubr.f32.vlgmr.msra.gmra.mxu0 %v5779_v49 }
  0xfa   :  { %4603 = vmatprep.subr.mxu1 %v3664_v36  ;;  %4641 = vmatprep.subr.mxu0 %v3680_v37 }
  0xfb   :  { %4600 = vmatprep.mubr.f32.mxu0 %v5800_v1  ;;  %4604 = vmatpush3.msra.mxu1 %v3664_v36  ;;  %v3671_v36 = vld [vmem:[%s7382_s5 + $0xb0] sm:$0xff] }
  0xfc   :  { %4642 = vmatpush3.msra.mxu0 %v3680_v37  ;;  %4605 = vmatprep.subr.mxu1 %v3663_v38  ;;  %v3654_v37 = vld [vmem:[%s7387_s10 + $0x228] sm:$0xff] }
  0xfd   :  { %4643 = vmatprep.subr.mxu0 %v3679_v45  ;;  %4562 = vmatprep.mubr.f32.mxu1 %v5613_v57 }
  0xfe   :  { %4606 = vmatpush3.msra.mxu1 %v3663_v38  ;;  %4644 = vmatpush3.msra.mxu0 %v3679_v45  ;;  %v3670_v38 = vld [vmem:[%s7382_s5 + $0xa8] sm:$0xff]  ;;  %v3653_v45 = vld [vmem:[%s7387_s10 + $0x220] sm:$0xff] }
  0xff   :  { %4563 = vmatmul.mubr.f32.gmra.mxu1 %v5625_v60  ;;  %4601 = vmatmul.mubr.f32.gmra.mxu0 %v5804_v5 }
 0x100   :  { %4607 = vmatprep.subr.mxu1 %v3662_v46  ;;  %4645 = vmatprep.subr.mxu0 %v3678_v54 }
 0x101   :  { %4608 = vmatpush3.msra.mxu1 %v3662_v46  ;;  %4646 = vmatpush3.msra.mxu0 %v3678_v54  ;;  %v3669_v46 = vld [vmem:[%s7382_s5 + $0xa0] sm:$0xff]  ;;  %v3652_v54 = vld [vmem:[%s7387_s10 + $0x218] sm:$0xff] }
 0x102   :  { %4609 = vmatprep.subr.mxu1 %v3661_v55  ;;  %4647 = vmatprep.subr.mxu0 %v3677_v56 }
 0x103   :  { %4610 = vmatpush3.msra.mxu1 %v3661_v55  ;;  %4648 = vmatpush3.msra.mxu0 %v3677_v56  ;;  %v1189_v55 = vpop.permute.xlu1 %1188  ;;  %v3668_v56 = vld [vmem:[%s7382_s5 + $0x98] sm:$0xff] }
 0x104   :  { %4611 = vmatprep.subr.mxu1 %v3660_v58  ;;  %4649 = vmatprep.subr.mxu0 %v3676_v61 }
 0x105   :  { %4612 = vmatpush3.msra.mxu1 %v3660_v58  ;;  %4650 = vmatpush3.msra.mxu0 %v3676_v61  ;;  %v3651_v58 = vld [vmem:[%s7387_s10 + $0x210] sm:$0xff] }
 0x106   :  { %4613 = vmatprep.subr.mxu1 %v3659_v9  ;;  %4651 = vmatprep.subr.mxu0 %v3675_v11  ;;  %v3667_v61 = vld [vmem:[%s7382_s5 + $0x90] sm:$0xff] }
 0x107   :  { %4614 = vmatpush3.msra.mxu1 %v3659_v9  ;;  %4652 = vmatpush3.msra.mxu0 %v3675_v11  ;;  %v3650_v9 = vld [vmem:[%s7387_s10 + $0x208] sm:$0xff] }
 0x108   :  { %4615 = vmatprep.subr.mxu1 %v3658_v10  ;;  %4653 = vmatprep.subr.mxu0 %v3674_v13  ;;  %v3666_v11 = vld [vmem:[%s7382_s5 + $0x88] sm:$0xff] }
 0x109   :  { %4616 = vmatpush3.msra.mxu1 %v3658_v10  ;;  %4654 = vmatpush3.msra.mxu0 %v3674_v13  ;;  %v1193_v10 = vpop.permute.xlu0 %1192  ;;  %v3649_v13 = vld [vmem:[%s7387_s10 + $0x200] sm:$0xff] }
 0x10a   :  { %4617 = vmatprep.subr.mxu1 %v3657_v0  ;;  %4655 = vmatprep.subr.mxu0 %v3673_v2 }
 0x10b   :  { %4618 = vmatpush3.msra.mxu1 %v3657_v0  ;;  %4656 = vmatpush3.msra.mxu0 %v3673_v2  ;;  %v1203_v0 = vmul.f32 %v1189_v55, %v5882_v33  ;;  %v1197_v2 = vpop.permute.xlu1 %1196  ;;  %v1424_v33 = vld [vmem:[%s7382_s5 + $0x78] sm:$0xff] }
 0x10c   :  { %4619 = vmatprep.subr.mxu1 %v3656_v3  ;;  %4657 = vmatprep.subr.mxu0 %v3672_v34  ;;  %v1420_v55 = vld [vmem:[%s7382_s5 + $0x58] sm:$0xff] }
 0x10d   :  { %4620 = vmatpush3.msra.mxu1 %v3656_v3  ;;  %4658 = vmatpush3.msra.mxu0 %v3672_v34  ;;  %v3665_v3 = vld [vmem:[%s7382_s5 + $0x80] sm:$0xff]  ;;  %v1204_v34 = vmul.f32 %v1193_v10, %v5891_v39 }
 0x10e   :  { %4621 = vmatprep.subr.mxu1 %v3655_v35  ;;  %4659 = vmatprep.subr.mxu0 %v3671_v36 }
 0x10f   :  { %4622 = vmatpush3.msra.mxu1 %v3655_v35  ;;  %4660 = vmatpush3.msra.mxu0 %v3671_v36  ;;  %v1205_v35 = vmul.f32 %v1197_v2, %v5900_v50  ;;  %v3696_v36 = vld [vmem:[%s7382_s5 + $0x178] sm:$0xff]  ;;  %v1201_v39 = vpop.permute.xlu1 %1200  ;;  %v1423_v50 = vld [vmem:[%s7382_s5 + $0x70] sm:$0xff] }
 0x110   :  { %4623 = vmatprep.subr.mxu1 %v3654_v37  ;;  %4661 = vmatprep.subr.mxu0 %v3670_v38  ;;  %v1416_v2 = vld [vmem:[%s7382_s5 + $0x38] sm:$0xff] }
 0x111   :  { %4624 = vmatpush3.msra.mxu1 %v3654_v37  ;;  %4662 = vmatpush3.msra.mxu0 %v3670_v38  ;;  %v1186_v37 = vld [vmem:[#allocation2 + $0x24] sm:$0xff]  ;;  %v3695_v38 = vld [vmem:[%s7382_s5 + $0x170] sm:$0xff] }
 0x112   :  { %4625 = vmatprep.subr.mxu1 %v3653_v45  ;;  %4663 = vmatprep.subr.mxu0 %v3669_v46 }
 0x113   :  { %4626 = vmatpush3.msra.mxu1 %v3653_v45  ;;  %4664 = vmatpush3.msra.mxu0 %v3669_v46  ;;  %v1206_v45 = vmul.f32 %v1201_v39, %v1186_v37  ;;  %v3694_v46 = vld [vmem:[%s7382_s5 + $0x168] sm:$0xff]  ;;  %v6147_v10 = vpop.permute.xlu1 %1394 }
 0x114   :  { %4627 = vmatprep.subr.mxu1 %v3652_v54  ;;  %4665 = vmatprep.subr.mxu0 %v3668_v56  ;;  %v1414_v39 = vld [vmem:[%s7382_s5 + $0x28] sm:$0xff] }
 0x115   :  { %4628 = vmatpush3.msra.mxu1 %v3652_v54  ;;  %4666 = vmatpush3.msra.mxu0 %v3668_v56  ;;  %v1421_v54 = vld [vmem:[%s7382_s5 + $0x60] sm:$0xff]  ;;  %v3692_v56 = vld [vmem:[%s7382_s5 + $0x158] sm:$0xff]  ;;  %v3686_v37 = vld [vmem:[%s7382_s5 + $0x128] sm:$0xff] }
 0x116   :  { %4629 = vmatprep.subr.mxu1 %v3651_v58  ;;  %4667 = vmatprep.subr.mxu0 %v3667_v61 }
 0x117   :  { %4630 = vmatpush3.msra.mxu1 %v3651_v58  ;;  %4668 = vmatpush3.msra.mxu0 %v3667_v61  ;;  %v1419_v58 = vld [vmem:[%s7382_s5 + $0x50] sm:$0xff] }
 0x118   :  { %4631 = vmatprep.subr.mxu1 %v3650_v9  ;;  %4669 = vmatprep.subr.mxu0 %v3666_v11  ;;  %v3691_v61 = vld [vmem:[%s7382_s5 + $0x150] sm:$0xff] }
 0x119   :  { %4632 = vmatpush3.msra.mxu1 %v3650_v9  ;;  %4670 = vmatpush3.msra.mxu0 %v3666_v11  ;;  %v1418_v9 = vld [vmem:[%s7382_s5 + $0x48] sm:$0xff] }
 0x11a   :  { %4633 = vmatprep.subr.mxu1 %v3649_v13  ;;  %4671 = vmatprep.subr.mxu0 %v3665_v3  ;;  %v3690_v11 = vld [vmem:[%s7382_s5 + $0x148] sm:$0xff] }
 0x11b   :  { %4634 = vmatpush3.msra.mxu1 %v3649_v13  ;;  %4635 = vmatprep.mubr.f32.mxu1 %v1203_v0  ;;  %v1417_v13 = vld [vmem:[%s7382_s5 + $0x40] sm:$0xff] }
 0x11c   :  { %4672 = vmatpush3.msra.mxu0 %v3665_v3  ;;  %4636 = vmatmul.mubr.f32.vlgmr.msra.gmra.mxu1 %v1204_v34  ;;  %v3689_v0 = vld [vmem:[%s7382_s5 + $0x140] sm:$0xff]  ;;  %v3688_v3 = vld [vmem:[%s7382_s5 + $0x138] sm:$0xff]  ;;  %v1415_v34 = vld [vmem:[%s7382_s5 + $0x30] sm:$0xff] }
 0x11d   :  { %4673 = vmatprep.mubr.f32.mxu0 %v5437_v6  ;;  %4679 = vmatprep.subr.mxu1 %v1424_v33  ;;  %v1422_v6 = vld [vmem:[%s7382_s5 + $0x68] sm:$0xff] }
 0x11e   :  { %4717 = vmatprep.subr.mxu0 %v3696_v36  ;;  %4638 = vmatprep.mubr.f32.mxu1 %v1205_v35  ;;  %v3687_v35 = vld [vmem:[%s7382_s5 + $0x130] sm:$0xff] }
 0x11f   :  { %4674 = vmatmul.mubr.f32.vlgmr.msra.gmra.mxu0 %v5557_v40  ;;  %4680 = vmatpush3.msra.mxu1 %v1424_v33  ;;  %v3693_v40 = vld [vmem:[%s7382_s5 + $0x160] sm:$0xff]  ;;  %v1399_v33 = vpop.permute.xlu1 %1398 }
 0x120   :  { %4718 = vmatpush3.msra.mxu0 %v3696_v36  ;;  %4681 = vmatprep.subr.mxu1 %v1423_v50  ;;  %v1391_v36 = vpop.permute.xlu0 %1390 }
 0x121   :  { %4719 = vmatprep.subr.mxu0 %v3695_v38  ;;  %4682 = vmatpush3.msra.mxu1 %v1423_v50  ;;  %v1413_v50 = vld [vmem:[%s7382_s5 + $0x20] sm:$0xff] }
 0x122   :  { %4720 = vmatpush3.msra.mxu0 %v3695_v38  ;;  %4639 = vmatmul.mubr.f32.gmra.mxu1 %v1206_v45  ;;  %v3685_v38 = vld [vmem:[%s7382_s5 + $0x120] sm:$0xff]  ;;  %v3684_v45 = vld [vmem:[%s7382_s5 + $0x118] sm:$0xff] }
 0x123   :  { %4683 = vmatprep.subr.mxu1 %v1422_v6  ;;  %4721 = vmatprep.subr.mxu0 %v3694_v46 }
 0x124   :  { %4684 = vmatpush3.msra.mxu1 %v1422_v6  ;;  %4722 = vmatpush3.msra.mxu0 %v3694_v46  ;;  %v1412_v6 = vld [vmem:[%s7382_s5 + $0x18] sm:$0xff]  ;;  %v1618_v46 = vpop.permute.xlu1 %1617 }
 0x125   :  { %4685 = vmatprep.subr.mxu1 %v1421_v54  ;;  %4723 = vmatprep.subr.mxu0 %v3693_v40 }
 0x126   :  { %4686 = vmatpush3.msra.mxu1 %v1421_v54  ;;  %4724 = vmatpush3.msra.mxu0 %v3693_v40  ;;  %v1403_v54 = vpop.permute.xlu0 %1402  ;;  %v1411_v40 = vld [vmem:[%s7382_s5 + $0x10] sm:$0xff] }
 0x127   :  { %4687 = vmatprep.subr.mxu1 %v1420_v55  ;;  %4725 = vmatprep.subr.mxu0 %v3692_v56 }
 0x128   :  { %4688 = vmatpush3.msra.mxu1 %v1420_v55  ;;  %4726 = vmatpush3.msra.mxu0 %v3692_v56  ;;  %v3683_v55 = vld [vmem:[%s7382_s5 + $0x110] sm:$0xff]  ;;  %v1385_v56 = vld [vmem:[#allocation2 + $0x7] sm:$0xff] }
 0x129   :  { %4689 = vmatprep.subr.mxu1 %v1419_v58  ;;  %4727 = vmatprep.subr.mxu0 %v3691_v61 }
 0x12a   :  { %4690 = vmatpush3.msra.mxu1 %v1419_v58  ;;  %4728 = vmatpush3.msra.mxu0 %v3691_v61  ;;  %v1410_v58 = vld [vmem:[%s7382_s5 + $0x8] sm:$0xff] }
 0x12b   :  { %4691 = vmatprep.subr.mxu1 %v1418_v9  ;;  %4729 = vmatprep.subr.mxu0 %v3690_v11  ;;  %v1386_v61 = vld [vmem:[#allocation2 + $0xf] sm:$0xff] }
 0x12c   :  { %4692 = vmatpush3.msra.mxu1 %v1418_v9  ;;  %4730 = vmatpush3.msra.mxu0 %v3690_v11  ;;  %v1612_v9 = vld [vmem:[#allocation2 + $0x9] sm:$0xff] }
 0x12d   :  { %4693 = vmatprep.subr.mxu1 %v1417_v13  ;;  %4731 = vmatprep.subr.mxu0 %v3689_v0  ;;  %v3682_v11 = vld [vmem:[%s7382_s5 + $0x108] sm:$0xff] }
 0x12e   :  { %4694 = vmatpush3.msra.mxu1 %v1417_v13  ;;  %4732 = vmatpush3.msra.mxu0 %v3689_v0  ;;  %v1626_v13 = vpop.permute.xlu1 %1625  ;;  %v1613_v0 = vld [vmem:[#allocation2 + $0x11] sm:$0xff] }
 0x12f   :  { %4695 = vmatprep.subr.mxu1 %v1416_v2  ;;  %4733 = vmatprep.subr.mxu0 %v3688_v3 }
 0x130   :  { %4696 = vmatpush3.msra.mxu1 %v1416_v2  ;;  %4734 = vmatpush3.msra.mxu0 %v3688_v3  ;;  %v1622_v2 = vpop.permute.xlu0 %1621  ;;  %v1409_v3 = vld [vmem:[%s7382_s5] sm:$0xff] }
 0x131   :  { %4697 = vmatprep.subr.mxu1 %v1415_v34  ;;  %4735 = vmatprep.subr.mxu0 %v3687_v35 }
 0x132   :  { %4698 = vmatpush3.msra.mxu1 %v1415_v34  ;;  %4736 = vmatpush3.msra.mxu0 %v3687_v35  ;;  %v1387_v34 = vld [vmem:[#allocation2 + $0x17] sm:$0xff]  ;;  %v1405_v35 = vmul.f32 %v1391_v36, %v1385_v56 }
 0x133   :  { %4699 = vmatprep.subr.mxu1 %v1414_v39  ;;  %4737 = vmatprep.subr.mxu0 %v3686_v37  ;;  %v1614_v36 = vld [vmem:[#allocation2 + $0x19] sm:$0xff] }
 0x134   :  { %4700 = vmatpush3.msra.mxu1 %v1414_v39  ;;  %4738 = vmatpush3.msra.mxu0 %v3686_v37  ;;  %v6206_v39 = vmul.f32 %v6147_v10, %v1386_v61  ;;  %v6208_v37 = vmul.f32 %v1618_v46, %v1612_v9  ;;  %v1827_v10 = vld [vmem:[%s7384_s7 + $0x78] sm:$0xff]  ;;  %v6222_v46 = vmul.f32 %v1626_v13, %v1614_v36  ;;  %v3710_v61 = vld [vmem:[%s7384_s7 + $0xe8] sm:$0xff] }
 0x135   :  { %4701 = vmatprep.subr.mxu1 %v1413_v50  ;;  %4739 = vmatprep.subr.mxu0 %v3685_v38  ;;  %v1825_v9 = vld [vmem:[%s7384_s7 + $0x68] sm:$0xff]  ;;  %v3708_v13 = vld [vmem:[%s7384_s7 + $0xd8] sm:$0xff] }
 0x136   :  { %4702 = vmatpush3.msra.mxu1 %v1413_v50  ;;  %4740 = vmatpush3.msra.mxu0 %v3685_v38  ;;  %v6210_v50 = vmul.f32 %v1622_v2, %v1613_v0  ;;  %v6212_v38 = vmul.f32 %v1399_v33, %v1387_v34  ;;  %v1615_v33 = vld [vmem:[#allocation2 + $0x21] sm:$0xff]  ;;  %v1823_v0 = vld [vmem:[%s7384_s7 + $0x58] sm:$0xff]  ;;  %v3707_v2 = vld [vmem:[%s7384_s7 + $0xd0] sm:$0xff] }
 0x137   :  { %4703 = vmatprep.subr.mxu1 %v1412_v6  ;;  %4741 = vmatprep.subr.mxu0 %v3684_v45  ;;  %v1821_v34 = vld [vmem:[%s7384_s7 + $0x48] sm:$0xff]  ;;  %v3704_v36 = vld [vmem:[%s7384_s7 + $0xb8] sm:$0xff] }
 0x138   :  { %4704 = vmatpush3.msra.mxu1 %v1412_v6  ;;  %4742 = vmatpush3.msra.mxu0 %v3684_v45  ;;  %v1630_v6 = vpop.permute.xlu1 %1629  ;;  %v1388_v45 = vld [vmem:[#allocation2 + $0x1f] sm:$0xff] }
 0x139   :  { %4705 = vmatprep.subr.mxu1 %v1411_v40  ;;  %4743 = vmatprep.subr.mxu0 %v3683_v55  ;;  %v6232_v56 = vmul.f32 %v1630_v6, %v1615_v33  ;;  %v1818_v6 = vld [vmem:[%s7384_s7 + $0x30] sm:$0xff]  ;;  %v3702_v33 = vld [vmem:[%s7384_s7 + $0xa8] sm:$0xff] }
 0x13a   :  { %4676 = vmatprep.mubr.f32.mxu0 %v5613_v57  ;;  %4706 = vmatpush3.msra.mxu1 %v1411_v40  ;;  %v3681_v57 = vld [vmem:[%s7382_s5 + $0x100] sm:$0xff]  ;;  %v3711_v40 = vld [vmem:[%s7384_s7 + $0xf0] sm:$0xff] }
 0x13b   :  { %4744 = vmatpush3.msra.mxu0 %v3683_v55  ;;  %4707 = vmatprep.subr.mxu1 %v1410_v58  ;;  %v1826_v55 = vld [vmem:[%s7384_s7 + $0x70] sm:$0xff] }
 0x13c   :  { %4677 = vmatmul.mubr.f32.gmra.mxu0 %v5625_v60  ;;  %4745 = vmatprep.subr.mxu0 %v3682_v11  ;;  %v3712_v60 = vld [vmem:[%s7384_s7 + $0xf8] sm:$0xff] }
 0x13d   :  { %4708 = vmatpush3.msra.mxu1 %v1410_v58  ;;  %4746 = vmatpush3.msra.mxu0 %v3682_v11  ;;  %v6234_v58 = vmul.f32 %v1403_v54, %v1388_v45  ;;  %v3709_v54 = vld [vmem:[%s7384_s7 + $0xe0] sm:$0xff]  ;;  %v1817_v45 = vld [vmem:[%s7384_s7 + $0x28] sm:$0xff] }
 0x13e   :  { %4709 = vmatprep.subr.mxu1 %v1409_v3  ;;  %4747 = vmatprep.subr.mxu0 %v3681_v57  ;;  %v1824_v11 = vld [vmem:[%s7384_s7 + $0x60] sm:$0xff] }
 0x13f   :  { %4710 = vmatpush3.msra.mxu1 %v1409_v3  ;;  %4711 = vmatprep.mubr.f32.mxu1 %v1405_v35  ;;  %v1822_v3 = vld [vmem:[%s7384_s7 + $0x50] sm:$0xff] }
 0x140   :  { %4748 = vmatpush3.msra.mxu0 %v3681_v57  ;;  %4749 = vmatprep.mubr.f32.mxu0 %v6208_v37  ;;  %v1820_v57 = vld [vmem:[%s7384_s7 + $0x40] sm:$0xff] }
 0x141   :  { %4712 = vmatmul.mubr.f32.vlgmr.msra.gmra.mxu1 %v6206_v39  ;;  %4750 = vmatmul.mubr.f32.vlgmr.msra.gmra.mxu0 %v6210_v50 }
 0x142   :  { %4755 = vmatprep.subr.mxu1 %v3712_v60  ;;  %4793 = vmatprep.subr.mxu0 %v1827_v10 }
 0x143   :  { %4714 = vmatprep.mubr.f32.mxu1 %v6212_v38  ;;  %4756 = vmatpush3.msra.mxu1 %v3712_v60  ;;  %v1819_v60 = vld [vmem:[%s7384_s7 + $0x38] sm:$0xff] }
 0x144   :  { %4794 = vmatpush3.msra.mxu0 %v1827_v10  ;;  %4757 = vmatprep.subr.mxu1 %v3711_v40  ;;  %v3703_v10 = vld [vmem:[%s7384_s7 + $0xb0] sm:$0xff] }
 0x145   :  { %4795 = vmatprep.subr.mxu0 %v1826_v55  ;;  %4752 = vmatprep.mubr.f32.mxu0 %v6222_v46 }
 0x146   :  { %4758 = vmatpush3.msra.mxu1 %v3711_v40  ;;  %4796 = vmatpush3.msra.mxu0 %v1826_v55  ;;  %v3701_v40 = vld [vmem:[%s7384_s7 + $0xa0] sm:$0xff] }
 0x147   :  { %4715 = vmatmul.mubr.f32.gmra.mxu1 %v6234_v58  ;;  %4753 = vmatmul.mubr.f32.gmra.mxu0 %v6232_v56  ;;  %v1816_v55 = vld [vmem:[%s7384_s7 + $0x20] sm:$0xff] }
 0x148   :  { %4759 = vmatprep.subr.mxu1 %v3710_v61  ;;  %4797 = vmatprep.subr.mxu0 %v1825_v9 }
 0x149   :  { %4760 = vmatpush3.msra.mxu1 %v3710_v61  ;;  %4787 = vmatprep.mubr.f32.mxu1 %v1405_v35  ;;  %v3705_v35 = vld [vmem:[%s7384_s7 + $0xc0] sm:$0xff]  ;;  %v3700_v61 = vld [vmem:[%s7384_s7 + $0x98] sm:$0xff] }
 0x14a   :  { %4798 = vmatpush3.msra.mxu0 %v1825_v9  ;;  %4825 = vmatprep.mubr.f32.mxu0 %v5773_v44  ;;  %v3706_v44 = vld [vmem:[%s7384_s7 + $0xc8] sm:$0xff]  ;;  %v1815_v9 = vld [vmem:[%s7384_s7 + $0x18] sm:$0xff] }
 0x14b   :  { %4761 = vmatprep.subr.mxu1 %v3709_v54  ;;  %4799 = vmatprep.subr.mxu0 %v1824_v11 }
 0x14c   :  { %4762 = vmatpush3.msra.mxu1 %v3709_v54  ;;  %4800 = vmatpush3.msra.mxu0 %v1824_v11  ;;  %v3699_v54 = vld [vmem:[%s7384_s7 + $0x90] sm:$0xff] }
 0x14d   :  { %4763 = vmatprep.subr.mxu1 %v3708_v13  ;;  %4801 = vmatprep.subr.mxu0 %v1823_v0  ;;  %v1814_v11 = vld [vmem:[%s7384_s7 + $0x10] sm:$0xff] }
 0x14e   :  { %4764 = vmatpush3.msra.mxu1 %v3708_v13  ;;  %4802 = vmatpush3.msra.mxu0 %v1823_v0  ;;  %v3698_v13 = vld [vmem:[%s7384_s7 + $0x88] sm:$0xff] }
 0x14f   :  { %4765 = vmatprep.subr.mxu1 %v3707_v2  ;;  %4803 = vmatprep.subr.mxu0 %v1822_v3  ;;  %v1813_v0 = vld [vmem:[%s7384_s7 + $0x8] sm:$0xff] }
 0x150   :  { %4766 = vmatpush3.msra.mxu1 %v3707_v2  ;;  %4804 = vmatpush3.msra.mxu0 %v1822_v3  ;;  %v3697_v2 = vld [vmem:[%s7384_s7 + $0x80] sm:$0xff] }
 0x151   :  { %4767 = vmatprep.subr.mxu1 %v3706_v44  ;;  %4805 = vmatprep.subr.mxu0 %v1821_v34  ;;  %v1812_v3 = vld [vmem:[%s7384_s7] sm:$0xff] }
 0x152   :  { %4768 = vmatpush3.msra.mxu1 %v3706_v44  ;;  %4806 = vmatpush3.msra.mxu0 %v1821_v34  ;;  %v3728_v44 = vld [vmem:[%s7384_s7 + $0x178] sm:$0xff]  ;;  %v4371_v34 = vpop.f32.mrf.mxu0 }
 0x153   :  { %4769 = vmatprep.subr.mxu1 %v3705_v35  ;;  %4807 = vmatprep.subr.mxu0 %v1820_v57 }
 0x154   :  { %4770 = vmatpush3.msra.mxu1 %v3705_v35  ;;  %4808 = vmatpush3.msra.mxu0 %v1820_v57  ;;  %v3744_v35 = vld [vmem:[%s7384_s7 + $0x1f8] sm:$0xff]  ;;  %v3727_v57 = vld [vmem:[%s7384_s7 + $0x170] sm:$0xff] }
 0x155   :  { %4771 = vmatprep.subr.mxu1 %v3704_v36  ;;  %4809 = vmatprep.subr.mxu0 %v1819_v60 }
 0x156   :  { %4772 = vmatpush3.msra.mxu1 %v3704_v36  ;;  %4810 = vmatpush3.msra.mxu0 %v1819_v60  ;;  %v3743_v36 = vld [vmem:[%s7384_s7 + $0x1f0] sm:$0xff]  ;;  %v442_v60 = vpop.f32.mrf.mxu0 }
 0x157   :  { %4773 = vmatprep.subr.mxu1 %v3703_v10  ;;  %4811 = vmatprep.subr.mxu0 %v1818_v6 }
 0x158   :  { %4774 = vmatpush3.msra.mxu1 %v3703_v10  ;;  %4812 = vmatpush3.msra.mxu0 %v1818_v6  ;;  %v3741_v10 = vld [vmem:[%s7384_s7 + $0x1e0] sm:$0xff] }
 0x159   :  { %4775 = vmatprep.subr.mxu1 %v3702_v33  ;;  %4813 = vmatprep.subr.mxu0 %v1817_v45 }
 0x15a   :  { %4776 = vmatpush3.msra.mxu1 %v3702_v33  ;;  %4814 = vmatpush3.msra.mxu0 %v1817_v45  ;;  %v3723_v33 = vld [vmem:[%s7384_s7 + $0x150] sm:$0xff]  ;;  %v3722_v45 = vld [vmem:[%s7384_s7 + $0x148] sm:$0xff] }
 0x15b   :  { %4777 = vmatprep.subr.mxu1 %v3701_v40  ;;  %4815 = vmatprep.subr.mxu0 %v1816_v55 }
 0x15c   :  { %4778 = vmatpush3.msra.mxu1 %v3701_v40  ;;  %4816 = vmatpush3.msra.mxu0 %v1816_v55  ;;  %v3738_v40 = vld [vmem:[%s7384_s7 + $0x1c8] sm:$0xff] }
 0x15d   :  { %4779 = vmatprep.subr.mxu1 %v3700_v61  ;;  %4817 = vmatprep.subr.mxu0 %v1815_v9 }
 0x15e   :  { %4780 = vmatpush3.msra.mxu1 %v3700_v61  ;;  %4818 = vmatpush3.msra.mxu0 %v1815_v9 }
 0x15f   :  { %4781 = vmatprep.subr.mxu1 %v3699_v54  ;;  %4819 = vmatprep.subr.mxu0 %v1814_v11 }
 0x160   :  { %4782 = vmatpush3.msra.mxu1 %v3699_v54  ;;  %4820 = vmatpush3.msra.mxu0 %v1814_v11  ;;  %v3721_v54 = vld [vmem:[%s7384_s7 + $0x140] sm:$0xff] }
 0x161   :  { %4783 = vmatprep.subr.mxu1 %v3698_v13  ;;  %4821 = vmatprep.subr.mxu0 %v1813_v0  ;;  %v3737_v11 = vld [vmem:[%s7384_s7 + $0x1c0] sm:$0xff] }
 0x162   :  { %4784 = vmatpush3.msra.mxu1 %v3698_v13  ;;  %4822 = vmatpush3.msra.mxu0 %v1813_v0 }
 0x163   :  { %4785 = vmatprep.subr.mxu1 %v3697_v2  ;;  %4823 = vmatprep.subr.mxu0 %v1812_v3 }
 0x164   :  { %4786 = vmatpush3.msra.mxu1 %v3697_v2  ;;  %4824 = vmatpush3.msra.mxu0 %v1812_v3 }
 0x165   :  { %4788 = vmatmul.mubr.f32.vlgmr.msra.gmra.mxu1 %v6206_v39  ;;  %4826 = vmatmul.mubr.f32.vlgmr.msra.gmra.mxu0 %v5771_v43  ;;  %v3726_v43 = vld [vmem:[%s7384_s7 + $0x168] sm:$0xff] }
 0x166   :  { %4831 = vmatprep.subr.mxu1 %v3728_v44  ;;  %4869 = vmatprep.subr.mxu0 %v3744_v35  ;;  %v3742_v39 = vld [vmem:[%s7384_s7 + $0x1e8] sm:$0xff] }
 0x167   :  { %4790 = vmatprep.mubr.f32.mxu1 %v6212_v38  ;;  %4828 = vmatprep.mubr.f32.mxu0 %v5775_v47  ;;  %v4374_v38 = vpop.f32.mrf.mxu0  ;;  %v3725_v47 = vld [vmem:[%s7384_s7 + $0x160] sm:$0xff] }
 0x168   :  { %4832 = vmatpush3.msra.mxu1 %v3728_v44  ;;  %4870 = vmatpush3.msra.mxu0 %v3744_v35  ;;  %v3720_v44 = vld [vmem:[%s7384_s7 + $0x138] sm:$0xff] }
 0x169   :  { %4833 = vmatprep.subr.mxu1 %v3727_v57  ;;  %4871 = vmatprep.subr.mxu0 %v3743_v36  ;;  %v452_v6 = vpop.f32.mrf.mxu0 }
 0x16a   :  { %4834 = vmatpush3.msra.mxu1 %v3727_v57  ;;  %4872 = vmatpush3.msra.mxu0 %v3743_v36  ;;  %v3719_v57 = vld [vmem:[%s7384_s7 + $0x130] sm:$0xff] }
 0x16b   :  { %4791 = vmatmul.mubr.f32.gmra.mxu1 %v6234_v58  ;;  %4829 = vmatmul.mubr.f32.gmra.mxu0 %v5802_v12  ;;  %v3724_v58 = vld [vmem:[%s7384_s7 + $0x158] sm:$0xff]  ;;  %v3735_v36 = vld [vmem:[%s7384_s7 + $0x1b0] sm:$0xff] }
 0x16c   :  { %4835 = vmatprep.subr.mxu1 %v3726_v43  ;;  %4873 = vmatprep.subr.mxu0 %v3742_v39  ;;  %v3740_v12 = vld [vmem:[%s7384_s7 + $0x1d8] sm:$0xff] }
 0x16d   :  { %4836 = vmatpush3.msra.mxu1 %v3726_v43  ;;  %4874 = vmatpush3.msra.mxu0 %v3742_v39  ;;  %v3718_v39 = vld [vmem:[%s7384_s7 + $0x128] sm:$0xff] }
 0x16e   :  { %4901 = vmatprep.mubr.f32.mxu0 %v6208_v37  ;;  %4837 = vmatprep.subr.mxu1 %v3725_v47  ;;  %v3739_v37 = vld [vmem:[%s7384_s7 + $0x1d0] sm:$0xff] }
 0x16f   :  { %4875 = vmatprep.subr.mxu0 %v3741_v10  ;;  %4838 = vmatpush3.msra.mxu1 %v3725_v47  ;;  %v3734_v47 = vld [vmem:[%s7384_s7 + $0x1a8] sm:$0xff] }
 0x170   :  { %4876 = vmatpush3.msra.mxu0 %v3741_v10  ;;  %4839 = vmatprep.subr.mxu1 %v3724_v58 }
 0x171   :  { %4877 = vmatprep.subr.mxu0 %v3740_v12  ;;  %4840 = vmatpush3.msra.mxu1 %v3724_v58  ;;  %v4409_v55 = vpop.f32.mrf.mxu1 }
 0x172   :  { %4878 = vmatpush3.msra.mxu0 %v3740_v12  ;;  %4841 = vmatprep.subr.mxu1 %v3723_v33  ;;  %v533_v61 = vadd.f32 %v4409_v55, %v4371_v34  ;;  %v3736_v34 = vld [vmem:[%s7384_s7 + $0x1b8] sm:$0xff] }
 0x173   :  { %4879 = vmatprep.subr.mxu0 %v3739_v37  ;;  %v4447_v9 = vpop.f32.mrf.mxu0  ;;  %4842 = vmatpush3.msra.mxu1 %v3723_v33  ;;  %v527_v13 = vpop.f32.mrf.mxu1  ;;  %v3733_v33 = vld [vmem:[%s7384_s7 + $0x1a0] sm:$0xff] }
 0x174   :  { %4880 = vmatpush3.msra.mxu0 %v3739_v37  ;;  %4843 = vmatprep.subr.mxu1 %v3722_v45  ;;  %v528_v0 = vadd.f32 %v527_v13, %v442_v60  ;;  %v6379_v2 = vadd.f32 %v4447_v9, %v533_v61  ;;  %v3715_v61 = vld [vmem:[%s7384_s7 + $0x110] sm:$0xff]  ;;  %v3713_v13 = vld [vmem:[%s7384_s7 + $0x100] sm:$0xff] }
 0x175   :  { %4881 = vmatprep.subr.mxu0 %v3738_v40  ;;  %v653_v3 = vpop.f32.mrf.mxu0  ;;  %4844 = vmatpush3.msra.mxu1 %v3722_v45  ;;  %v3731_v9 = vld [vmem:[%s7384_s7 + $0x190] sm:$0xff] }
 0x176   :  { %4882 = vmatpush3.msra.mxu0 %v3738_v40  ;;  %4845 = vmatprep.subr.mxu1 %v3721_v54  ;;  %v6387_v35 = vadd.f32 %v653_v3, %v528_v0  ;;  %v3732_v40 = vld [vmem:[%s7384_s7 + $0x198] sm:$0xff]  ;;  %v3729_v0 = vld [vmem:[%s7384_s7 + $0x180] sm:$0xff] }
 0x177   :  { %4883 = vmatprep.subr.mxu0 %v3737_v11  ;;  %4846 = vmatpush3.msra.mxu1 %v3721_v54  ;;  %v4412_v60 = vpop.f32.mrf.mxu1  ;;  %v3714_v54 = vld [vmem:[%s7384_s7 + $0x108] sm:$0xff]  ;;  %v3760_v3 = vld [vmem:[%s7384_s7 + $0x278] sm:$0xff] }
 0x178   :  { %4884 = vmatpush3.msra.mxu0 %v3737_v11  ;;  %4847 = vmatprep.subr.mxu1 %v3720_v44  ;;  %v543_v43 = vadd.f32 %v4412_v60, %v4374_v38  ;;  %v3717_v38 = vld [vmem:[%s7384_s7 + $0x120] sm:$0xff]  ;;  %v3730_v11 = vld [vmem:[%s7384_s7 + $0x188] sm:$0xff] }
 0x179   :  { %4885 = vmatprep.subr.mxu0 %v3736_v34  ;;  %4848 = vmatpush3.msra.mxu1 %v3720_v44  ;;  %v537_v10 = vpop.f32.mrf.mxu1  ;;  %v5308_v44 = vld [vmem:[#allocation2 + $0x8] sm:$0xff] }
 0x17a   :  { %4886 = vmatpush3.msra.mxu0 %v3736_v34  ;;  %4849 = vmatprep.subr.mxu1 %v3719_v57  ;;  %v538_v58 = vadd.f32 %v537_v10, %v452_v6  ;;  %v3716_v6 = vld [vmem:[%s7384_s7 + $0x118] sm:$0xff]  ;;  %v5309_v34 = vld [vmem:[#allocation2 + $0x10] sm:$0xff]  ;;  %v3758_v60 = vld [vmem:[%s7384_s7 + $0x268] sm:$0xff] }
 0x17b   :  { %4887 = vmatprep.subr.mxu0 %v3735_v36  ;;  %v4450_v12 = vpop.f32.mrf.mxu0  ;;  %4850 = vmatpush3.msra.mxu1 %v3719_v57  ;;  %v3759_v57 = vld [vmem:[%s7384_s7 + $0x270] sm:$0xff] }
 0x17c   :  { %4888 = vmatpush3.msra.mxu0 %v3735_v36  ;;  %v6407_v37 = vadd.f32 %v4450_v12, %v543_v43  ;;  %4851 = vmatprep.subr.mxu1 %v3718_v39  ;;  %v5310_v36 = vld [vmem:[#allocation2 + $0x18] sm:$0xff]  ;;  %v5311_v43 = vld [vmem:[#allocation2 + $0x20] sm:$0xff] }
 0x17d   :  { %4889 = vmatprep.subr.mxu0 %v3734_v47  ;;  %v663_v45 = vpop.f32.mrf.mxu0  ;;  %4852 = vmatpush3.msra.mxu1 %v3718_v39  ;;  %v3755_v39 = vld [vmem:[%s7384_s7 + $0x250] sm:$0xff] }
 0x17e   :  { %4890 = vmatpush3.msra.mxu0 %v3734_v47  ;;  %v6415_v55 = vadd.f32 %v663_v45, %v538_v58  ;;  %4853 = vmatprep.subr.mxu1 %v3717_v38 }
 0x17f   :  { %4891 = vmatprep.subr.mxu0 %v3733_v33  ;;  %4854 = vmatpush3.msra.mxu1 %v3717_v38  ;;  %v3752_v38 = vld [vmem:[%s7384_s7 + $0x238] sm:$0xff] }
 0x180   :  { %4892 = vmatpush3.msra.mxu0 %v3733_v33  ;;  %4855 = vmatprep.subr.mxu1 %v3716_v6 }
 0x181   :  { %4893 = vmatprep.subr.mxu0 %v3732_v40  ;;  %4856 = vmatpush3.msra.mxu1 %v3716_v6  ;;  %v3751_v6 = vld [vmem:[%s7384_s7 + $0x230] sm:$0xff] }
 0x182   :  { %4894 = vmatpush3.msra.mxu0 %v3732_v40  ;;  %4857 = vmatprep.subr.mxu1 %v3715_v61 }
 0x183   :  { %4895 = vmatprep.subr.mxu0 %v3731_v9  ;;  %4858 = vmatpush3.msra.mxu1 %v3715_v61  ;;  %v3750_v61 = vld [vmem:[%s7384_s7 + $0x228] sm:$0xff] }
 0x184   :  { %4896 = vmatpush3.msra.mxu0 %v3731_v9  ;;  %4859 = vmatprep.subr.mxu1 %v3714_v54 }
 0x185   :  { %4897 = vmatprep.subr.mxu0 %v3730_v11  ;;  %4860 = vmatpush3.msra.mxu1 %v3714_v54 }
 0x186   :  { %4898 = vmatpush3.msra.mxu0 %v3730_v11  ;;  %4861 = vmatprep.subr.mxu1 %v3713_v13 }
 0x187   :  { %4899 = vmatprep.subr.mxu0 %v3729_v0  ;;  %4862 = vmatpush3.msra.mxu1 %v3713_v13  ;;  %v3749_v13 = vld [vmem:[%s7384_s7 + $0x220] sm:$0xff] }
 0x188   :  { %4863 = vmatprep.mubr.f32.mxu1 %v5308_v44  ;;  %4900 = vmatpush3.msra.mxu0 %v3729_v0  ;;  %v3748_v44 = vld [vmem:[%s7384_s7 + $0x218] sm:$0xff] }
 0x189   :  { %4864 = vmatmul.mubr.f32.vlgmr.msra.gmra.mxu1 %v5309_v34  ;;  %4902 = vmatmul.mubr.f32.vlgmr.msra.gmra.mxu0 %v6210_v50  ;;  %v3757_v50 = vld [vmem:[%s7384_s7 + $0x260] sm:$0xff]  ;;  %v3747_v34 = vld [vmem:[%s7384_s7 + $0x210] sm:$0xff] }
 0x18a   :  { %4907 = vmatprep.subr.mxu1 %v3760_v3  ;;  %4904 = vmatprep.mubr.f32.mxu0 %v6222_v46  ;;  %v3756_v46 = vld [vmem:[%s7384_s7 + $0x258] sm:$0xff] }
 0x18b   :  { %4908 = vmatpush3.msra.mxu1 %v3760_v3  ;;  %4866 = vmatprep.mubr.f32.mxu1 %v5310_v36  ;;  %v3745_v36 = vld [vmem:[%s7384_s7 + $0x200] sm:$0xff] }
 0x18c   :  { %4909 = vmatprep.subr.mxu1 %v3759_v57 }
 0x18d   :  { %4910 = vmatpush3.msra.mxu1 %v3759_v57  ;;  %4905 = vmatmul.mubr.f32.gmra.mxu0 %v6232_v56  ;;  %v3754_v56 = vld [vmem:[%s7384_s7 + $0x248] sm:$0xff] }
 0x18e   :  { %4867 = vmatmul.mubr.f32.gmra.mxu1 %v5311_v43  ;;  %4911 = vmatprep.subr.mxu1 %v3758_v60  ;;  %v3746_v57 = vld [vmem:[%s7384_s7 + $0x208] sm:$0xff] }
 0x18f   :  { %4939 = vmatprep.mubr.f32.mxu1 %v5777_v48  ;;  %4912 = vmatpush3.msra.mxu1 %v3758_v60  ;;  %v3753_v48 = vld [vmem:[%s7384_s7 + $0x240] sm:$0xff]  ;;  %s5341_s7 = smov 16  }
 0x190   :  { %4913 = vmatprep.subr.mxu1 %v3757_v50 }
 0x191   :  { %4914 = vmatpush3.msra.mxu1 %v3757_v50 }
 0x192   :  { %4915 = vmatprep.subr.mxu1 %v3756_v46 }
 0x193   :  { %4916 = vmatpush3.msra.mxu1 %v3756_v46 }
 0x194   :  { %4917 = vmatprep.subr.mxu1 %v3755_v39 }
 0x195   :  { %v4485_v47 = vpop.f32.mrf.mxu1  ;;  %4918 = vmatpush3.msra.mxu1 %v3755_v39  ;;  %v4523_v10 = vpop.f32.mrf.mxu0 }
 0x196   :  { %4919 = vmatprep.subr.mxu1 %v3754_v56  ;;  %v958_v58 = vadd.f32 %v4523_v10, %v4485_v47 }
 0x197   :  { %v867_v12 = vpop.f32.mrf.mxu1  ;;  %4920 = vmatpush3.msra.mxu1 %v3754_v56  ;;  %v952_v33 = vpop.f32.mrf.mxu0 }
 0x198   :  { %4921 = vmatprep.subr.mxu1 %v3753_v48  ;;  %v953_v45 = vadd.f32 %v952_v33, %v867_v12 }
 0x199   :  { %4922 = vmatpush3.msra.mxu1 %v3753_v48 }
 0x19a   :  { %4923 = vmatprep.subr.mxu1 %v3752_v38 }
 0x19b   :  { %v4488_v40 = vpop.f32.mrf.mxu1  ;;  %4924 = vmatpush3.msra.mxu1 %v3752_v38  ;;  %v4526_v9 = vpop.f32.mrf.mxu0 }
 0x19c   :  { %4925 = vmatprep.subr.mxu1 %v3751_v6  ;;  %v968_v54 = vadd.f32 %v4526_v9, %v4488_v40 }
 0x19d   :  { %v877_v11 = vpop.f32.mrf.mxu1  ;;  %4926 = vmatpush3.msra.mxu1 %v3751_v6  ;;  %v962_v0 = vpop.f32.mrf.mxu0 }
 0x19e   :  { %4927 = vmatprep.subr.mxu1 %v3750_v61  ;;  %v963_v3 = vadd.f32 %v962_v0, %v877_v11 }
 0x19f   :  { %4928 = vmatpush3.msra.mxu1 %v3750_v61 }
 0x1a0   :  { %4929 = vmatprep.subr.mxu1 %v3749_v13 }
 0x1a1   :  { %4930 = vmatpush3.msra.mxu1 %v3749_v13 }
 0x1a2   :  { %4931 = vmatprep.subr.mxu1 %v3748_v44 }
 0x1a3   :  { %4932 = vmatpush3.msra.mxu1 %v3748_v44 }
 0x1a4   :  { %4933 = vmatprep.subr.mxu1 %v3747_v34 }
 0x1a5   :  { %4934 = vmatpush3.msra.mxu1 %v3747_v34 }
 0x1a6   :  { %4935 = vmatprep.subr.mxu1 %v3746_v57 }
 0x1a7   :  { %4936 = vmatpush3.msra.mxu1 %v3746_v57 }
 0x1a8   :  { %4937 = vmatprep.subr.mxu1 %v3745_v36 }
 0x1a9   :  { %4938 = vmatpush3.msra.mxu1 %v3745_v36 }
 0x1aa   :  { %4940 = vmatmul.mubr.f32.vlgmr.msra.gmra.mxu1 %v5779_v49 }
 0x1ab   :  { %4942 = vmatprep.mubr.f32.mxu1 %v5800_v1 }
 0x1ae   :  { %4943 = vmatmul.mubr.f32.gmra.mxu1 %v5804_v5 }
 0x1b9   :  { %v4561_v60 = vpop.f32.mrf.mxu1  ;;  %v4599_v50 = vpop.f32.mrf.mxu0 }
 0x1ba   :  { %v1074_v43 = vadd.f32 %v4561_v60, %v958_v58 }
 0x1bb   :  { %v1054_v46 = vpop.f32.mrf.mxu1  ;;  %v1160_v47 = vpop.f32.mrf.mxu0 }
 0x1bc   :  { %v1180_v39 = vadd.f32 %v4599_v50, %v1074_v43  ;;  %v1073_v56 = vadd.f32 %v1054_v46, %v953_v45 }
 0x1be   :  { %v1179_v48 = vadd.f32 %v1160_v47, %v1073_v56 }
 0x1bf   :  { %v4564_v10 = vpop.f32.mrf.mxu1  ;;  %v4602_v38 = vpop.f32.mrf.mxu0 }
 0x1c0   :  { %v1076_v12 = vadd.f32 %v4564_v10, %v968_v54 }
 0x1c1   :  { %v1064_v33 = vpop.f32.mrf.mxu1  ;;  %v1170_v61 = vpop.f32.mrf.mxu0 }
 0x1c2   :  { %v1182_v6 = vadd.f32 %v4602_v38, %v1076_v12  ;;  %v1075_v40 = vadd.f32 %v1064_v33, %v963_v3 }
 0x1c4   :  { %v1181_v49 = vadd.f32 %v1170_v61, %v1075_v40 }
 0x1dc   :  { %v4637_v9 = vpop.f32.mrf.mxu1 }
 0x1dd   :  { %v6490_v1 = vadd.f32 %v4637_v9, %v1180_v39 }
 0x1de   :  { %v1290_v5 = vpop.f32.mrf.mxu1 }
 0x1df   :  { %v6492_v11 = vadd.f32 %v1290_v5, %v1179_v48  ;;  %v4675_v44 = vpop.f32.mrf.mxu0 }
 0x1e1   :  { %v1508_v54 = vpop.f32.mrf.mxu0 }
 0x1e2   :  { %v4640_v58 = vpop.f32.mrf.mxu1 }
 0x1e3   :  { %v6494_v13 = vadd.f32 %v4640_v58, %v1182_v6 }
 0x1e4   :  { %v1300_v45 = vpop.f32.mrf.mxu1 }
 0x1e5   :  { %v6496_v0 = vadd.f32 %v1300_v45, %v1181_v49 }
 0x1fc   :  { %v4678_v34 = vpop.f32.mrf.mxu0 }
 0x1fe   :  { %v1518_v57 = vpop.f32.mrf.mxu0 }
 0x201   :  { %v4713_v36 = vpop.f32.mrf.mxu1  ;;  %v4751_v3 = vpop.f32.mrf.mxu0 }
 0x202   :  { %v1599_v46 = vadd.f32 %v4713_v36, %v4675_v44 }
 0x203   :  { %v1593_v60 = vpop.f32.mrf.mxu1  ;;  %v1719_v50 = vpop.f32.mrf.mxu0 }
 0x204   :  { %v1594_v43 = vadd.f32 %v1593_v60, %v1508_v54  ;;  %v6500_v10 = vadd.f32 %v4751_v3, %v1599_v46 }
 0x206   :  { %v6498_v56 = vadd.f32 %v1719_v50, %v1594_v43 }
 0x207   :  { %v4716_v39 = vpop.f32.mrf.mxu1  ;;  %v4754_v47 = vpop.f32.mrf.mxu0 }
 0x208   :  { %v1609_v12 = vadd.f32 %v4716_v39, %v4678_v34  ;;  %v1742_v6 = vadd.f32 %v6500_v10, %v6498_v56 }
 0x209   :  { %v1603_v48 = vpop.f32.mrf.mxu1  ;;  %v1729_v33 = vpop.f32.mrf.mxu0 }
 0x20a   :  { %v1604_v38 = vadd.f32 %v1603_v48, %v1518_v57  ;;  %v6506_v61 = vadd.f32 %v4754_v47, %v1609_v12 }
 0x20c   :  { %v6504_v40 = vadd.f32 %v1729_v33, %v1604_v38 }
 0x20e   :  { %v1743_v49 = vadd.f32 %v1742_v6, %v6504_v40 }
 0x210   :  { %v1744_v9 = vadd.f32 %v1743_v49, %v6506_v61 }
 0x212   :  { %v1745_v5 = vrot.slane %v1744_v9, 4 }
 0x214   :  { %v1746_v58 = vadd.f32 %v1745_v5, %v1744_v9 }
 0x216   :  { %v1747_v45 = vrot.slane %v1746_v58, 2 }
 0x218   :  { %v1748_v44 = vadd.f32 %v1747_v45, %v1746_v58 }
 0x21a   :  { %v1749_v54 = vrot.slane %v1748_v44, 1 }
 0x21c   :  { %v1750_v36 = vadd.f32 %v1749_v54, %v1748_v44 }
 0x21e   :  { %1751 = vrot.lane.b32.xlu0 %v1750_v36, %s5331_s25 }
 0x225   :  { %v4789_v34 = vpop.f32.mrf.mxu1  ;;  %v4827_v3 = vpop.f32.mrf.mxu0 }
 0x226   :  { %v2002_v49 = vadd.f32 %v4827_v3, %v4789_v34 }
 0x227   :  { %v1911_v57 = vpop.f32.mrf.mxu1  ;;  %v1996_v43 = vpop.f32.mrf.mxu0 }
 0x228   :  { %v1997_v33 = vadd.f32 %v1996_v43, %v1911_v57 }
 0x22b   :  { %v4792_v60 = vpop.f32.mrf.mxu1  ;;  %v4830_v46 = vpop.f32.mrf.mxu0 }
 0x22c   :  { %v2012_v16 = vadd.f32 %v4830_v46, %v4792_v60 }
 0x22d   :  { %v1921_v50 = vpop.f32.mrf.mxu1  ;;  %v2006_v47 = vpop.f32.mrf.mxu0 }
 0x22e   :  { %v2007_v58 = vadd.f32 %v2006_v47, %v1921_v50 }
 0x249   :  { %v4865_v39 = vpop.f32.mrf.mxu1  ;;  %v4903_v12 = vpop.f32.mrf.mxu0 }
 0x24a   :  { %v2118_v45 = vadd.f32 %v4865_v39, %v2002_v49 }
 0x24b   :  { %v2098_v48 = vpop.f32.mrf.mxu1  ;;  %v2204_v6 = vpop.f32.mrf.mxu0 }
 0x24c   :  { %v2117_v9 = vadd.f32 %v2098_v48, %v1997_v33  ;;  %v2224_v8 = vadd.f32 %v4903_v12, %v2118_v45 }
 0x24d   :  { %v4906_v44 = vpop.f32.mrf.mxu0 }
 0x24e   :  { %v4868_v38 = vpop.f32.mrf.mxu1  ;;  %v2223_v27 = vadd.f32 %v2204_v6, %v2117_v9 }
 0x24f   :  { %v2120_v32 = vadd.f32 %v4868_v38, %v2012_v16  ;;  %v2214_v28 = vpop.f32.mrf.mxu0 }
 0x250   :  { %v2108_v5 = vpop.f32.mrf.mxu1 }
 0x251   :  { %v2119_v4 = vadd.f32 %v2108_v5, %v2007_v58  ;;  %v2226_v3 = vadd.f32 %v4906_v44, %v2120_v32 }
 0x253   :  { %v2225_v14 = vadd.f32 %v2214_v28, %v2119_v4 }
 0x26a   :  { %v4941_v54 = vpop.f32.mrf.mxu1 }
 0x26b   :  { %v6513_v57 = vadd.f32 %v4941_v54, %v2224_v8 }
 0x26c   :  { %v2310_v51 = vpop.f32.mrf.mxu1 }
 0x26d   :  { %v6511_v17 = vadd.f32 %v2310_v51, %v2223_v27 }
 0x26e   :  { %v4944_v18 = vpop.f32.mrf.mxu1 }
 0x26f   :  { %v2333_v43 = vadd.f32 %v6513_v57, %v6511_v17  ;;  %v2332_v39 = vadd.f32 %v4944_v18, %v2226_v3 }
 0x270   :  { %v2320_v34 = vpop.f32.mrf.mxu1 }
 0x271   :  { %v2331_v50 = vadd.f32 %v2320_v34, %v2225_v14 }
 0x273   :  { %v2334_v60 = vadd.f32 %v2333_v43, %v2331_v50 }
 0x275   :  { %v2335_v46 = vadd.f32 %v2334_v60, %v2332_v39 }
 0x277   :  { %v2336_v47 = vrot.slane %v2335_v46, 4 }
 0x279   :  { %v2337_v48 = vadd.f32 %v2336_v47, %v2335_v46 }
 0x27b   :  { %v2338_v12 = vrot.slane %v2337_v48, 2 }
 0x27d   :  { %v2339_v16 = vadd.f32 %v2338_v12, %v2337_v48 }
 0x27f   :  { %v2340_v27 = vrot.slane %v2339_v16, 1 }
 0x281   :  { %v2341_v51 = vadd.f32 %v2340_v27, %v2339_v16 }
 0x283   :  { %2342 = vrot.lane.b32.xlu1 %v2341_v51, %s5331_s25 }
 0x290   :  { %v1752_v4 = vpop.permute.xlu0 %1751 }
 0x291   :  { %v1753_v8 = vadd.f32 %v1752_v4, %v1750_v36 }
 0x293   :  { %1754 = vrot.lane.b32.xlu0 %v1753_v8, %s5341_s7 }
 0x2f5   :  { %v2343_v28 = vpop.permute.xlu1 %2342 }
 0x2f6   :  { %v2344_v32 = vadd.f32 %v2343_v28, %v2341_v51 }
 0x2f8   :  { %2345 = vrot.lane.b32.xlu1 %v2344_v32, %s5341_s7 }
 0x305   :  { %v1755_v14 = vpop.permute.xlu0 %1754 }
 0x306   :  { %v1756_v18 = vadd.f32 %v1755_v14, %v1753_v8 }
 0x308   :  { %1757 = vrot.lane.b32.xlu0 %v1756_v18, %s5342_s9 }
 0x36a   :  { %v2346_v38 = vpop.permute.xlu1 %2345 }
 0x36b   :  { %v2347_v33 = vadd.f32 %v2346_v38, %v2344_v32 }
 0x36d   :  { %2348 = vrot.lane.b32.xlu1 %v2347_v33, %s5342_s9 }
 0x37a   :  { %v1758_v6 = vpop.permute.xlu0 %1757 }
 0x37b   :  { %v1759_v49 = vadd.f32 %v1758_v6, %v1756_v18 }
 0x37d   :  { %1760 = vrot.lane.b32.xlu0 %v1759_v49, %s5343_s0 }
 0x3df   :  { %v2349_v36 = vpop.permute.xlu1 %2348 }
 0x3e0   :  { %v2350_v9 = vadd.f32 %v2349_v36, %v2347_v33 }
 0x3e2   :  { %2351 = vrot.lane.b32.xlu1 %v2350_v9, %s5343_s0 }
 0x3ef   :  { %v1761_v5 = vpop.permute.xlu0 %1760 }
 0x3f0   :  { %v1762_v58 = vadd.f32 %v1761_v5, %v1759_v49 }
 0x3f2   :  { %v1763_v45 = vmul.f32 0.001953125, %v1762_v58 }
 0x3f4   :  { %v1767_v44 = vrot.slane %v1763_v45, %v5671_v15 }
 0x3f6   :  { %v6526_v54 = vsub.f32 %v6498_v56, %v1767_v44  ;;  %v6529_v34 = vsub.f32 %v6500_v10, %v1767_v44  ;;  %v6532_v3 = vsub.f32 %v6504_v40, %v1767_v44  ;;  %v6535_v43 = vsub.f32 %v6506_v61, %v1767_v44 }
 0x3f8   :  { %v1772_v60 = vmul.f32 %v6526_v54, %v6526_v54  ;;  %v1773_v46 = vmul.f32 %v6529_v34, %v6529_v34  ;;  %v1774_v47 = vmul.f32 %v6532_v3, %v6532_v3  ;;  %v1775_v10 = vmul.f32 %v6535_v43, %v6535_v43 }
 0x3fa   :  { %v1776_v56 = vadd.f32 %v1773_v46, %v1772_v60 }
 0x3fc   :  { %v1777_v48 = vadd.f32 %v1776_v56, %v1774_v47 }
 0x3fe   :  { %v1778_v12 = vadd.f32 %v1777_v48, %v1775_v10 }
 0x400   :  { %v1779_v40 = vrot.slane %v1778_v12, 4 }
 0x402   :  { %v1780_v16 = vadd.f32 %v1779_v40, %v1778_v12 }
 0x404   :  { %v1781_v27 = vrot.slane %v1780_v16, 2 }
 0x406   :  { %v1782_v61 = vadd.f32 %v1781_v27, %v1780_v16 }
 0x408   :  { %v1783_v51 = vrot.slane %v1782_v61, 1 }
 0x40a   :  { %v1784_v4 = vadd.f32 %v1783_v51, %v1782_v61  ;;  %v6576_v61 = vld [vmem:[%s7379_s2] sm:$0xff]  ;;  %v3776_v51 = vld [vmem:[%s7383_s6 + $0xf8] sm:$0xff] }
 0x40b   :  { %4945 = vmatprep.subr.mxu0 %v3776_v51 }
 0x40c   :  { %1785 = vrot.lane.b32.xlu0 %v1784_v4, %s5331_s25  ;;  %4946 = vmatpush3.msra.mxu0 %v3776_v51  ;;  %v6662_v51 = vld [vmem:[%s7379_s2 + $0x10] sm:$0xff] }
 0x454   :  { %v2352_v8 = vpop.permute.xlu1 %2351 }
 0x455   :  { %v2353_v28 = vadd.f32 %v2352_v8, %v2350_v9  ;;  %v3774_v8 = vld [vmem:[%s7383_s6 + $0xe8] sm:$0xff] }
 0x457   :  { %v2354_v32 = vmul.f32 0.001953125, %v2353_v28  ;;  %v3773_v28 = vld [vmem:[%s7383_s6 + $0xe0] sm:$0xff] }
 0x459   :  { %v2358_v14 = vrot.slane %v2354_v32, %v5671_v15 }
 0x45b   :  { %v6548_v18 = vsub.f32 %v6511_v17, %v2358_v14  ;;  %v6551_v38 = vsub.f32 %v6513_v57, %v2358_v14  ;;  %v6553_v33 = vsub.f32 %v2331_v50, %v2358_v14  ;;  %v6555_v6 = vsub.f32 %v2332_v39, %v2358_v14  ;;  %v3772_v14 = vld [vmem:[%s7383_s6 + $0xd8] sm:$0xff] }
 0x45d   :  { %v2363_v49 = vmul.f32 %v6548_v18, %v6548_v18  ;;  %v2364_v36 = vmul.f32 %v6551_v38, %v6551_v38  ;;  %v2365_v9 = vmul.f32 %v6553_v33, %v6553_v33  ;;  %v2366_v17 = vmul.f32 %v6555_v6, %v6555_v6 }
 0x45f   :  { %v2367_v5 = vadd.f32 %v2364_v36, %v2363_v49  ;;  %v3771_v36 = vld [vmem:[%s7383_s6 + $0xd0] sm:$0xff] }
 0x461   :  { %v2368_v58 = vadd.f32 %v2367_v5, %v2365_v9  ;;  %v2454_v9 = vld [vmem:[%s7383_s6 + $0x78] sm:$0xff]  ;;  %v6607_v5 = vld [vmem:[%s7379_s2 + $0x8] sm:$0xff] }
 0x462   :  { %4983 = vmatprep.subr.mxu1 %v2454_v9 }
 0x463   :  { %v2369_v57 = vadd.f32 %v2368_v58, %v2366_v17  ;;  %v3770_v17 = vld [vmem:[%s7383_s6 + $0xc8] sm:$0xff]  ;;  %v2453_v58 = vld [vmem:[%s7383_s6 + $0x70] sm:$0xff]  ;;  %4984 = vmatpush3.msra.mxu1 %v2454_v9 }
 0x464   :  { %4985 = vmatprep.subr.mxu1 %v2453_v58  ;;  %v2445_v9 = vld [vmem:[%s7383_s6 + $0x30] sm:$0xff] }
 0x465   :  { %v2370_v45 = vrot.slane %v2369_v57, 4  ;;  %4986 = vmatpush3.msra.mxu1 %v2453_v58  ;;  %v3761_v58 = vld [vmem:[%s7383_s6 + $0x80] sm:$0xff] }
 0x467   :  { %v2371_v50 = vadd.f32 %v2370_v45, %v2369_v57  ;;  %v3769_v57 = vld [vmem:[%s7383_s6 + $0xc0] sm:$0xff]  ;;  %v2452_v45 = vld [vmem:[%s7383_s6 + $0x68] sm:$0xff] }
 0x468   :  { %4987 = vmatprep.subr.mxu1 %v2452_v45 }
 0x469   :  { %v2372_v44 = vrot.slane %v2371_v50, 2  ;;  %4988 = vmatpush3.msra.mxu1 %v2452_v45 }
 0x46b   :  { %v2373_v39 = vadd.f32 %v2372_v44, %v2371_v50  ;;  %v6625_v50 = vld [vmem:[%s7379_s2 + $0x18] sm:$0xff] }
 0x46c   :  { %v3768_v44 = vld [vmem:[%s7383_s6 + $0xb8] sm:$0xff] }
 0x46d   :  { %v2374_v60 = vrot.slane %v2373_v39, 1 }
 0x46f   :  { %v2375_v46 = vadd.f32 %v2374_v60, %v2373_v39  ;;  %v2451_v39 = vld [vmem:[%s7383_s6 + $0x60] sm:$0xff]  ;;  %v3767_v60 = vld [vmem:[%s7383_s6 + $0xb0] sm:$0xff] }
 0x470   :  { %4989 = vmatprep.subr.mxu1 %v2451_v39 }
 0x471   :  { %2376 = vrot.lane.b32.xlu1 %v2375_v46, %s5331_s25  ;;  %4990 = vmatpush3.msra.mxu1 %v2451_v39  ;;  %v2442_v39 = vld [vmem:[%s7383_s6 + $0x18] sm:$0xff] }
 0x47e   :  { %v1786_v47 = vpop.permute.xlu0 %1785 }
 0x47f   :  { %v1787_v56 = vadd.f32 %v1786_v47, %v1784_v4  ;;  %v3775_v4 = vld [vmem:[%s7383_s6 + $0xf0] sm:$0xff]  ;;  %v3766_v47 = vld [vmem:[%s7383_s6 + $0xa8] sm:$0xff] }
 0x480   :  { %4947 = vmatprep.subr.mxu0 %v3775_v4 }
 0x481   :  { %1788 = vrot.lane.b32.xlu0 %v1787_v56, %s5341_s7  ;;  %4948 = vmatpush3.msra.mxu0 %v3775_v4  ;;  %v2447_v4 = vld [vmem:[%s7383_s6 + $0x40] sm:$0xff] }
 0x482   :  { %4949 = vmatprep.subr.mxu0 %v3774_v8 }
 0x483   :  { %4950 = vmatpush3.msra.mxu0 %v3774_v8 }
 0x484   :  { %4951 = vmatprep.subr.mxu0 %v3773_v28 }
 0x485   :  { %4952 = vmatpush3.msra.mxu0 %v3773_v28  ;;  %v3763_v28 = vld [vmem:[%s7383_s6 + $0x90] sm:$0xff] }
 0x486   :  { %4953 = vmatprep.subr.mxu0 %v3772_v14 }
 0x487   :  { %4954 = vmatpush3.msra.mxu0 %v3772_v14  ;;  %v3762_v14 = vld [vmem:[%s7383_s6 + $0x88] sm:$0xff] }
 0x488   :  { %4955 = vmatprep.subr.mxu0 %v3771_v36 }
 0x489   :  { %4956 = vmatpush3.msra.mxu0 %v3771_v36 }
 0x48a   :  { %4957 = vmatprep.subr.mxu0 %v3770_v17 }
 0x48b   :  { %4958 = vmatpush3.msra.mxu0 %v3770_v17  ;;  %v7418_v17 = vmov 7  }
 0x48c   :  { %4959 = vmatprep.subr.mxu0 %v3769_v57 }
 0x48d   :  { %4960 = vmatpush3.msra.mxu0 %v3769_v57  ;;  %v2444_v57 = vld [vmem:[%s7383_s6 + $0x28] sm:$0xff] }
 0x48e   :  { %4961 = vmatprep.subr.mxu0 %v3768_v44 }
 0x48f   :  { %4962 = vmatpush3.msra.mxu0 %v3768_v44  ;;  %v2443_v44 = vld [vmem:[%s7383_s6 + $0x20] sm:$0xff] }
 0x490   :  { %4963 = vmatprep.subr.mxu0 %v3767_v60 }
 0x491   :  { %4964 = vmatpush3.msra.mxu0 %v3767_v60  ;;  %v7419_v60 = vmov 6  }
 0x492   :  { %4965 = vmatprep.subr.mxu0 %v3766_v47 }
 0x493   :  { %4966 = vmatpush3.msra.mxu0 %v3766_v47  ;;  %v2441_v47 = vld [vmem:[%s7383_s6 + $0x10] sm:$0xff] }
 0x4e3   :  { %v2377_v10 = vpop.permute.xlu1 %2376 }
 0x4e4   :  { %v2378_v48 = vadd.f32 %v2377_v10, %v2375_v46  ;;  %v2450_v46 = vld [vmem:[%s7383_s6 + $0x58] sm:$0xff]  ;;  %v3765_v10 = vld [vmem:[%s7383_s6 + $0xa0] sm:$0xff] }
 0x4e5   :  { %4991 = vmatprep.subr.mxu1 %v2450_v46  ;;  %4967 = vmatprep.subr.mxu0 %v3765_v10 }
 0x4e6   :  { %2379 = vrot.lane.b32.xlu1 %v2378_v48, %s5341_s7  ;;  %4992 = vmatpush3.msra.mxu1 %v2450_v46 }
 0x4e7   :  { %4968 = vmatpush3.msra.mxu0 %v3765_v10 }
 0x4f3   :  { %v1789_v12 = vpop.permute.xlu0 %1788 }
 0x4f4   :  { %v1790_v40 = vadd.f32 %v1789_v12, %v1787_v56  ;;  %v2449_v56 = vld [vmem:[%s7383_s6 + $0x50] sm:$0xff]  ;;  %v2448_v12 = vld [vmem:[%s7383_s6 + $0x48] sm:$0xff] }
 0x4f5   :  { %4993 = vmatprep.subr.mxu1 %v2449_v56 }
 0x4f6   :  { %1791 = vrot.lane.b32.xlu0 %v1790_v40, %s5342_s9  ;;  %4994 = vmatpush3.msra.mxu1 %v2449_v56  ;;  %v2440_v56 = vld [vmem:[%s7383_s6 + $0x8] sm:$0xff] }
 0x4f7   :  { %4995 = vmatprep.subr.mxu1 %v2448_v12 }
 0x4f8   :  { %4996 = vmatpush3.msra.mxu1 %v2448_v12  ;;  %v2439_v12 = vld [vmem:[%s7383_s6] sm:$0xff] }
 0x4f9   :  { %4997 = vmatprep.subr.mxu1 %v2447_v4 }
 0x4fa   :  { %4998 = vmatpush3.msra.mxu1 %v2447_v4 }
 0x558   :  { %v2380_v16 = vpop.permute.xlu1 %2379 }
 0x559   :  { %v6569_v27 = vadd.f32 %v2380_v16, %v2378_v48  ;;  %v7417_v48 = vmov 9   ;;  %v3764_v16 = vld [vmem:[%s7383_s6 + $0x98] sm:$0xff] }
 0x55a   :  { %4969 = vmatprep.subr.mxu0 %v3764_v16 }
 0x55b   :  { %2382 = vrot.lane.b32.xlu1 %v6569_v27, %s5342_s9  ;;  %4970 = vmatpush3.msra.mxu0 %v3764_v16  ;;  %v7420_v16 = vmov 10  }
 0x55c   :  { %4971 = vmatprep.subr.mxu0 %v3763_v28 }
 0x55d   :  { %4972 = vmatpush3.msra.mxu0 %v3763_v28  ;;  %v3792_v28 = vld [vmem:[%s7383_s6 + $0x178] sm:$0xff] }
 0x55e   :  { %4973 = vmatprep.subr.mxu0 %v3762_v14 }
 0x55f   :  { %2417 = vperm.xlu1 %5275, %v6576_v61   ;;  %4974 = vmatpush3.msra.mxu0 %v3762_v14 }
 0x560   :  { %4975 = vmatprep.subr.mxu0 %v3761_v58 }
 0x561   :  { %4976 = vmatpush3.msra.mxu0 %v3761_v58 }
 0x562   :  { %5021 = vmatprep.subr.mxu0 %v3792_v28 }
 0x568   :  { %v1792_v32 = vpop.permute.xlu0 %1791 }
 0x569   :  { %v6594_v49 = vadd.f32 %v1792_v32, %v1790_v40  ;;  %v676_v40 = vadd.f32 %v6379_v2, %v6387_v35  ;;  %v2446_v32 = vld [vmem:[%s7383_s6 + $0x38] sm:$0xff] }
 0x56a   :  { %4999 = vmatprep.subr.mxu1 %v2446_v32 }
 0x56b   :  { %1794 = vrot.lane.b32.xlu0 %v6594_v49, %s5343_s0  ;;  %v677_v8 = vadd.f32 %v676_v40, %v6415_v55  ;;  %5000 = vmatpush3.msra.mxu1 %v2446_v32  ;;  %v6723_v32 = vld [vmem:[%s7385_s8 + $0xf8] sm:$0xff] }
 0x56c   :  { %5001 = vmatprep.subr.mxu1 %v2445_v9 }
 0x56d   :  { %v678_v36 = vadd.f32 %v677_v8, %v6407_v37  ;;  %5002 = vmatpush3.msra.mxu1 %v2445_v9 }
 0x56e   :  { %5003 = vmatprep.subr.mxu1 %v2444_v57 }
 0x56f   :  { %2422 = vperm.xlu0 %5276, %v6607_v5   ;;  %v679_v45 = vrot.slane %v678_v36, 4  ;;  %5004 = vmatpush3.msra.mxu1 %v2444_v57 }
 0x570   :  { %5005 = vmatprep.subr.mxu1 %v2443_v44 }
 0x571   :  { %v680_v46 = vadd.f32 %v679_v45, %v678_v36  ;;  %5006 = vmatpush3.msra.mxu1 %v2443_v44 }
 0x572   :  { %5007 = vmatprep.subr.mxu1 %v2442_v39 }
 0x573   :  { %2432 = vperm.xlu0 %5276, %v6625_v50   ;;  %5008 = vmatpush3.msra.mxu1 %v2442_v39  ;;  %v681_v10 = vrot.slane %v680_v46, 2 }
 0x574   :  { %5009 = vmatprep.subr.mxu1 %v2441_v47 }
 0x575   :  { %5010 = vmatpush3.msra.mxu1 %v2441_v47  ;;  %v682_v40 = vadd.f32 %v681_v10, %v680_v46 }
 0x576   :  { %5011 = vmatprep.subr.mxu1 %v2440_v56 }
 0x577   :  { %5278 = vset.pattern.permute.xlu0 %v7417_v48  ;;  %5012 = vmatpush3.msra.mxu1 %v2440_v56  ;;  %v683_v4 = vrot.slane %v682_v40, 1  ;;  %v1313_v56 = vadd.f32 %v6490_v1, %v6492_v11 }
 0x578   :  { %2651 = vperm.xlu0 %5278, %v6607_v5   ;;  %5013 = vmatprep.subr.mxu1 %v2439_v12 }
 0x579   :  { %5014 = vmatpush3.msra.mxu1 %v2439_v12  ;;  %v6712_v8 = vadd.f32 %v683_v4, %v682_v40 }
 0x57a   :  { %5059 = vmatprep.subr.mxu1 %v6723_v32 }
 0x57c   :  { %2655 = vperm.xlu0 %5278, %v6662_v51  }
 0x580   :  { %5281 = vset.pattern.permute.xlu0 %v7418_v17 }
 0x581   :  { %2905 = vperm.xlu0 %5281, %v6662_v51  }
 0x585   :  { %5284 = vset.pattern.permute.xlu0 %v7419_v60 }
 0x586   :  { %2859 = vperm.xlu0 %5284, %v6607_v5  }
 0x58a   :  { %5285 = vset.pattern.permute.xlu0 %v7417_v48 }
 0x58b   :  { %3214 = vperm.xlu0 %5285, %v6576_v61  }
 0x58f   :  { %5288 = vset.pattern.permute.xlu0 %v7420_v16 }
 0x590   :  { %3348 = vperm.xlu0 %5288, %v6607_v5  }
 0x594   :  { %3352 = vperm.xlu0 %5288, %v6662_v51  }
 0x598   :  { %685 = vrot.lane.b32.xlu0 %v6712_v8, %s5331_s25 }
 0x599   :  { %5291 = vset.pattern.permute.xlu0 %v7418_v17 }
 0x5cd   :  { %v2383_v14 = vpop.permute.xlu1 %2382 }
 0x5ce   :  { %v6727_v36 = vadd.f32 %v2383_v14, %v6569_v27  ;;  %v3789_v14 = vld [vmem:[%s7383_s6 + $0x160] sm:$0xff] }
 0x5d0   :  { %2385 = vrot.lane.b32.xlu1 %v6727_v36, %s5343_s0 }
 0x5d4   :  { %2427 = vperm.xlu1 %5275, %v6662_v51  }
 0x5d8   :  { %5277 = vset.pattern.permute.xlu1 %v7417_v48 }
 0x5d9   :  { %2647 = vperm.xlu1 %5277, %v6576_v61  }
 0x5dd   :  { %v1795_v9 = vpop.permute.xlu0 %1794  ;;  %5279 = vset.pattern.permute.xlu1 %v7418_v17 }
 0x5de   :  { %v1796_v58 = vadd.f32 %v1795_v9, %v6594_v49  ;;  %2897 = vperm.xlu1 %5279, %v6576_v61  }
 0x5e0   :  { %v1797_v57 = vmul.f32 0.001953125, %v1796_v58 }
 0x5e2   :  { %v1798_v45 = vadd.f32 1e-05, %v1797_v57  ;;  %2901 = vperm.xlu1 %5279, %v6607_v5  }
 0x5e4   :  { %5296 = vrsqrt.f32 %v1798_v45 }
 0x5e6   :  { %5280 = vset.pattern.permute.xlu1 %v7417_v48 }
 0x5e7   :  { %2659 = vperm.xlu1 %5280, %v6625_v50  }
 0x5ea   :  { %v2423_v58 = vpop.permute.xlu0 %2422 }
 0x5eb   :  { %5282 = vset.pattern.permute.xlu1 %v7418_v17 }
 0x5ec   :  { %2909 = vperm.xlu1 %5282, %v6625_v50  }
 0x5f0   :  { %5283 = vset.pattern.permute.xlu1 %v7419_v60  ;;  %v1314_v60 = vadd.f32 %v1313_v56, %v6496_v0  ;;  %v3805_v56 = vld [vmem:[%s7385_s8 + $0xe0] sm:$0xff] }
 0x5f1   :  { %v5297_v27 = vpop.eup %5296  ;;  %2854 = vperm.xlu1 %5283, %v6576_v61  }
 0x5f2   :  { %v1803_v49 = vrot.slane %v5297_v27, %v5671_v15 }
 0x5f4   :  { %v1804_v44 = vmul.f32 %v1803_v49, %v6526_v54  ;;  %v1805_v39 = vmul.f32 %v1803_v49, %v6529_v34  ;;  %v1806_v46 = vmul.f32 %v1803_v49, %v6532_v3  ;;  %v1807_v47 = vmul.f32 %v1803_v49, %v6535_v43  ;;  %v3791_v54 = vld [vmem:[%s7383_s6 + $0x170] sm:$0xff]  ;;  %v3790_v3 = vld [vmem:[%s7383_s6 + $0x168] sm:$0xff]  ;;  %v2418_v43 = vpop.permute.xlu1 %2417  ;;  %v3788_v49 = vld [vmem:[%s7383_s6 + $0x158] sm:$0xff] }
 0x5f5   :  { %2864 = vperm.xlu1 %5283, %v6662_v51   ;;  %v1315_v34 = vadd.f32 %v1314_v60, %v6494_v13 }
 0x5f6   :  { %v1808_v10 = vmax.f32 %v1804_v44, 0.0  ;;  %v1809_v12 = vmax.f32 %v1805_v39, 0.0  ;;  %v1810_v40 = vmax.f32 %v1806_v46, 0.0  ;;  %v1811_v4 = vmax.f32 %v1807_v47, 0.0  ;;  %v3807_v44 = vld [vmem:[%s7385_s8 + $0xf0] sm:$0xff]  ;;  %v3786_v46 = vld [vmem:[%s7383_s6 + $0x148] sm:$0xff] }
 0x5f7   :  { %v3787_v39 = vld [vmem:[%s7383_s6 + $0x150] sm:$0xff] }
 0x5f8   :  { %2403 = vst [vmem:[#allocation2 + $0x8] sm:$0xff] %v1808_v10  ;;  %2404 = vst [vmem:[#allocation2 + $0x10] sm:$0xff] %v1809_v12  ;;  %4977 = vmatprep.mubr.f32.mxu0 %v1808_v10  ;;  %v3784_v10 = vld [vmem:[%s7383_s6 + $0x138] sm:$0xff] }
 0x5f9   :  { %2405 = vst [vmem:[#allocation2 + $0x18] sm:$0xff] %v1810_v40  ;;  %2406 = vst [vmem:[#allocation2 + $0x20] sm:$0xff] %v1811_v4  ;;  %4978 = vmatmul.mubr.f32.vlgmr.msra.gmra.mxu0 %v1809_v12  ;;  %2869 = vperm.xlu1 %5283, %v6625_v50  }
 0x5fa   :  { %4980 = vmatprep.mubr.f32.mxu0 %v1810_v40  ;;  %5022 = vmatpush3.msra.mxu0 %v3792_v28  ;;  %v1316_v28 = vrot.slane %v1315_v34, 4  ;;  %v3783_v40 = vld [vmem:[%s7383_s6 + $0x130] sm:$0xff] }
 0x5fb   :  { %5023 = vmatprep.subr.mxu0 %v3791_v54 }
 0x5fc   :  { %5024 = vmatpush3.msra.mxu0 %v3791_v54  ;;  %v3781_v54 = vld [vmem:[%s7383_s6 + $0x120] sm:$0xff] }
 0x5fd   :  { %4981 = vmatmul.mubr.f32.gmra.mxu0 %v1811_v4  ;;  %5286 = vset.pattern.permute.xlu1 %v7417_v48  ;;  %v3782_v4 = vld [vmem:[%s7383_s6 + $0x128] sm:$0xff] }
 0x5fe   :  { %3218 = vperm.xlu1 %5286, %v6607_v5   ;;  %5025 = vmatprep.subr.mxu0 %v3790_v3  ;;  %v1317_v5 = vadd.f32 %v1316_v28, %v1315_v34  ;;  %v3803_v34 = vld [vmem:[%s7385_s8 + $0xd0] sm:$0xff]  ;;  %v3800_v28 = vld [vmem:[%s7385_s8 + $0xb8] sm:$0xff] }
 0x5ff   :  { %v2408_v9 = vld [vmem:[#allocation2 + $0xf] sm:$0xff]  ;;  %v2407_v45 = vld [vmem:[#allocation2 + $0x7] sm:$0xff]  ;;  %5026 = vmatpush3.msra.mxu0 %v3790_v3  ;;  %v3780_v3 = vld [vmem:[%s7383_s6 + $0x118] sm:$0xff] }
 0x600   :  { %v2436_v57 = vmul.f32 %v2423_v58, %v2408_v9  ;;  %v2435_v27 = vmul.f32 %v2418_v43, %v2407_v45  ;;  %5027 = vmatprep.subr.mxu0 %v3789_v14  ;;  %v1318_v47 = vrot.slane %v1317_v5, 2  ;;  %v3802_v43 = vld [vmem:[%s7385_s8 + $0xc8] sm:$0xff]  ;;  %v3779_v9 = vld [vmem:[%s7383_s6 + $0x110] sm:$0xff] }
 0x601   :  { %5028 = vmatpush3.msra.mxu0 %v3789_v14  ;;  %v3778_v58 = vld [vmem:[%s7383_s6 + $0x108] sm:$0xff]  ;;  %v3799_v45 = vld [vmem:[%s7385_s8 + $0xb0] sm:$0xff] }
 0x602   :  { %5287 = vset.pattern.permute.xlu1 %v7420_v16  ;;  %5015 = vmatprep.mubr.f32.mxu1 %v2435_v27  ;;  %v1319_v12 = vadd.f32 %v1318_v47, %v1317_v5  ;;  %v2891_v27 = vld [vmem:[%s7385_s8 + $0x78] sm:$0xff] }
 0x603   :  { %3344 = vperm.xlu1 %5287, %v6576_v61   ;;  %5016 = vmatmul.mubr.f32.vlgmr.msra.gmra.mxu1 %v2436_v57  ;;  %v3806_v61 = vld [vmem:[%s7385_s8 + $0xe8] sm:$0xff]  ;;  %v3777_v57 = vld [vmem:[%s7383_s6 + $0x100] sm:$0xff]  ;;  %v3796_v5 = vld [vmem:[%s7385_s8 + $0x98] sm:$0xff] }
 0x604   :  { %5029 = vmatprep.subr.mxu0 %v3788_v49  ;;  %5060 = vmatpush3.msra.mxu1 %v6723_v32  ;;  %v3785_v32 = vld [vmem:[%s7383_s6 + $0x140] sm:$0xff]  ;;  %v1320_v60 = vrot.slane %v1319_v12, 1 }
 0x605   :  { %5030 = vmatpush3.msra.mxu0 %v3788_v49  ;;  %5061 = vmatprep.subr.mxu1 %v3807_v44  ;;  %v3798_v49 = vld [vmem:[%s7385_s8 + $0xa8] sm:$0xff] }
 0x606   :  { %5031 = vmatprep.subr.mxu0 %v3787_v39  ;;  %5062 = vmatpush3.msra.mxu1 %v3807_v44  ;;  %v6819_v14 = vadd.f32 %v1320_v60, %v1319_v12  ;;  %v3797_v44 = vld [vmem:[%s7385_s8 + $0xa0] sm:$0xff]  ;;  %v2433_v12 = vpop.permute.xlu0 %2432 }
 0x607   :  { %5289 = vset.pattern.permute.xlu1 %v7417_v48  ;;  %5032 = vmatpush3.msra.mxu0 %v3787_v39  ;;  %v3795_v39 = vld [vmem:[%s7385_s8 + $0x90] sm:$0xff] }
 0x608   :  { %3222 = vperm.xlu1 %5289, %v6662_v51   ;;  %5033 = vmatprep.subr.mxu0 %v3786_v46  ;;  %v3804_v51 = vld [vmem:[%s7385_s8 + $0xd8] sm:$0xff] }
 0x609   :  { %5034 = vmatpush3.msra.mxu0 %v3786_v46  ;;  %5063 = vmatprep.subr.mxu1 %v3806_v61  ;;  %v3794_v46 = vld [vmem:[%s7385_s8 + $0x88] sm:$0xff] }
 0x60a   :  { %5035 = vmatprep.subr.mxu0 %v3785_v32  ;;  %5064 = vmatpush3.msra.mxu1 %v3806_v61  ;;  %v6866_v61 = vld [vmem:[%s7385_s8 + $0x178] sm:$0xff] }
 0x60b   :  { %5036 = vmatpush3.msra.mxu0 %v3785_v32  ;;  %5065 = vmatprep.subr.mxu1 %v3805_v56 }
 0x60c   :  { %3226 = vperm.xlu1 %5289, %v6625_v50   ;;  %5037 = vmatprep.subr.mxu0 %v3784_v10 }
 0x60d   :  { %5038 = vmatpush3.msra.mxu0 %v3784_v10  ;;  %5066 = vmatpush3.msra.mxu1 %v3805_v56 }
 0x60e   :  { %5039 = vmatprep.subr.mxu0 %v3783_v40  ;;  %5067 = vmatprep.subr.mxu1 %v3804_v51 }
 0x60f   :  { %5040 = vmatpush3.msra.mxu0 %v3783_v40  ;;  %5068 = vmatpush3.msra.mxu1 %v3804_v51  ;;  %v2410_v40 = vld [vmem:[#allocation2 + $0x1f] sm:$0xff] }
 0x610   :  { %5290 = vset.pattern.permute.xlu1 %v7420_v16  ;;  %5041 = vmatprep.subr.mxu0 %v3782_v4 }
 0x611   :  { %3356 = vperm.xlu1 %5290, %v6625_v50   ;;  %5042 = vmatpush3.msra.mxu0 %v3782_v4  ;;  %v3801_v50 = vld [vmem:[%s7385_s8 + $0xc0] sm:$0xff]  ;;  %v2409_v4 = vld [vmem:[#allocation2 + $0x17] sm:$0xff] }
 0x612   :  { %5043 = vmatprep.subr.mxu0 %v3781_v54  ;;  %5069 = vmatprep.subr.mxu1 %v3803_v34 }
 0x613   :  { %5044 = vmatpush3.msra.mxu0 %v3781_v54  ;;  %5070 = vmatpush3.msra.mxu1 %v3803_v34  ;;  %v2438_v54 = vmul.f32 %v2433_v12, %v2410_v40  ;;  %v2652_v34 = vpop.permute.xlu0 %2651  ;;  %v2887_v12 = vld [vmem:[%s7385_s8 + $0x58] sm:$0xff]  ;;  %v2886_v40 = vld [vmem:[%s7385_s8 + $0x50] sm:$0xff] }
 0x614   :  { %5045 = vmatprep.subr.mxu0 %v3780_v3  ;;  %5071 = vmatprep.subr.mxu1 %v3802_v43 }
 0x615   :  { %1322 = vrot.lane.b32.xlu1 %v6819_v14, %s5331_s25  ;;  %5046 = vmatpush3.msra.mxu0 %v3780_v3  ;;  %v2643_v3 = vld [vmem:[#allocation2 + $0x11] sm:$0xff] }
 0x616   :  { %5047 = vmatprep.subr.mxu0 %v3779_v9  ;;  %5072 = vmatpush3.msra.mxu1 %v3802_v43 }
 0x617   :  { %5048 = vmatpush3.msra.mxu0 %v3779_v9  ;;  %5073 = vmatprep.subr.mxu1 %v3801_v50  ;;  %v2642_v9 = vld [vmem:[#allocation2 + $0x9] sm:$0xff] }
 0x618   :  { %5049 = vmatprep.subr.mxu0 %v3778_v58  ;;  %5074 = vmatpush3.msra.mxu1 %v3801_v50  ;;  %v2644_v50 = vld [vmem:[#allocation2 + $0x19] sm:$0xff] }
 0x619   :  { %5050 = vmatpush3.msra.mxu0 %v3778_v58  ;;  %5075 = vmatprep.subr.mxu1 %v3800_v28 }
 0x61a   :  { %5051 = vmatprep.subr.mxu0 %v3777_v57  ;;  %5076 = vmatpush3.msra.mxu1 %v3800_v28 }
 0x61b   :  { %5052 = vmatpush3.msra.mxu0 %v3777_v57  ;;  %5077 = vmatprep.subr.mxu1 %v3799_v45  ;;  %v2663_v57 = vmul.f32 %v2652_v34, %v2643_v3 }
 0x61c   :  { %5097 = vmatprep.subr.mxu0 %v2891_v27  ;;  %5078 = vmatpush3.msra.mxu1 %v3799_v45 }
 0x61d   :  { %5079 = vmatprep.subr.mxu1 %v3798_v49  ;;  %5292 = vset.pattern.permute.xlu1 %v7418_v17  ;;  %v3793_v17 = vld [vmem:[%s7385_s8 + $0x80] sm:$0xff] }
 0x61e   :  { %5080 = vmatpush3.msra.mxu1 %v3798_v49  ;;  %v2890_v49 = vld [vmem:[%s7385_s8 + $0x70] sm:$0xff] }
 0x61f   :  { %5081 = vmatprep.subr.mxu1 %v3797_v44 }
 0x620   :  { %5082 = vmatpush3.msra.mxu1 %v3797_v44 }
 0x621   :  { %5083 = vmatprep.subr.mxu1 %v3796_v5 }
 0x622   :  { %5084 = vmatpush3.msra.mxu1 %v3796_v5 }
 0x623   :  { %5085 = vmatprep.subr.mxu1 %v3795_v39 }
 0x624   :  { %5086 = vmatpush3.msra.mxu1 %v3795_v39 }
 0x625   :  { %5087 = vmatprep.subr.mxu1 %v3794_v46 }
 0x626   :  { %5088 = vmatpush3.msra.mxu1 %v3794_v46 }
 0x627   :  { %5089 = vmatprep.subr.mxu1 %v3793_v17 }
 0x628   :  { %5090 = vmatpush3.msra.mxu1 %v3793_v17 }
 0x629   :  { %5135 = vmatprep.subr.mxu1 %v6866_v61 }
 0x642   :  { %v2386_v47 = vpop.permute.xlu1 %2385 }
 0x643   :  { %v2387_v32 = vadd.f32 %v2386_v47, %v6727_v36  ;;  %v2656_v36 = vpop.permute.xlu0 %2655 }
 0x644   :  { %v2664_v44 = vmul.f32 %v2656_v36, %v2644_v50  ;;  %v2883_v50 = vld [vmem:[%s7385_s8 + $0x38] sm:$0xff]  ;;  %v2882_v36 = vld [vmem:[%s7385_s8 + $0x30] sm:$0xff] }
 0x645   :  { %v2388_v56 = vmul.f32 0.001953125, %v2387_v32  ;;  %v2889_v32 = vld [vmem:[%s7385_s8 + $0x68] sm:$0xff] }
 0x647   :  { %v2389_v10 = vadd.f32 1e-05, %v2388_v56 }
 0x649   :  { %5298 = vrsqrt.f32 %v2389_v10 }
 0x64f   :  { %v2428_v51 = vpop.permute.xlu1 %2427 }
 0x650   :  { %v2437_v60 = vmul.f32 %v2428_v51, %v2409_v4  ;;  %v2885_v51 = vld [vmem:[%s7385_s8 + $0x48] sm:$0xff] }
 0x652   :  { %5018 = vmatprep.mubr.f32.mxu1 %v2437_v60 }
 0x653   :  { %5019 = vmatmul.mubr.f32.gmra.mxu1 %v2438_v54  ;;  %v2884_v54 = vld [vmem:[%s7385_s8 + $0x40] sm:$0xff] }
 0x654   :  { %v2648_v43 = vpop.permute.xlu1 %2647 }
 0x655   :  { %v2662_v58 = vmul.f32 %v2648_v43, %v2642_v9 }
 0x656   :  { %v5299_v28 = vpop.eup %5298 }
 0x657   :  { %v2394_v45 = vrot.slane %v5299_v28, %v5671_v15  ;;  %5053 = vmatprep.mubr.f32.mxu0 %v2662_v58  ;;  %v2906_v28 = vpop.permute.xlu0 %2905 }
 0x658   :  { %5054 = vmatmul.mubr.f32.vlgmr.msra.gmra.mxu0 %v2663_v57 }
 0x659   :  { %v6875_v5 = vmul.f32 %v2394_v45, %v6548_v18  ;;  %v6878_v39 = vmul.f32 %v2394_v45, %v6551_v38  ;;  %v6881_v46 = vmul.f32 %v2394_v45, %v6553_v33  ;;  %v6884_v17 = vmul.f32 %v2394_v45, %v6555_v6  ;;  %5098 = vmatpush3.msra.mxu0 %v2891_v27  ;;  %v2898_v47 = vpop.permute.xlu1 %2897  ;;  %v2888_v6 = vld [vmem:[%s7385_s8 + $0x60] sm:$0xff] }
 0x65a   :  { %5056 = vmatprep.mubr.f32.mxu0 %v2664_v44  ;;  %5099 = vmatprep.subr.mxu0 %v2890_v49  ;;  %v2645_v27 = vld [vmem:[#allocation2 + $0x21] sm:$0xff] }
 0x65b   :  { %v2399_v18 = vmax.f32 %v6875_v5, 0.0  ;;  %v2400_v56 = vmax.f32 %v6878_v39, 0.0  ;;  %v2401_v38 = vmax.f32 %v6881_v46, 0.0  ;;  %v2402_v33 = vmax.f32 %v6884_v17, 0.0  ;;  %5100 = vmatpush3.msra.mxu0 %v2890_v49  ;;  %v3823_v49 = vld [vmem:[%s7385_s8 + $0x170] sm:$0xff]  ;;  %v2881_v44 = vld [vmem:[%s7385_s8 + $0x28] sm:$0xff] }
 0x65c   :  { %5101 = vmatprep.subr.mxu0 %v2889_v32  ;;  %v2877_v5 = vld [vmem:[%s7385_s8 + $0x8] sm:$0xff]  ;;  %v3829_v46 = vld [vmem:[%s7385_s8 + $0x1a0] sm:$0xff]  ;;  %v3852_v17 = vld [vmem:[%s7385_s8 + $0x258] sm:$0xff] }
 0x65d   :  { %2842 = vst [vmem:[#allocation2 + $0x18] sm:$0xff] %v2401_v38  ;;  %2840 = vst [vmem:[#allocation2 + $0x8] sm:$0xff] %v2399_v18  ;;  %5102 = vmatpush3.msra.mxu0 %v2889_v32  ;;  %v2902_v10 = vpop.permute.xlu1 %2901  ;;  %v3822_v32 = vld [vmem:[%s7385_s8 + $0x168] sm:$0xff] }
 0x65e   :  { %2841 = vst [vmem:[#allocation2 + $0x10] sm:$0xff] %v2400_v56  ;;  %2843 = vst [vmem:[#allocation2 + $0x20] sm:$0xff] %v2402_v33  ;;  %5103 = vmatprep.subr.mxu0 %v2888_v6  ;;  %v3830_v39 = vld [vmem:[%s7385_s8 + $0x1a8] sm:$0xff] }
 0x65f   :  { %5104 = vmatpush3.msra.mxu0 %v2888_v6 }
 0x660   :  { %5105 = vmatprep.subr.mxu0 %v2887_v12 }
 0x661   :  { %5106 = vmatpush3.msra.mxu0 %v2887_v12 }
 0x662   :  { %5107 = vmatprep.subr.mxu0 %v2886_v40  ;;  %v2660_v4 = vpop.permute.xlu1 %2659 }
 0x663   :  { %v2665_v60 = vmul.f32 %v2660_v4, %v2645_v27  ;;  %5108 = vmatpush3.msra.mxu0 %v2886_v40  ;;  %v3820_v4 = vld [vmem:[%s7385_s8 + $0x158] sm:$0xff] }
 0x664   :  { %v2892_v34 = vld [vmem:[#allocation2 + $0x7] sm:$0xff]  ;;  %5109 = vmatprep.subr.mxu0 %v2885_v51 }
 0x665   :  { %v2893_v3 = vld [vmem:[#allocation2 + $0xf] sm:$0xff]  ;;  %v2912_v43 = vmul.f32 %v2898_v47, %v2892_v34  ;;  %5110 = vmatpush3.msra.mxu0 %v2885_v51  ;;  %v2894_v58 = vld [vmem:[#allocation2 + $0x17] sm:$0xff]  ;;  %v2895_v47 = vld [vmem:[#allocation2 + $0x1f] sm:$0xff] }
 0x666   :  { %v2913_v9 = vmul.f32 %v2902_v10, %v2893_v3  ;;  %5057 = vmatmul.mubr.f32.gmra.mxu0 %v2665_v60  ;;  %5111 = vmatprep.subr.mxu0 %v2884_v54  ;;  %v2914_v45 = vmul.f32 %v2906_v28, %v2894_v58  ;;  %v3821_v10 = vld [vmem:[%s7385_s8 + $0x160] sm:$0xff]  ;;  %v2879_v51 = vld [vmem:[%s7385_s8 + $0x18] sm:$0xff]  ;;  %v2878_v60 = vld [vmem:[%s7385_s8 + $0x10] sm:$0xff] }
 0x667   :  { %5112 = vmatpush3.msra.mxu0 %v2884_v54  ;;  %v2910_v57 = vpop.permute.xlu1 %2909  ;;  %5091 = vmatprep.mubr.f32.mxu1 %v2912_v43  ;;  %v2844_v12 = vld [vmem:[#allocation2 + $0x6] sm:$0xff]  ;;  %v3819_v54 = vld [vmem:[%s7385_s8 + $0x150] sm:$0xff]  ;;  %v3816_v58 = vld [vmem:[%s7385_s8 + $0x138] sm:$0xff] }
 0x668   :  { %5113 = vmatprep.subr.mxu0 %v2883_v50  ;;  %5092 = vmatmul.mubr.f32.vlgmr.msra.gmra.mxu1 %v2913_v9  ;;  %v2915_v6 = vmul.f32 %v2910_v57, %v2895_v47  ;;  %v2876_v3 = vld [vmem:[%s7385_s8] sm:$0xff]  ;;  %v2845_v9 = vld [vmem:[#allocation2 + $0xe] sm:$0xff]  ;;  %v2846_v28 = vld [vmem:[#allocation2 + $0x16] sm:$0xff] }
 0x669   :  { %5114 = vmatpush3.msra.mxu0 %v2883_v50  ;;  %5136 = vmatpush3.msra.mxu1 %v6866_v61  ;;  %v2880_v61 = vld [vmem:[%s7385_s8 + $0x20] sm:$0xff]  ;;  %v2860_v50 = vpop.permute.xlu0 %2859  ;;  %v3839_v47 = vld [vmem:[%s7385_s8 + $0x1f0] sm:$0xff] }
 0x66a   :  { %5094 = vmatprep.mubr.f32.mxu1 %v2914_v45  ;;  %5115 = vmatprep.subr.mxu0 %v2882_v36  ;;  %v3817_v43 = vld [vmem:[%s7385_s8 + $0x140] sm:$0xff]  ;;  %v2873_v57 = vmul.f32 %v2860_v50, %v2845_v9 }
 0x66b   :  { %5137 = vmatprep.subr.mxu1 %v3823_v49  ;;  %5116 = vmatpush3.msra.mxu0 %v2882_v36  ;;  %v3840_v36 = vld [vmem:[%s7385_s8 + $0x1f8] sm:$0xff]  ;;  %v3833_v9 = vld [vmem:[%s7385_s8 + $0x1c0] sm:$0xff] }
 0x66c   :  { %5138 = vmatpush3.msra.mxu1 %v3823_v49  ;;  %5117 = vmatprep.subr.mxu0 %v2881_v44  ;;  %v2855_v27 = vpop.permute.xlu1 %2854 }
 0x66d   :  { %5139 = vmatprep.subr.mxu1 %v3822_v32  ;;  %5095 = vmatmul.mubr.f32.gmra.mxu1 %v2915_v6  ;;  %v2872_v40 = vmul.f32 %v2855_v27, %v2844_v12  ;;  %v3814_v6 = vld [vmem:[%s7385_s8 + $0x128] sm:$0xff]  ;;  %v3215_v12 = vpop.permute.xlu0 %3214 }
 0x66e   :  { %5118 = vmatpush3.msra.mxu0 %v2881_v44  ;;  %5140 = vmatpush3.msra.mxu1 %v3822_v32  ;;  %v3815_v44 = vld [vmem:[%s7385_s8 + $0x130] sm:$0xff]  ;;  %v2847_v32 = vld [vmem:[#allocation2 + $0x1e] sm:$0xff] }
 0x66f   :  { %5119 = vmatprep.subr.mxu0 %v2880_v61  ;;  %5141 = vmatprep.subr.mxu1 %v3821_v10  ;;  %v3209_v27 = vld [vmem:[#allocation2 + $0x9] sm:$0xff] }
 0x670   :  { %5167 = vmatprep.mubr.f32.mxu1 %v2399_v18  ;;  %5120 = vmatpush3.msra.mxu0 %v2880_v61  ;;  %v3818_v18 = vld [vmem:[%s7385_s8 + $0x148] sm:$0xff]  ;;  %v2865_v34 = vpop.permute.xlu1 %2864 }
 0x671   :  { %5142 = vmatpush3.msra.mxu1 %v3821_v10  ;;  %5121 = vmatprep.subr.mxu0 %v2879_v51  ;;  %v2874_v45 = vmul.f32 %v2865_v34, %v2846_v28  ;;  %v3838_v10 = vld [vmem:[%s7385_s8 + $0x1e8] sm:$0xff]  ;;  %v3856_v28 = vld [vmem:[%s7385_s8 + $0x278] sm:$0xff] }
 0x672   :  { %5129 = vmatprep.mubr.f32.mxu0 %v2872_v40  ;;  %5143 = vmatprep.subr.mxu1 %v3820_v4  ;;  %v3229_v40 = vmul.f32 %v3215_v12, %v3209_v27  ;;  %v3810_v34 = vld [vmem:[%s7385_s8 + $0x108] sm:$0xff]  ;;  %v3849_v12 = vld [vmem:[%s7385_s8 + $0x240] sm:$0xff] }
 0x673   :  { %5122 = vmatpush3.msra.mxu0 %v2879_v51  ;;  %5144 = vmatpush3.msra.mxu1 %v3820_v4  ;;  %v3813_v51 = vld [vmem:[%s7385_s8 + $0x120] sm:$0xff]  ;;  %v3826_v27 = vld [vmem:[%s7385_s8 + $0x188] sm:$0xff] }
 0x674   :  { %5123 = vmatprep.subr.mxu0 %v2878_v60  ;;  %5145 = vmatprep.subr.mxu1 %v3819_v54  ;;  %v2870_v49 = vpop.permute.xlu1 %2869  ;;  %v3837_v4 = vld [vmem:[%s7385_s8 + $0x1e0] sm:$0xff] }
 0x675   :  { %5124 = vmatpush3.msra.mxu0 %v2878_v60  ;;  %5146 = vmatpush3.msra.mxu1 %v3819_v54  ;;  %v2875_v61 = vmul.f32 %v2870_v49, %v2847_v32  ;;  %v3812_v60 = vld [vmem:[%s7385_s8 + $0x118] sm:$0xff]  ;;  %v3339_v49 = vld [vmem:[#allocation2 + $0xa] sm:$0xff] }
 0x676   :  { %5125 = vmatprep.subr.mxu0 %v2877_v5  ;;  %5147 = vmatprep.subr.mxu1 %v3818_v18  ;;  %v3836_v54 = vld [vmem:[%s7385_s8 + $0x1d8] sm:$0xff]  ;;  %v3851_v32 = vld [vmem:[%s7385_s8 + $0x250] sm:$0xff] }
 0x677   :  { %5126 = vmatpush3.msra.mxu0 %v2877_v5  ;;  %5148 = vmatpush3.msra.mxu1 %v3818_v18  ;;  %v3811_v5 = vld [vmem:[%s7385_s8 + $0x110] sm:$0xff] }
 0x678   :  { %5127 = vmatprep.subr.mxu0 %v2876_v3  ;;  %5149 = vmatprep.subr.mxu1 %v3817_v43  ;;  %v3835_v18 = vld [vmem:[%s7385_s8 + $0x1d0] sm:$0xff] }
 0x679   :  { %5128 = vmatpush3.msra.mxu0 %v2876_v3  ;;  %5150 = vmatpush3.msra.mxu1 %v3817_v43  ;;  %v3834_v3 = vld [vmem:[%s7385_s8 + $0x1c8] sm:$0xff]  ;;  %v3809_v43 = vld [vmem:[%s7385_s8 + $0x100] sm:$0xff]  ;;  %v7012_v50 = vpop.permute.xlu1 %3218 }
 0x67a   :  { %5130 = vmatmul.mubr.f32.vlgmr.msra.gmra.mxu0 %v2873_v57  ;;  %5151 = vmatprep.subr.mxu1 %v3816_v58  ;;  %v3831_v57 = vld [vmem:[%s7385_s8 + $0x1b0] sm:$0xff] }
 0x67b   :  { %5173 = vmatprep.subr.mxu0 %v3840_v36  ;;  %5132 = vmatprep.mubr.f32.mxu0 %v2874_v45 }
 0x67c   :  { %5152 = vmatpush3.msra.mxu1 %v3816_v58  ;;  %5174 = vmatpush3.msra.mxu0 %v3840_v36  ;;  %v3832_v58 = vld [vmem:[%s7385_s8 + $0x1b8] sm:$0xff]  ;;  %v3855_v36 = vld [vmem:[%s7385_s8 + $0x270] sm:$0xff] }
 0x67d   :  { %5153 = vmatprep.subr.mxu1 %v3815_v44  ;;  %5175 = vmatprep.subr.mxu0 %v3839_v47 }
 0x67e   :  { %5154 = vmatpush3.msra.mxu1 %v3815_v44  ;;  %5176 = vmatpush3.msra.mxu0 %v3839_v47  ;;  %v3345_v45 = vpop.permute.xlu1 %3344  ;;  %v3828_v47 = vld [vmem:[%s7385_s8 + $0x198] sm:$0xff] }
 0x67f   :  { %5133 = vmatmul.mubr.f32.gmra.mxu0 %v2875_v61  ;;  %5155 = vmatprep.subr.mxu1 %v3814_v6  ;;  %v3359_v44 = vmul.f32 %v3345_v45, %v3339_v49  ;;  %v3850_v61 = vld [vmem:[%s7385_s8 + $0x248] sm:$0xff]  ;;  %v3340_v45 = vld [vmem:[#allocation2 + $0x12] sm:$0xff] }
 0x680   :  { %5177 = vmatprep.subr.mxu0 %v3838_v10  ;;  %5156 = vmatpush3.msra.mxu1 %v3814_v6 }
 0x681   :  { %5178 = vmatpush3.msra.mxu0 %v3838_v10  ;;  %5205 = vmatprep.mubr.f32.mxu0 %v3229_v40  ;;  %v3825_v10 = vld [vmem:[%s7385_s8 + $0x180] sm:$0xff]  ;;  %v3210_v40 = vld [vmem:[#allocation2 + $0x11] sm:$0xff] }
 0x682   :  { %5157 = vmatprep.subr.mxu1 %v3813_v51  ;;  %5179 = vmatprep.subr.mxu0 %v3837_v4 }
 0x683   :  { %5158 = vmatpush3.msra.mxu1 %v3813_v51  ;;  %5180 = vmatpush3.msra.mxu0 %v3837_v4  ;;  %v3223_v6 = vpop.permute.xlu1 %3222  ;;  %v3848_v51 = vld [vmem:[%s7385_s8 + $0x238] sm:$0xff]  ;;  %v3230_v4 = vmul.f32 %v7012_v50, %v3210_v40 }
 0x684   :  { %5159 = vmatprep.subr.mxu1 %v3812_v60  ;;  %5181 = vmatprep.subr.mxu0 %v3836_v54  ;;  %v3844_v50 = vld [vmem:[%s7385_s8 + $0x218] sm:$0xff] }
 0x685   :  { %5160 = vmatpush3.msra.mxu1 %v3812_v60  ;;  %5182 = vmatpush3.msra.mxu0 %v3836_v54  ;;  %v3211_v60 = vld [vmem:[#allocation2 + $0x19] sm:$0xff] }
 0x686   :  { %5161 = vmatprep.subr.mxu1 %v3811_v5  ;;  %5183 = vmatprep.subr.mxu0 %v3835_v18  ;;  %v3231_v54 = vmul.f32 %v3223_v6, %v3211_v60 }
 0x687   :  { %5162 = vmatpush3.msra.mxu1 %v3811_v5  ;;  %5184 = vmatpush3.msra.mxu0 %v3835_v18  ;;  %v3227_v5 = vpop.permute.xlu1 %3226  ;;  %v3847_v18 = vld [vmem:[%s7385_s8 + $0x230] sm:$0xff] }
 0x688   :  { %5163 = vmatprep.subr.mxu1 %v3810_v34  ;;  %5185 = vmatprep.subr.mxu0 %v3834_v3 }
 0x689   :  { %5164 = vmatpush3.msra.mxu1 %v3810_v34  ;;  %5186 = vmatpush3.msra.mxu0 %v3834_v3  ;;  %v3212_v34 = vld [vmem:[#allocation2 + $0x21] sm:$0xff] }
 0x68a   :  { %5165 = vmatprep.subr.mxu1 %v3809_v43  ;;  %5187 = vmatprep.subr.mxu0 %v3833_v9  ;;  %v3846_v3 = vld [vmem:[%s7385_s8 + $0x228] sm:$0xff] }
 0x68b   :  { %5166 = vmatpush3.msra.mxu1 %v3809_v43  ;;  %5188 = vmatpush3.msra.mxu0 %v3833_v9  ;;  %v3232_v43 = vmul.f32 %v3227_v5, %v3212_v34  ;;  %v3845_v9 = vld [vmem:[%s7385_s8 + $0x220] sm:$0xff] }
 0x68c   :  { %5168 = vmatmul.mubr.f32.vlgmr.msra.gmra.mxu1 %v2400_v56  ;;  %5189 = vmatprep.subr.mxu0 %v3832_v58  ;;  %v3854_v56 = vld [vmem:[%s7385_s8 + $0x268] sm:$0xff] }
 0x68d   :  { %5211 = vmatprep.subr.mxu1 %v3856_v28  ;;  %5170 = vmatprep.mubr.f32.mxu1 %v2401_v38  ;;  %v3853_v38 = vld [vmem:[%s7385_s8 + $0x260] sm:$0xff] }
 0x68e   :  { %5190 = vmatpush3.msra.mxu0 %v3832_v58  ;;  %5212 = vmatpush3.msra.mxu1 %v3856_v28  ;;  %v3843_v58 = vld [vmem:[%s7385_s8 + $0x210] sm:$0xff]  ;;  %v3349_v28 = vpop.permute.xlu0 %3348 }
 0x68f   :  { %5191 = vmatprep.subr.mxu0 %v3831_v57  ;;  %5213 = vmatprep.subr.mxu1 %v3855_v36  ;;  %v3360_v49 = vmul.f32 %v3349_v28, %v3340_v45 }
 0x690   :  { %5192 = vmatpush3.msra.mxu0 %v3831_v57  ;;  %5214 = vmatpush3.msra.mxu1 %v3855_v36  ;;  %v3842_v57 = vld [vmem:[%s7385_s8 + $0x208] sm:$0xff]  ;;  %v3841_v36 = vld [vmem:[%s7385_s8 + $0x200] sm:$0xff] }
 0x691   :  { %5171 = vmatmul.mubr.f32.gmra.mxu1 %v2402_v33  ;;  %5193 = vmatprep.subr.mxu0 %v3830_v39  ;;  %v3827_v33 = vld [vmem:[%s7385_s8 + $0x190] sm:$0xff] }
 0x692   :  { %5215 = vmatprep.subr.mxu1 %v3854_v56  ;;  %5194 = vmatpush3.msra.mxu0 %v3830_v39  ;;  %v3341_v39 = vld [vmem:[#allocation2 + $0x1a] sm:$0xff] }
 0x693   :  { %5216 = vmatpush3.msra.mxu1 %v3854_v56  ;;  %5243 = vmatprep.mubr.f32.mxu1 %v3359_v44  ;;  %v3353_v56 = vpop.permute.xlu0 %3352  ;;  %v3357_v44 = vpop.permute.xlu1 %3356 }
 0x694   :  { %5195 = vmatprep.subr.mxu0 %v3829_v46  ;;  %5217 = vmatprep.subr.mxu1 %v3853_v38 }
 0x695   :  { %5196 = vmatpush3.msra.mxu0 %v3829_v46  ;;  %5218 = vmatpush3.msra.mxu1 %v3853_v38  ;;  %v3361_v46 = vmul.f32 %v3353_v56, %v3341_v39  ;;  %v3342_v38 = vld [vmem:[#allocation2 + $0x22] sm:$0xff] }
 0x696   :  { %5197 = vmatprep.subr.mxu0 %v3828_v47  ;;  %5219 = vmatprep.subr.mxu1 %v3852_v17 }
 0x697   :  { %5198 = vmatpush3.msra.mxu0 %v3828_v47  ;;  %5220 = vmatpush3.msra.mxu1 %v3852_v17  ;;  %v3362_v47 = vmul.f32 %v3357_v44, %v3342_v38 }
 0x698   :  { %5199 = vmatprep.subr.mxu0 %v3827_v33  ;;  %5221 = vmatprep.subr.mxu1 %v3851_v32 }
 0x699   :  { %5200 = vmatpush3.msra.mxu0 %v3827_v33  ;;  %5222 = vmatpush3.msra.mxu1 %v3851_v32 }
 0x69a   :  { %5201 = vmatprep.subr.mxu0 %v3826_v27  ;;  %5223 = vmatprep.subr.mxu1 %v3850_v61 }
 0x69b   :  { %5202 = vmatpush3.msra.mxu0 %v3826_v27  ;;  %5224 = vmatpush3.msra.mxu1 %v3850_v61 }
 0x69c   :  { %5203 = vmatprep.subr.mxu0 %v3825_v10  ;;  %5225 = vmatprep.subr.mxu1 %v3849_v12 }
 0x69d   :  { %5204 = vmatpush3.msra.mxu0 %v3825_v10  ;;  %5226 = vmatpush3.msra.mxu1 %v3849_v12 }
 0x69e   :  { %5206 = vmatmul.mubr.f32.vlgmr.msra.gmra.mxu0 %v3230_v4  ;;  %5227 = vmatprep.subr.mxu1 %v3848_v51 }
 0x69f   :  { %5208 = vmatprep.mubr.f32.mxu0 %v3231_v54  ;;  %5228 = vmatpush3.msra.mxu1 %v3848_v51 }
 0x6a0   :  { %5229 = vmatprep.subr.mxu1 %v3847_v18 }
 0x6a1   :  { %5230 = vmatpush3.msra.mxu1 %v3847_v18 }
 0x6a2   :  { %5209 = vmatmul.mubr.f32.gmra.mxu0 %v3232_v43  ;;  %5231 = vmatprep.subr.mxu1 %v3846_v3 }
 0x6a3   :  { %5232 = vmatpush3.msra.mxu1 %v3846_v3 }
 0x6a4   :  { %5233 = vmatprep.subr.mxu1 %v3845_v9 }
 0x6a5   :  { %5234 = vmatpush3.msra.mxu1 %v3845_v9 }
 0x6a6   :  { %5235 = vmatprep.subr.mxu1 %v3844_v50 }
 0x6a7   :  { %5236 = vmatpush3.msra.mxu1 %v3844_v50 }
 0x6a8   :  { %5237 = vmatprep.subr.mxu1 %v3843_v58 }
 0x6a9   :  { %5238 = vmatpush3.msra.mxu1 %v3843_v58 }
 0x6aa   :  { %5239 = vmatprep.subr.mxu1 %v3842_v57 }
 0x6ab   :  { %5240 = vmatpush3.msra.mxu1 %v3842_v57 }
 0x6ac   :  { %5241 = vmatprep.subr.mxu1 %v3841_v36 }
 0x6ad   :  { %5242 = vmatpush3.msra.mxu1 %v3841_v36 }
 0x6ae   :  { %5244 = vmatmul.mubr.f32.vlgmr.msra.gmra.mxu1 %v3360_v49 }
 0x6af   :  { %5246 = vmatprep.mubr.f32.mxu1 %v3361_v46  ;;  %v686_v46 = vpop.permute.xlu0 %685 }
 0x6b0   :  { %v687_v38 = vadd.f32 %v686_v46, %v6712_v8 }
 0x6b2   :  { %5247 = vmatmul.mubr.f32.gmra.mxu1 %v3362_v47 }
 0x6b9   :  { %v4979_v17 = vpop.f32.mrf.mxu0 }
 0x6bb   :  { %v2538_v33 = vpop.f32.mrf.mxu0 }
 0x6bd   :  { %v4982_v32 = vpop.f32.mrf.mxu0 }
 0x6bf   :  { %v2548_v27 = vpop.f32.mrf.mxu0 }
 0x6c3   :  { %v5017_v6 = vpop.f32.mrf.mxu1 }
 0x6c4   :  { %v2629_v60 = vadd.f32 %v5017_v6, %v4979_v17 }
 0x6c5   :  { %v2623_v61 = vpop.f32.mrf.mxu1 }
 0x6c6   :  { %v2624_v51 = vadd.f32 %v2623_v61, %v2538_v33 }
 0x713   :  { %v5020_v12 = vpop.f32.mrf.mxu1 }
 0x714   :  { %v2639_v43 = vadd.f32 %v5020_v12, %v4982_v32 }
 0x715   :  { %v2633_v4 = vpop.f32.mrf.mxu1 }
 0x716   :  { %v2634_v18 = vadd.f32 %v2633_v4, %v2548_v27 }
 0x718   :  { %v5055_v10 = vpop.f32.mrf.mxu0 }
 0x719   :  { %v7095_v34 = vadd.f32 %v5055_v10, %v2629_v60 }
 0x71a   :  { %v2749_v40 = vpop.f32.mrf.mxu0 }
 0x71b   :  { %v7093_v54 = vadd.f32 %v2749_v40, %v2624_v51 }
 0x71d   :  { %v2772_v9 = vadd.f32 %v7095_v34, %v7093_v54 }
 0x726   :  { %v5058_v5 = vpop.f32.mrf.mxu0 }
 0x727   :  { %v7101_v58 = vadd.f32 %v5058_v5, %v2639_v43 }
 0x728   :  { %v2759_v3 = vpop.f32.mrf.mxu0  ;;  %v5093_v47 = vpop.f32.mrf.mxu1 }
 0x729   :  { %v7099_v50 = vadd.f32 %v2759_v3, %v2634_v18 }
 0x72a   :  { %v2999_v17 = vpop.f32.mrf.mxu1 }
 0x72b   :  { %v2773_v28 = vadd.f32 %v2772_v9, %v7099_v50 }
 0x72d   :  { %v2774_v57 = vadd.f32 %v2773_v28, %v7101_v58  ;;  %v5096_v32 = vpop.f32.mrf.mxu1 }
 0x72f   :  { %v2775_v36 = vrot.slane %v2774_v57, 4  ;;  %v3009_v27 = vpop.f32.mrf.mxu1 }
 0x731   :  { %v2776_v45 = vadd.f32 %v2775_v36, %v2774_v57 }
 0x733   :  { %v2777_v39 = vrot.slane %v2776_v45, 2 }
 0x735   :  { %v2778_v56 = vadd.f32 %v2777_v39, %v2776_v45 }
 0x737   :  { %v2779_v49 = vrot.slane %v2778_v56, 1 }
 0x739   :  { %v2780_v44 = vadd.f32 %v2779_v49, %v2778_v56 }
 0x73a   :  { %v5131_v33 = vpop.f32.mrf.mxu0 }
 0x73b   :  { %2781 = vrot.lane.b32.xlu0 %v2780_v44, %s5331_s25  ;;  %v3090_v43 = vadd.f32 %v5131_v33, %v5093_v47 }
 0x73c   :  { %v3084_v6 = vpop.f32.mrf.mxu0 }
 0x73d   :  { %v3085_v5 = vadd.f32 %v3084_v6, %v2999_v17 }
 0x73f   :  { %688 = vrot.lane.b32.xlu0 %v687_v38, %s5341_s7  ;;  %v5134_v61 = vpop.f32.mrf.mxu0 }
 0x740   :  { %v3100_v56 = vadd.f32 %v5134_v61, %v5096_v32 }
 0x741   :  { %v3094_v12 = vpop.f32.mrf.mxu0 }
 0x742   :  { %v3095_v28 = vadd.f32 %v3094_v12, %v3009_v27 }
 0x74c   :  { %v5169_v10 = vpop.f32.mrf.mxu1 }
 0x74d   :  { %v3206_v57 = vadd.f32 %v5169_v10, %v3090_v43 }
 0x74e   :  { %v3186_v40 = vpop.f32.mrf.mxu1 }
 0x74f   :  { %v3205_v8 = vadd.f32 %v3186_v40, %v3085_v5  ;;  %v1323_v5 = vpop.permute.xlu1 %1322 }
 0x751   :  { %v5172_v4 = vpop.f32.mrf.mxu1 }
 0x752   :  { %v3208_v30 = vadd.f32 %v5172_v4, %v3100_v56 }
 0x753   :  { %v3196_v18 = vpop.f32.mrf.mxu1 }
 0x754   :  { %v3207_v49 = vadd.f32 %v3196_v18, %v3095_v28 }
 0x75e   :  { %v5207_v51 = vpop.f32.mrf.mxu0 }
 0x75f   :  { %v3336_v46 = vadd.f32 %v5207_v51, %v3206_v57 }
 0x760   :  { %v3316_v60 = vpop.f32.mrf.mxu0 }
 0x761   :  { %v3335_v36 = vadd.f32 %v3316_v60, %v3205_v8 }
 0x762   :  { %v5210_v3 = vpop.f32.mrf.mxu0 }
 0x763   :  { %v3338_v6 = vadd.f32 %v5210_v3, %v3208_v30  ;;  %v1324_v30 = vadd.f32 %v1323_v5, %v6819_v14 }
 0x764   :  { %v3326_v45 = vpop.f32.mrf.mxu0 }
 0x765   :  { %v3337_v21 = vadd.f32 %v3326_v45, %v3207_v49 }
 0x76e   :  { %v5245_v9 = vpop.f32.mrf.mxu1 }
 0x76f   :  { %v7110_v19 = vadd.f32 %v5245_v9, %v3336_v46 }
 0x770   :  { %v3446_v39 = vpop.f32.mrf.mxu1 }
 0x771   :  { %v7108_v26 = vadd.f32 %v3446_v39, %v3335_v36 }
 0x772   :  { %v5248_v52 = vpop.f32.mrf.mxu1 }
 0x773   :  { %v3469_v47 = vadd.f32 %v7110_v19, %v7108_v26  ;;  %v7116_v27 = vadd.f32 %v5248_v52, %v3338_v6 }
 0x774   :  { %v3456_v17 = vpop.f32.mrf.mxu1 }
 0x775   :  { %v7114_v33 = vadd.f32 %v3456_v17, %v3337_v21 }
 0x777   :  { %v3470_v32 = vadd.f32 %v3469_v47, %v7114_v33 }
 0x779   :  { %v3471_v61 = vadd.f32 %v3470_v32, %v7116_v27 }
 0x77b   :  { %v3472_v10 = vrot.slane %v3471_v61, 4 }
 0x77d   :  { %v3473_v12 = vadd.f32 %v3472_v10, %v3471_v61 }
 0x77f   :  { %v3474_v40 = vrot.slane %v3473_v12, 2 }
 0x781   :  { %v3475_v51 = vadd.f32 %v3474_v40, %v3473_v12 }
 0x783   :  { %v3476_v4 = vrot.slane %v3475_v51, 1 }
 0x785   :  { %v3477_v60 = vadd.f32 %v3476_v4, %v3475_v51 }
 0x787   :  { %3478 = vrot.lane.b32.xlu1 %v3477_v60, %s5331_s25 }
 0x78b   :  { %1325 = vrot.lane.b32.xlu1 %v1324_v30, %s5341_s7 }
 0x7ad   :  { %v2782_v21 = vpop.permute.xlu0 %2781 }
 0x7ae   :  { %v2783_v52 = vadd.f32 %v2782_v21, %v2780_v44 }
 0x7b0   :  { %2784 = vrot.lane.b32.xlu0 %v2783_v52, %s5341_s7 }
 0x7b1   :  { %v689_v18 = vpop.permute.xlu0 %688 }
 0x7b2   :  { %v690_v3 = vadd.f32 %v689_v18, %v687_v38 }
 0x7b4   :  { %691 = vrot.lane.b32.xlu0 %v690_v3, %s5342_s9 }
 0x7f9   :  { %v3479_v43 = vpop.permute.xlu1 %3478 }
 0x7fa   :  { %v3480_v8 = vadd.f32 %v3479_v43, %v3477_v60 }
 0x7fc   :  { %3481 = vrot.lane.b32.xlu1 %v3480_v8, %s5341_s7 }
 0x7fd   :  { %v1326_v9 = vpop.permute.xlu1 %1325 }
 0x7fe   :  { %v1327_v28 = vadd.f32 %v1326_v9, %v1324_v30 }
 0x800   :  { %1328 = vrot.lane.b32.xlu1 %v1327_v28, %s5342_s9 }
 0x822   :  { %v2785_v57 = vpop.permute.xlu0 %2784 }
 0x823   :  { %v2786_v14 = vadd.f32 %v2785_v57, %v2783_v52 }
 0x825   :  { %2787 = vrot.lane.b32.xlu0 %v2786_v14, %s5342_s9 }
 0x826   :  { %v692_v36 = vpop.permute.xlu0 %691 }
 0x827   :  { %v693_v44 = vadd.f32 %v692_v36, %v690_v3 }
 0x829   :  { %694 = vrot.lane.b32.xlu0 %v693_v44, %s5343_s0 }
 0x86e   :  { %v3482_v45 = vpop.permute.xlu1 %3481 }
 0x86f   :  { %v3483_v38 = vadd.f32 %v3482_v45, %v3480_v8 }
 0x871   :  { %3484 = vrot.lane.b32.xlu1 %v3483_v38, %s5342_s9 }
 0x872   :  { %v1329_v39 = vpop.permute.xlu1 %1328 }
 0x873   :  { %v1330_v56 = vadd.f32 %v1329_v39, %v1327_v28 }
 0x875   :  { %1331 = vrot.lane.b32.xlu1 %v1330_v56, %s5343_s0 }
 0x897   :  { %v2788_v49 = vpop.permute.xlu0 %2787 }
 0x898   :  { %v2789_v46 = vadd.f32 %v2788_v49, %v2786_v14 }
 0x89a   :  { %2790 = vrot.lane.b32.xlu0 %v2789_v46, %s5343_s0 }
 0x89b   :  { %v695_v17 = vpop.permute.xlu0 %694 }
 0x89c   :  { %v696_v6 = vadd.f32 %v695_v17, %v693_v44 }
 0x89e   :  { %v697_v47 = vmul.f32 0.001953125, %v696_v6 }
 0x8a0   :  { %v701_v32 = vrot.slane %v697_v47, %v5671_v15 }
 0x8a2   :  { %v7134_v61 = vsub.f32 %v6387_v35, %v701_v32  ;;  %v7137_v10 = vsub.f32 %v6379_v2, %v701_v32  ;;  %v7140_v12 = vsub.f32 %v6415_v55, %v701_v32  ;;  %v7143_v40 = vsub.f32 %v6407_v37, %v701_v32 }
 0x8a4   :  { %v706_v51 = vmul.f32 %v7134_v61, %v7134_v61  ;;  %v707_v4 = vmul.f32 %v7137_v10, %v7137_v10  ;;  %v708_v60 = vmul.f32 %v7140_v12, %v7140_v12  ;;  %v709_v2 = vmul.f32 %v7143_v40, %v7143_v40 }
 0x8a6   :  { %v710_v35 = vadd.f32 %v707_v4, %v706_v51 }
 0x8a8   :  { %v711_v5 = vadd.f32 %v710_v35, %v708_v60 }
 0x8aa   :  { %v712_v30 = vadd.f32 %v711_v5, %v709_v2 }
 0x8ac   :  { %v713_v55 = vrot.slane %v712_v30, 4 }
 0x8ae   :  { %v714_v21 = vadd.f32 %v713_v55, %v712_v30 }
 0x8b0   :  { %v715_v52 = vrot.slane %v714_v21, 2 }
 0x8b2   :  { %v716_v37 = vadd.f32 %v715_v52, %v714_v21 }
 0x8b4   :  { %v717_v18 = vrot.slane %v716_v37, 1 }
 0x8b6   :  { %v718_v3 = vadd.f32 %v717_v18, %v716_v37 }
 0x8b8   :  { %719 = vrot.lane.b32.xlu0 %v718_v3, %s5331_s25 }
 0x8e3   :  { %v3485_v43 = vpop.permute.xlu1 %3484 }
 0x8e4   :  { %v3486_v8 = vadd.f32 %v3485_v43, %v3483_v38 }
 0x8e6   :  { %3487 = vrot.lane.b32.xlu1 %v3486_v8, %s5343_s0 }
 0x8e7   :  { %v1332_v9 = vpop.permute.xlu1 %1331 }
 0x8e8   :  { %v1333_v28 = vadd.f32 %v1332_v9, %v1330_v56 }
 0x8ea   :  { %v1334_v57 = vmul.f32 0.001953125, %v1333_v28 }
 0x8ec   :  { %v1338_v14 = vrot.slane %v1334_v57, %v5671_v15 }
 0x8ee   :  { %v7157_v36 = vsub.f32 %v6492_v11, %v1338_v14  ;;  %v7160_v44 = vsub.f32 %v6490_v1, %v1338_v14  ;;  %v7163_v45 = vsub.f32 %v6496_v0, %v1338_v14  ;;  %v7166_v39 = vsub.f32 %v6494_v13, %v1338_v14 }
 0x8f0   :  { %v1343_v38 = vmul.f32 %v7157_v36, %v7157_v36  ;;  %v1344_v56 = vmul.f32 %v7160_v44, %v7160_v44  ;;  %v1345_v49 = vmul.f32 %v7163_v45, %v7163_v45  ;;  %v1346_v1 = vmul.f32 %v7166_v39, %v7166_v39 }
 0x8f2   :  { %v1347_v11 = vadd.f32 %v1344_v56, %v1343_v38 }
 0x8f4   :  { %v1348_v17 = vadd.f32 %v1347_v11, %v1345_v49 }
 0x8f6   :  { %v1349_v6 = vadd.f32 %v1348_v17, %v1346_v1 }
 0x8f8   :  { %v1350_v0 = vrot.slane %v1349_v6, 4 }
 0x8fa   :  { %v1351_v47 = vadd.f32 %v1350_v0, %v1349_v6 }
 0x8fc   :  { %v1352_v32 = vrot.slane %v1351_v47, 2 }
 0x8fe   :  { %v1353_v13 = vadd.f32 %v1352_v32, %v1351_v47 }
 0x900   :  { %v1354_v51 = vrot.slane %v1353_v13, 1 }
 0x902   :  { %v1355_v4 = vadd.f32 %v1354_v51, %v1353_v13 }
 0x904   :  { %1356 = vrot.lane.b32.xlu1 %v1355_v4, %s5331_s25 }
 0x90c   :  { %v2791_v60 = vpop.permute.xlu0 %2790 }
 0x90d   :  { %v2792_v35 = vadd.f32 %v2791_v60, %v2789_v46 }
 0x90f   :  { %v2793_v2 = vmul.f32 0.001953125, %v2792_v35 }
 0x911   :  { %v2797_v5 = vrot.slane %v2793_v2, %v5671_v15 }
 0x913   :  { %v7179_v30 = vsub.f32 %v7093_v54, %v2797_v5  ;;  %v7182_v55 = vsub.f32 %v7095_v34, %v2797_v5  ;;  %v7185_v21 = vsub.f32 %v7099_v50, %v2797_v5  ;;  %v7188_v52 = vsub.f32 %v7101_v58, %v2797_v5 }
 0x915   :  { %v2802_v37 = vmul.f32 %v7179_v30, %v7179_v30  ;;  %v2803_v46 = vmul.f32 %v7182_v55, %v7182_v55  ;;  %v2804_v18 = vmul.f32 %v7185_v21, %v7185_v21  ;;  %v2805_v34 = vmul.f32 %v7188_v52, %v7188_v52 }
 0x917   :  { %v2806_v54 = vadd.f32 %v2803_v46, %v2802_v37 }
 0x919   :  { %v2807_v43 = vadd.f32 %v2806_v54, %v2804_v18 }
 0x91b   :  { %v2808_v9 = vadd.f32 %v2807_v43, %v2805_v34 }
 0x91d   :  { %v2809_v50 = vrot.slane %v2808_v9, 4 }
 0x91f   :  { %v2810_v28 = vadd.f32 %v2809_v50, %v2808_v9 }
 0x921   :  { %v2811_v57 = vrot.slane %v2810_v28, 2 }
 0x923   :  { %v2812_v58 = vadd.f32 %v2811_v57, %v2810_v28 }
 0x925   :  { %v2813_v14 = vrot.slane %v2812_v58, 1 }
 0x927   :  { %v2814_v38 = vadd.f32 %v2813_v14, %v2812_v58 }
 0x929   :  { %2815 = vrot.lane.b32.xlu0 %v2814_v38, %s5331_s25 }
 0x92a   :  { %v720_v56 = vpop.permute.xlu0 %719 }
 0x92b   :  { %v721_v49 = vadd.f32 %v720_v56, %v718_v3 }
 0x92d   :  { %722 = vrot.lane.b32.xlu0 %v721_v49, %s5341_s7 }
 0x958   :  { %v3488_v11 = vpop.permute.xlu1 %3487 }
 0x959   :  { %v3489_v1 = vadd.f32 %v3488_v11, %v3486_v8 }
 0x95b   :  { %v3490_v17 = vmul.f32 0.001953125, %v3489_v1 }
 0x95d   :  { %v3494_v6 = vrot.slane %v3490_v17, %v5671_v15  ;;  %v141_v17 = vld [vmem:[%s7379_s2 + $0x8] sm:$0xff] }
 0x95e   :  { %vm145_vm4 = vcmp.gt.f32.partialorder %v141_v17, 0.0 }
 0x95f   :  { %v7202_v0 = vsub.f32 %v7108_v26, %v3494_v6  ;;  %v7205_v47 = vsub.f32 %v7110_v19, %v3494_v6  ;;  %v7208_v32 = vsub.f32 %v7114_v33, %v3494_v6  ;;  %v7211_v13 = vsub.f32 %v7116_v27, %v3494_v6 }
 0x961   :  { %v3499_v3 = vmul.f32 %v7202_v0, %v7202_v0  ;;  %v3500_v8 = vmul.f32 %v7205_v47, %v7205_v47  ;;  %v3501_v51 = vmul.f32 %v7208_v32, %v7208_v32  ;;  %v3502_v19 = vmul.f32 %v7211_v13, %v7211_v13 }
 0x963   :  { %v3503_v26 = vadd.f32 %v3500_v8, %v3499_v3  ;;  %v142_v8 = vld [vmem:[%s7379_s2 + $0x10] sm:$0xff] }
 0x964   :  { %vm146_vm5 = vcmp.gt.f32.partialorder %v142_v8, 0.0 }
 0x965   :  { %v3504_v60 = vadd.f32 %v3503_v26, %v3501_v51  ;;  %v7421_v51 = vmov 0  }
 0x966   :  { %v153_v26 = vsel %vm145_vm4, 1, %v7421_v51 }
 0x967   :  { %v3505_v35 = vadd.f32 %v3504_v60, %v3502_v19  ;;  %v154_v19 = vsel %vm146_vm5, 1, %v7421_v51  ;;  %v216_v60 = vld [vmem:[%s7379_s2] sm:$0xff] }
 0x968   :  { %vm144_vm6 = vcmp.gt.f32.partialorder %v216_v60, 0.0 }
 0x969   :  { %v3506_v33 = vrot.slane %v3505_v35, 4 }
 0x96b   :  { %v3507_v2 = vadd.f32 %v3506_v33, %v3505_v35  ;;  %v152_v35 = vsel %vm144_vm6, 1, %v7421_v51 }
 0x96d   :  { %v3508_v5 = vrot.slane %v3507_v2, 2 }
 0x96f   :  { %v3509_v27 = vadd.f32 %v3508_v5, %v3507_v2  ;;  %v143_v5 = vld [vmem:[%s7379_s2 + $0x18] sm:$0xff]  ;;  %s3567_s2 = sld [smem:[#allocation3 + $0x6]] }
 0x970   :  { %vm147_vm7 = vcmp.gt.f32.partialorder %v143_v5, 0.0 }
 0x971   :  { %v3510_v37 = vrot.slane %v3509_v27, 1 }
 0x973   :  { %v3511_v46 = vadd.f32 %v3510_v37, %v3509_v27  ;;  %v155_v27 = vsel %vm147_vm7, 1, %v7421_v51 }
 0x975   :  { %3512 = vrot.lane.b32.xlu1 %v3511_v46, %s5331_s25  ;;  %v734_v51 = vstv %s3567_s2 }
 0x976   :  { %v1357_v18 = vpop.permute.xlu1 %1356 }
 0x977   :  { %v1358_v54 = vadd.f32 %v1357_v18, %v1355_v4 }
 0x979   :  { %1359 = vrot.lane.b32.xlu1 %v1358_v54, %s5341_s7 }
 0x99b   :  { %v2816_v34 = vpop.permute.xlu0 %2815 }
 0x99c   :  { %v2817_v43 = vadd.f32 %v2816_v34, %v2814_v38 }
 0x99e   :  { %2818 = vrot.lane.b32.xlu0 %v2817_v43, %s5341_s7 }
 0x99f   :  { %v723_v9 = vpop.permute.xlu0 %722 }
 0x9a0   :  { %v724_v50 = vadd.f32 %v723_v9, %v721_v49 }
 0x9a2   :  { %725 = vrot.lane.b32.xlu0 %v724_v50, %s5342_s9 }
 0x9e7   :  { %v3513_v28 = vpop.permute.xlu1 %3512 }
 0x9e8   :  { %v3514_v57 = vadd.f32 %v3513_v28, %v3511_v46 }
 0x9ea   :  { %3515 = vrot.lane.b32.xlu1 %v3514_v57, %s5341_s7 }
 0x9eb   :  { %v1360_v58 = vpop.permute.xlu1 %1359 }
 0x9ec   :  { %v1361_v14 = vadd.f32 %v1360_v58, %v1358_v54 }
 0x9ee   :  { %1362 = vrot.lane.b32.xlu1 %v1361_v14, %s5342_s9 }
 0xa10   :  { %v2819_v56 = vpop.permute.xlu0 %2818 }
 0xa11   :  { %v2820_v4 = vadd.f32 %v2819_v56, %v2817_v43 }
 0xa13   :  { %2821 = vrot.lane.b32.xlu0 %v2820_v4, %s5342_s9 }
 0xa14   :  { %v726_v11 = vpop.permute.xlu0 %725 }
 0xa15   :  { %v727_v38 = vadd.f32 %v726_v11, %v724_v50 }
 0xa17   :  { %728 = vrot.lane.b32.xlu0 %v727_v38, %s5343_s0 }
 0xa5c   :  { %v3516_v1 = vpop.permute.xlu1 %3515 }
 0xa5d   :  { %v3517_v49 = vadd.f32 %v3516_v1, %v3514_v57 }
 0xa5f   :  { %3518 = vrot.lane.b32.xlu1 %v3517_v49, %s5342_s9 }
 0xa60   :  { %v1363_v6 = vpop.permute.xlu1 %1362 }
 0xa61   :  { %v1364_v3 = vadd.f32 %v1363_v6, %v1361_v14 }
 0xa63   :  { %1365 = vrot.lane.b32.xlu1 %v1364_v3, %s5343_s0 }
 0xa67   :  { %160 = vperm.xlu1 %5292, %v153_v26  }
 0xa6b   :  { %163 = vperm.xlu1 %5292, %v154_v19  }
 0xa6f   :  { %222 = vperm.xlu1 %5292, %v216_v60  }
 0xa73   :  { %232 = vperm.xlu1 %5292, %v142_v8  }
 0xa77   :  { %5293 = vset.pattern.permute.xlu1 %v7417_v48 }
 0xa78   :  { %185 = vperm.xlu1 %5293, %v152_v35  }
 0xa85   :  { %v2822_v33 = vpop.permute.xlu0 %2821 }
 0xa86   :  { %v2823_v2 = vadd.f32 %v2822_v33, %v2820_v4 }
 0xa88   :  { %2824 = vrot.lane.b32.xlu0 %v2823_v2, %s5343_s0 }
 0xa89   :  { %v729_v18 = vpop.permute.xlu0 %728 }
 0xa8a   :  { %v730_v9 = vadd.f32 %v729_v18, %v727_v38 }
 0xa8c   :  { %157 = vperm.xlu0 %5291, %v152_v35   ;;  %v731_v28 = vmul.f32 0.001953125, %v730_v9 }
 0xa90   :  { %166 = vperm.xlu0 %5291, %v155_v27  }
 0xa94   :  { %227 = vperm.xlu0 %5291, %v141_v17  }
 0xa98   :  { %237 = vperm.xlu0 %5291, %v143_v5  }
 0xa9c   :  { %5294 = vset.pattern.permute.xlu0 %v7417_v48 }
 0xa9d   :  { %188 = vperm.xlu0 %5294, %v153_v26  }
 0xaa1   :  { %253 = vperm.xlu0 %5294, %v216_v60  }
 0xaa5   :  { %261 = vperm.xlu0 %5294, %v142_v8  }
 0xaa9   :  { %5295 = vset.pattern.permute.xlu0 %v7420_v16  ;;  %v732_v16 = vadd.f32 1e-05, %v731_v28  ;;  %v5312_v28 = vld [vmem:[%s7378_s1] sm:$0xff] }
 0xaab   :  { %5300 = vrsqrt.f32 %v732_v16 }
 0xab8   :  { %v5301_v8 = vpop.eup %5300 }
 0xab9   :  { %v735_v33 = vmul.f32 %v5301_v8, %v734_v51  ;;  %v5314_v8 = vld [vmem:[%s7378_s1 + $0x10] sm:$0xff] }
 0xad1   :  { %v3519_v37 = vpop.permute.xlu1 %3518 }
 0xad2   :  { %v3520_v46 = vadd.f32 %v3519_v37, %v3517_v49  ;;  %v289_v37 = vstv %s3564_s13 }
 0xad3   :  { %v7297_v51 = vmul.f32 %v5314_v8, %v289_v37  ;;  %v7426_v8 = vld [vmem:[#allocation12_spill] sm:$0xff] }
 0xad4   :  { %3521 = vrot.lane.b32.xlu1 %v3520_v46, %s5343_s0  ;;  %s3568_s0 = sld [smem:[#allocation3 + $0x7]] }
 0xad5   :  { %v1366_v54 = vpop.permute.xlu1 %1365 }
 0xad6   :  { %v1367_v50 = vadd.f32 %v1366_v54, %v1364_v3 }
 0xad8   :  { %191 = vperm.xlu1 %5293, %v154_v19   ;;  %v1368_v58 = vmul.f32 0.001953125, %v1367_v50  ;;  %v2830_v50 = vstv %s7260_s14 }
 0xada   :  { %v1369_v4 = vadd.f32 1e-05, %v1368_v58  ;;  %v290_v58 = vmul.f32 %v5312_v28, %v289_v37 }
 0xadc   :  { %194 = vperm.xlu1 %5293, %v155_v27   ;;  %5302 = vrsqrt.f32 %v1369_v4 }
 0xae0   :  { %257 = vperm.xlu1 %5293, %v141_v17  }
 0xae2   :  { %v7252_v34 = vpop.permute.xlu1 %160 }
 0xae3   :  { %vm169_vm11 = vcmp.eq.s32.totalorder %v7252_v34, 1 }
 0xae4   :  { %265 = vperm.xlu1 %5293, %v143_v5  }
 0xae6   :  { %v164_v57 = vpop.permute.xlu1 %163 }
 0xae7   :  { %vm170_vm9 = vcmp.eq.s32.totalorder %v164_v57, 1  ;;  %v5313_v57 = vld [vmem:[%s7378_s1 + $0x8] sm:$0xff] }
 0xae8   :  { %v7281_v4 = vmul.f32 %v5313_v57, %v289_v37 }
 0xae9   :  { %v5303_v35 = vpop.eup %5302 }
 0xaea   :  { %v223_v56 = vpop.permute.xlu1 %222 }
 0xaeb   :  { %v240_v16 = vmul.f32 %v223_v56, %v5751_v24  ;;  %v7291_v56 = vstv %s3563_s16 }
 0xaee   :  { %v233_v49 = vpop.permute.xlu1 %232 }
 0xaf3   :  { %v186_v3 = vpop.permute.xlu1 %185 }
 0xaf4   :  { %vm196_vm10 = vcmp.eq.s32.totalorder %v186_v3, 1  ;;  %v3527_v3 = vstv %s7262_s17 }
 0xaf5   :  { %v200_v24 = vsel %vm196_vm10, %v5726_v7, -inf }
 0xafa   :  { %v2825_v43 = vpop.permute.xlu0 %2824 }
 0xafb   :  { %v2826_v11 = vadd.f32 %v2825_v43, %v2823_v2  ;;  %v1371_v2 = vstv %s3568_s0  ;;  %v7266_v43 = vrot.slane %v735_v33, %v5671_v15 }
 0xafc   :  { %v1372_v27 = vmul.f32 %v5303_v35, %v1371_v2  ;;  %v242_v35 = vmul.f32 %v233_v49, %v5753_v25 }
 0xafd   :  { %v2827_v17 = vmul.f32 0.001953125, %v2826_v11  ;;  %v174_v11 = vsel %vm170_vm9, %v5740_v20, -inf  ;;  %v173_v20 = vsel %vm169_vm11, %v5724_v63, -inf }
 0xafe   :  { %v178_v7 = vmax.f32 %v174_v11, %v5715_v53  ;;  %v177_v53 = vmax.f32 %v173_v20, %v5701_v41  ;;  %v276_v41 = vld [vmem:[%s7381_s4] sm:$0xff] }
 0xaff   :  { %v2828_v38 = vadd.f32 1e-05, %v2827_v17  ;;  %v742_v17 = vmul.f32 %v7266_v43, %v7140_v12 }
 0xb01   :  { %5304 = vrsqrt.f32 %v2828_v38  ;;  %v741_v38 = vmul.f32 %v7266_v43, %v7137_v10 }
 0xb07   :  { %v158_v48 = vpop.permute.xlu0 %157 }
 0xb08   :  { %vm168_vm8 = vcmp.eq.s32.totalorder %v158_v48, 1 }
 0xb09   :  { %v172_v18 = vsel %vm168_vm8, %v5722_v62, -inf  ;;  %v1376_v62 = vrot.slane %v1372_v27, %v5671_v15 }
 0xb0a   :  { %v176_v48 = vmax.f32 %v172_v18, %v5703_v42  ;;  %v740_v42 = vmul.f32 %v7266_v43, %v7134_v61 }
 0xb0b   :  { %v7254_v14 = vpop.permute.xlu0 %166  ;;  %v1377_v10 = vmul.f32 %v1376_v62, %v7157_v36  ;;  %v1378_v36 = vmul.f32 %v1376_v62, %v7160_v44 }
 0xb0c   :  { %v204_v61 = vmax.f32 %v176_v48, %v200_v24  ;;  %vm171_vm13 = vcmp.eq.s32.totalorder %v7254_v14, 1  ;;  %v5315_v14 = vld [vmem:[%s7378_s1 + $0x18] sm:$0xff]  ;;  %v7425_v24 = vld [vmem:[#allocation6_spill] sm:$0xff] }
 0xb0d   :  { %v7316_v49 = vmul.f32 %v5315_v14, %v289_v37  ;;  %v1380_v37 = vmul.f32 %v1376_v62, %v7166_v39  ;;  %v1381_v48 = vadd.f32 %v1377_v10, %v740_v42  ;;  %v1382_v57 = vadd.f32 %v1378_v36, %v741_v38 }
 0xb0e   :  { %v5305_v34 = vpop.eup %5304 }
 0xb0f   :  { %v7256_v1 = vpop.permute.xlu0 %227  ;;  %v2831_v2 = vmul.f32 %v5305_v34, %v2830_v50 }
 0xb13   :  { %v7258_v6 = vpop.permute.xlu0 %237 }
 0xb14   :  { %v243_v20 = vmul.f32 %v7258_v6, %v7426_v8  ;;  %v7429_v6 = vld [vmem:[#allocation13_spill] sm:$0xff] }
 0xb18   :  { %v189_v26 = vpop.permute.xlu0 %188 }
 0xb19   :  { %vm197_vm12 = vcmp.eq.s32.totalorder %v189_v26, 1 }
 0xb1a   :  { %v201_v63 = vsel %vm197_vm12, %v5744_v22, -inf  ;;  %v7423_v22 = vld [vmem:[#allocation11_spill] sm:$0xff] }
 0xb1b   :  { %v175_v18 = vsel %vm171_vm13, %v7423_v22, -inf  ;;  %v205_v50 = vmax.f32 %v177_v53, %v201_v63 }
 0xb1c   :  { %v254_v9 = vpop.permute.xlu0 %253 }
 0xb1d   :  { %v268_v12 = vmul.f32 %v254_v9, %v5763_v31  ;;  %v2835_v9 = vrot.slane %v2831_v2, %v5671_v15 }
 0xb1f   :  { %v2838_v10 = vmul.f32 %v2835_v9, %v7185_v21  ;;  %v2839_v63 = vmul.f32 %v2835_v9, %v7188_v52 }
 0xb46   :  { %v3522_v19 = vpop.permute.xlu1 %3521 }
 0xb47   :  { %v3523_v60 = vadd.f32 %v3522_v19, %v3520_v46  ;;  %v7269_v46 = vstv %s3562_s15  ;;  %v262_v19 = vpop.permute.xlu0 %261 }
 0xb48   :  { %v270_v31 = vmul.f32 %v262_v19, %v5759_v29  ;;  %v7424_v29 = vld [vmem:[#allocation14_spill] sm:$0xff]  ;;  %v7427_v19 = vld [vmem:[#allocation7_spill] sm:$0xff]  ;;  %v286_v38 = vmul.f32 %v7269_v46, %v205_v50 }
 0xb49   :  { %v3524_v5 = vmul.f32 0.001953125, %v3523_v60  ;;  %v244_v60 = vadd.f32 %v240_v16, %v5720_v59  ;;  %v285_v59 = vmul.f32 %v7269_v46, %v204_v61 }
 0xb4b   :  { %v3525_v54 = vadd.f32 1e-05, %v3524_v5  ;;  %v1379_v5 = vmul.f32 %v1376_v62, %v7163_v45  ;;  %v272_v25 = vadd.f32 %v268_v12, %v244_v60  ;;  %v7422_v45 = vld [vmem:[#allocation10_spill] sm:$0xff]  ;;  %v294_v34 = vadd.f32 %v290_v58, %v285_v59  ;;  %v7428_v62 = vld [vmem:[#allocation9_spill] sm:$0xff] }
 0xb4c   :  { %v246_v27 = vadd.f32 %v242_v35, %v7422_v45  ;;  %v278_v12 = vld [vmem:[%s7381_s4 + $0x10] sm:$0xff]  ;;  %v2836_v58 = vmul.f32 %v2835_v9, %v7179_v30  ;;  %v295_v45 = vadd.f32 %v7281_v4, %v286_v38 }
 0xb4d   :  { %5306 = vrsqrt.f32 %v3525_v54  ;;  %v1383_v16 = vadd.f32 %v1379_v5, %v742_v17  ;;  %v280_v61 = vmul.f32 %v276_v41, %v272_v25  ;;  %v2837_v5 = vmul.f32 %v2835_v9, %v7182_v55 }
 0xb4e   :  { %v274_v28 = vadd.f32 %v270_v31, %v246_v27  ;;  %v7430_v31 = vld [vmem:[#allocation8_spill] sm:$0xff]  ;;  %v7431_v27 = vld [vmem:[#allocation15_spill] sm:$0xff] }
 0xb4f   :  { %v299_v30 = vmul.f32 %v7291_v56, %v280_v61 }
 0xb53   :  { %v192_v33 = vpop.permute.xlu1 %191 }
 0xb54   :  { %vm198_vm14 = vcmp.eq.s32.totalorder %v192_v33, 1  ;;  %v282_v33 = vmul.f32 %v278_v12, %v274_v28 }
 0xb55   :  { %v202_v26 = vsel %vm198_vm14, %v5746_v23, -inf  ;;  %v241_v23 = vmul.f32 %v7256_v1, %v7424_v29  ;;  %v179_v1 = vmax.f32 %v175_v18, %v7425_v24 }
 0xb56   :  { %v206_v44 = vmax.f32 %v178_v7, %v202_v26  ;;  %v247_v26 = vadd.f32 %v243_v20, %v7430_v31  ;;  %v301_v18 = vmul.f32 %v7291_v56, %v282_v33 }
 0xb57   :  { %v195_v54 = vpop.permute.xlu1 %194  ;;  %v245_v7 = vadd.f32 %v241_v23, %v7427_v19 }
 0xb58   :  { %vm199_vm15 = vcmp.eq.s32.totalorder %v195_v54, 1  ;;  %v287_v39 = vmul.f32 %v7269_v46, %v206_v44 }
 0xb59   :  { %v203_v42 = vsel %vm199_vm15, %v7428_v62, -inf }
 0xb5a   :  { %v5307_v11 = vpop.eup %5306  ;;  %v207_v36 = vmax.f32 %v179_v1, %v203_v42 }
 0xb5b   :  { %v3528_v60 = vmul.f32 %v5307_v11, %v3527_v3  ;;  %v258_v17 = vpop.permute.xlu1 %257  ;;  %v277_v3 = vld [vmem:[%s7381_s4 + $0x8] sm:$0xff]  ;;  %v743_v11 = vmul.f32 %v7266_v43, %v7143_v40 }
 0xb5c   :  { %v269_v35 = vmul.f32 %v258_v17, %v7429_v6 }
 0xb5d   :  { %v3532_v2 = vrot.slane %v3528_v60, %v5671_v15  ;;  %v296_v15 = vadd.f32 %v7297_v51, %v287_v39  ;;  %v1384_v61 = vadd.f32 %v1380_v37, %v743_v11 }
 0xb5e   :  { %v273_v53 = vadd.f32 %v269_v35, %v245_v7 }
 0xb5f   :  { %v3533_v21 = vmul.f32 %v3532_v2, %v7202_v0  ;;  %v3535_v59 = vmul.f32 %v3532_v2, %v7208_v32  ;;  %v3534_v25 = vmul.f32 %v3532_v2, %v7205_v47  ;;  %v266_v14 = vpop.permute.xlu1 %265  ;;  %v3536_v52 = vmul.f32 %v3532_v2, %v7211_v13  ;;  %v279_v0 = vld [vmem:[%s7381_s4 + $0x18] sm:$0xff] }
 0xb60   :  { %v281_v55 = vmul.f32 %v277_v3, %v273_v53  ;;  %v271_v22 = vmul.f32 %v266_v14, %v7431_v27  ;;  %v3541_v32 = vadd.f32 %v299_v30, %v294_v34  ;;  %v288_v47 = vmul.f32 %v7269_v46, %v207_v36 }
 0xb61   :  { %v3537_v29 = vadd.f32 %v3533_v21, %v2836_v58  ;;  %v3539_v23 = vadd.f32 %v3535_v59, %v2838_v10  ;;  %v3538_v41 = vadd.f32 %v3534_v25, %v2837_v5  ;;  %v3543_v54 = vadd.f32 %v301_v18, %v296_v15 }
 0xb62   :  { %v300_v51 = vmul.f32 %v7291_v56, %v281_v55  ;;  %v275_v4 = vadd.f32 %v271_v22, %v247_v26  ;;  %v3540_v24 = vadd.f32 %v3536_v52, %v2839_v63  ;;  %v297_v20 = vadd.f32 %v7316_v49, %v288_v47 }
 0xb63   :  { %v3545_v44 = vadd.f32 %v3537_v29, %v1381_v48  ;;  %v3547_v13 = vadd.f32 %v3539_v23, %v1383_v16  ;;  %v3546_v9 = vadd.f32 %v3538_v41, %v1382_v57 }
 0xb64   :  { %v3542_v50 = vadd.f32 %v300_v51, %v295_v45  ;;  %v283_v28 = vmul.f32 %v279_v0, %v275_v4  ;;  %v3548_v43 = vadd.f32 %v3540_v24, %v1384_v61 }
 0xb65   :  { %v3549_v1 = vadd.f32 %v3545_v44, %v3541_v32  ;;  %v3551_v8 = vadd.f32 %v3547_v13, %v3543_v54 }
 0xb66   :  { %v3550_v34 = vadd.f32 %v3546_v9, %v3542_v50  ;;  %v302_v46 = vmul.f32 %v7291_v56, %v283_v28 }
 0xb67   :  { %3553 = vst [vmem:[%s7388_s11] sm:$0xff] %v3549_v1  ;;  %3555 = vst [vmem:[%s7388_s11 + $0x10] sm:$0xff] %v3551_v8 }
 0xb68   :  { %3554 = vst [vmem:[%s7388_s11 + $0x8] sm:$0xff] %v3550_v34  ;;  %v3544_v40 = vadd.f32 %v302_v46, %v297_v20 }
 0xb6a   :  { %v3552_v48 = vadd.f32 %v3548_v43, %v3544_v40 }
 0xb6c   :  { %3556 = vst [vmem:[%s7388_s11 + $0x18] sm:$0xff] %v3552_v48 }
 0xb6d   :  { %3561 = vsyncpa [#allocation4], 1 }

</bundles_post_ra>
